<compile_context>
chip_gen: v7x
topology: tpu7x:2x2x1
jax: 0.10.0
libtpu: 0.0.40
codegen_flags: <defaults>
</compile_context>

<pallas_src>
import jax
import jax.numpy as jnp
import numpy as np
from jax import lax
from jax.experimental import pallas as pl
from jax.experimental.pallas import tpu as pltpu


def _round_up(x, m):
    return ((x + m - 1) // m) * m


def _vmem_capacity_bytes():
    """Per-core VMEM capacity; conservative (v7x) fallback if query unavailable."""
    try:
        return int(pltpu.get_tpu_info().vmem_capacity_bytes)
    except Exception:
        return 64 * 1024 * 1024


# ---------------------------------------------------------------------------
# Fused multi-layer kernel.
#   x_ref : (D0, tB)                   batch tile on the 128-lane axis
#   per layer l: P_ref (5, Din, Dout)  = [0.5*w1x, 0.5*w1s, 0.5*w1c, 0.5*b1, w2]
#                b2s_ref (Dout, 1)     = sum_i B2[i, j, 0]      (f32)
#   o_ref : (D_last, tB) f32
#   scratch: two (maxD, tB) ping-pong activation buffers (compute_dtype)
# ---------------------------------------------------------------------------
def _make_fused_kernel(layer_dims, chunk, compute_dtype):
    n_layers = len(layer_dims)

    def kernel(x_ref, *refs):
        o_ref = refs[2 * n_layers]
        scratch = refs[2 * n_layers + 1: 2 * n_layers + 3]
        tB = x_ref.shape[-1]

        for l, (din, dout) in enumerate(layer_dims):
            p_ref = refs[2 * l]              # (5, din, dout)  compute_dtype
            b2s_ref = refs[2 * l + 1]        # (dout, 1)       f32
            src = x_ref if l == 0 else scratch[(l - 1) % 2]

            def contrib(i0, size, p_ref=p_ref, src=src):
                # Activation rows for this Din chunk (batch on lanes).
                xc = src[pl.ds(i0, size), :]                      # (size, tB)
                sc = jnp.sin(xc)
                cc = jnp.cos(xc)
                # Weight planes read directly from the ref, per chunk.
                w1x = p_ref[0, pl.ds(i0, size), :][:, :, None]    # (size, dout, 1)
                w1s = p_ref[1, pl.ds(i0, size), :][:, :, None]
                w1c = p_ref[2, pl.ds(i0, size), :][:, :, None]
                b1h = p_ref[3, pl.ds(i0, size), :][:, :, None]
                w2 = p_ref[4, pl.ds(i0, size), :][:, :, None]
                # v = u/2 (W1/B1 were pre-halved on the host).
                v = (w1x * xc[:, None, :] + w1s * sc[:, None, :]
                     + w1c * cc[:, None, :] + b1h)                # (size, dout, tB)
                # W2 * silu(u) = w2 * v * (1 + tanh(v))  -- single EUP push.
                c = w2 * (v * (jnp.tanh(v) + 1.0))
                # f32 accumulation over the Din chunk.
                return jnp.sum(c.astype(jnp.float32), axis=0)     # (dout, tB)

            n_full, rem = divmod(din, chunk)
            acc = jnp.zeros((dout, tB), jnp.float32)
            if n_full == 1:
                acc = acc + contrib(0, chunk)
            elif n_full > 1:
                def body(ci, a):
                    i0 = pl.multiple_of(ci * chunk, chunk)
                    return a + contrib(i0, chunk)
                acc = lax.fori_loop(0, n_full, body, acc,
                                    unroll=bool(n_full <= 8))
            if rem:
                acc = acc + contrib(n_full * chunk, rem)

            out = acc + b2s_ref[...]          # + sum_i B2, broadcast over lanes
            if l == n_layers - 1:
                o_ref[...] = out.astype(o_ref.dtype)
            else:
                scratch[l % 2][0:dout, :] = out.astype(compute_dtype)

    return kernel


# ---------------------------------------------------------------------------
# Host-side packing + wrapper
# ---------------------------------------------------------------------------
def _pack_layer(W1, W2, B1, B2, compute_dtype):
    din, dout = W1.shape[0], W1.shape[1]
    assert W1.shape == (din, dout, 1, 3)
    assert W2.shape == (din, dout, 1, 1)
    assert B1.shape == (din, dout, 1)
    assert B2.shape == (din, dout, 1)
    # Pre-halve W1/B1 so the kernel computes v = u/2 directly (exact).
    P = jnp.stack(
        [0.5 * W1[:, :, 0, 0], 0.5 * W1[:, :, 0, 1], 0.5 * W1[:, :, 0, 2],
         0.5 * B1[:, :, 0], W2[:, :, 0, 0]],
        axis=0).astype(compute_dtype)                               # (5, Din, Dout)
    b2s = jnp.sum(B2[:, :, 0], axis=0)[:, None].astype(jnp.float32)  # (Dout, 1)
    return P, b2s


def fcn_kan_forward(x, params, *, compute_dtype=jnp.float32,
                    max_tile_b=2048, din_chunk=8):
    """Fused FCN_KAN forward. x: (B, D0); params: list of (W1, W2, B1, B2)."""
    assert din_chunk % 8 == 0
    B, D0 = x.shape
    assert D0 == params[0][0].shape[0]
    dims = [D0] + [W1.shape[1] for (W1, _, _, _) in params]
    n_layers = len(params)
    itemsize = jnp.dtype(compute_dtype).itemsize

    packed = [_pack_layer(*p, compute_dtype) for p in params]

    # ---- generation-aware tile planning ----
    vmem_cap = _vmem_capacity_bytes()
    budget = int(0.55 * vmem_cap)                 # what we let our estimate use
    dl = dims[-1]
    max_dout = max(dims[1:])
    inter = dims[1:-1]
    maxd_scr = _round_up(max(inter) if inter else 8, 8)

    const = 2 * 1024 * 1024                       # compiler scratch headroom
    for din, dout in zip(dims[:-1], dims[1:]):
        const += 2 * 5 * din * dout * itemsize            # packed planes (x2 buf)
        const += 2 * _round_up(dout, 8) * 128 * 4         # b2s, lane-padded
    per_lane = (2 * maxd_scr * itemsize                    # ping-pong activations
                + 2 * D0 * itemsize + 2 * dl * 4           # double-buffered io
                + max_dout * 4                             # f32 accumulator
                + 10 * din_chunk * max_dout * itemsize)    # live chunk tensors
    tB = (budget - const) // per_lane // 128 * 128
    tB = int(min(tB, max_tile_b))
    if tB < 128:
        raise ValueError("FCN_KAN layers too large for VMEM at a 128-lane batch tile")
    B128 = _round_up(B, 128)
    tB = min(tB, B128)
    if B128 >= 256:                               # >=2 tiles so both v7x TCs work
        tB = min(tB, (B128 // 2) // 128 * 128)
    B_pad = _round_up(B, tB)

    # lane axis = batch: transpose + zero-pad (pad lanes never mix with real
    # lanes: everything is elementwise in batch, reductions are over Din only).
    xT = jnp.pad(x.T.astype(compute_dtype), ((0, 0), (0, B_pad - B)))

    in_specs = [pl.BlockSpec((D0, tB), lambda b: (0, b))]
    args = [xT]
    for (P, b2s) in packed:
        in_specs.append(pl.BlockSpec(P.shape, lambda b: (0, 0, 0)))   # resident
        in_specs.append(pl.BlockSpec(b2s.shape, lambda b: (0, 0)))    # resident
        args.extend([P, b2s])

    out_spec = pl.BlockSpec((dl, tB), lambda b: (0, b))
    vmem_limit = int(min(0.75 * vmem_cap, vmem_cap - (8 << 20)))

    yT = pl.pallas_call(
        _make_fused_kernel(list(zip(dims[:-1], dims[1:])), din_chunk, compute_dtype),
        out_shape=jax.ShapeDtypeStruct((dl, B_pad), jnp.float32),
        grid=(B_pad // tB,),
        in_specs=in_specs,
        out_specs=out_spec,
        scratch_shapes=[pltpu.VMEM((maxd_scr, tB), compute_dtype),
                        pltpu.VMEM((maxd_scr, tB), compute_dtype)],
        compiler_params=pltpu.CompilerParams(
            dimension_semantics=("parallel",),
            vmem_limit_bytes=vmem_limit),
    )(*args)

    return yT[:, :B].T                             # (B, D_last) f32


# ---------------------------------------------------------------------------
# Parameter construction (deterministic, mirrors FCNKANLayer.init_parameters)
# ---------------------------------------------------------------------------
def _xavier_normal(key, shape):
    receptive = int(np.prod(shape[2:])) if len(shape) > 2 else 1
    fan_in = shape[1] * receptive
    fan_out = shape[0] * receptive
    std = float(np.sqrt(2.0 / (fan_in + fan_out)))
    return std * jax.random.normal(key, shape, dtype=jnp.float32)


def make_fcn_kan_params(key, layers_hidden):
    params = []
    for din, dout in zip(layers_hidden[:-1], layers_hidden[1:]):
        key, k1, k2 = jax.random.split(key, 3)
        W1 = _xavier_normal(k1, (din, dout, 1, 3))   # fcn_hidden=1, 1+2*fcn_n_sin=3
        W2 = _xavier_normal(k2, (din, dout, 1, 1))
        B1 = jnp.zeros((din, dout, 1), jnp.float32)
        B2 = jnp.zeros((din, dout, 1), jnp.float32)
        params.append((W1, W2, B1, B2))
    return params


# ---------------------------------------------------------------------------
# Pure-JAX reference (mirrors the torch vmapped phi) for correctness check.
# ---------------------------------------------------------------------------
def ref_layer(x, W1, W2, B1, B2):
    feat = jnp.stack([x, jnp.sin(x), jnp.cos(x)], axis=-1)        # (B, Din, 3)
    u = jnp.einsum("bif,ijhf->bijh", feat, W1) + B1[None]         # (B, Din, Dout, 1)
    h = jax.nn.silu(u)
    out = jnp.einsum("bijh,ijoh->bijo", h, W2) + B2[None]         # (B, Din, Dout, 1)
    return out[..., 0].sum(axis=1)                                # (B, Dout)


def ref_forward(x, params):
    for (W1, W2, B1, B2) in params:
        x = ref_layer(x, W1, W2, B1, B2)
    return x


if __name__ == "__main__":
    key = jax.random.PRNGKey(0)
    kx, kp, kb = jax.random.split(key, 3)

    layers_hidden = [4, 32, 8]           # FCN_KAN([4, 32, 8]) -> two KAN layers
    batch = 200                          # > 128 so the batch grid has 2 tiles
    x = jax.random.normal(kx, (batch, layers_hidden[0]), dtype=jnp.float32)

    params = make_fcn_kan_params(kp, layers_hidden)
    # give the biases nonzero values so the bias paths (incl. the hoisted
    # sum_i B2) are actually exercised by the correctness check
    perturbed = []
    for (W1, W2, B1, B2) in params:
        kb, kb1, kb2 = jax.random.split(kb, 3)
        B1 = 0.1 * jax.random.normal(kb1, B1.shape, dtype=jnp.float32)
        B2 = 0.1 * jax.random.normal(kb2, B2.shape, dtype=jnp.float32)
        perturbed.append((W1, W2, B1, B2))
    params = perturbed

    y_ref = jax.block_until_ready(ref_forward(x, params))

    # f32 path (v5e-friendly, tight tolerance)
    y32 = jax.block_until_ready(fcn_kan_forward(x, params,
                                                compute_dtype=jnp.float32))
    np.testing.assert_allclose(np.asarray(y32), np.asarray(y_ref),
                               rtol=1e-4, atol=1e-4)
    assert y32.shape == (batch, layers_hidden[-1])

    # bf16 hot path (v6e/v7x lever: bf16 VALU/EUP, f32 Din accumulation)
    y16 = jax.block_until_ready(fcn_kan_forward(x, params,
                                                compute_dtype=jnp.bfloat16))
    np.testing.assert_allclose(np.asarray(y16), np.asarray(y_ref),
                               rtol=8e-2, atol=8e-2)
    assert y16.shape == (batch, layers_hidden[-1])

    print("KERNEL_OK")
</pallas_src>

<mosaic_0001>
module attributes {stable_mosaic.version = 11 : i64} {
  func.func @kernel(%arg0: i32, %arg1: memref<4x128xf32, #tpu.memory_space<vmem>>, %arg2: memref<5x4x32xf32, #tpu.memory_space<vmem>>, %arg3: memref<32x1xf32, #tpu.memory_space<vmem>>, %arg4: memref<5x32x8xf32, #tpu.memory_space<vmem>>, %arg5: memref<8x1xf32, #tpu.memory_space<vmem>>, %arg6: memref<8x128xf32, #tpu.memory_space<vmem>>, %arg7: memref<32x128xf32, #tpu.memory_space<vmem>>, %arg8: memref<32x128xf32, #tpu.memory_space<vmem>>) attributes {dimension_semantics = [#tpu.dimension_semantics<parallel>], iteration_bounds = array<i64: 2>, scalar_prefetch = 0 : i64, scratch_operands = 2 : i64, tpu.core_type = #tpu.core_type<tc>, window_params = [{transform_indices = @transform_0, window_bounds = array<i64: 4, 128>}, {pipeline_mode = #tpu.pipeline_mode<synchronous>, transform_indices = @transform_1, window_bounds = array<i64: 5, 4, 32>}, {pipeline_mode = #tpu.pipeline_mode<synchronous>, transform_indices = @transform_2, window_bounds = array<i64: 32, 1>}, {pipeline_mode = #tpu.pipeline_mode<synchronous>, transform_indices = @transform_3, window_bounds = array<i64: 5, 32, 8>}, {pipeline_mode = #tpu.pipeline_mode<synchronous>, transform_indices = @transform_4, window_bounds = array<i64: 8, 1>}, {transform_indices = @transform_5, window_bounds = array<i64: 8, 128>}]} {
    %cst = arith.constant 0.000000e+00 : f32
    %0 = vector.broadcast %cst : f32 to vector<32x128xf32>
    %c0 = arith.constant 0 : index
    %c0_0 = arith.constant 0 : index
    %1 = vector.load %arg1[%c0, %c0_0] : memref<4x128xf32, #tpu.memory_space<vmem>>, vector<4x128xf32>
    %2 = math.sin %1 : vector<4x128xf32>
    %3 = math.cos %1 : vector<4x128xf32>
    %c0_1 = arith.constant 0 : index
    %c0_2 = arith.constant 0 : index
    %c0_3 = arith.constant 0 : index
    %4 = vector.load %arg2[%c0_1, %c0_2, %c0_3] : memref<5x4x32xf32, #tpu.memory_space<vmem>>, vector<1x4x32xf32>
    %5 = vector.shape_cast %4 : vector<1x4x32xf32> to vector<4x32xf32>
    %6 = vector.shape_cast %5 : vector<4x32xf32> to vector<4x32x1xf32>
    %c1 = arith.constant 1 : index
    %c0_4 = arith.constant 0 : index
    %c0_5 = arith.constant 0 : index
    %7 = vector.load %arg2[%c1, %c0_4, %c0_5] : memref<5x4x32xf32, #tpu.memory_space<vmem>>, vector<1x4x32xf32>
    %8 = vector.shape_cast %7 : vector<1x4x32xf32> to vector<4x32xf32>
    %9 = vector.shape_cast %8 : vector<4x32xf32> to vector<4x32x1xf32>
    %c2 = arith.constant 2 : index
    %c0_6 = arith.constant 0 : index
    %c0_7 = arith.constant 0 : index
    %10 = vector.load %arg2[%c2, %c0_6, %c0_7] : memref<5x4x32xf32, #tpu.memory_space<vmem>>, vector<1x4x32xf32>
    %11 = vector.shape_cast %10 : vector<1x4x32xf32> to vector<4x32xf32>
    %12 = vector.shape_cast %11 : vector<4x32xf32> to vector<4x32x1xf32>
    %c3 = arith.constant 3 : index
    %c0_8 = arith.constant 0 : index
    %c0_9 = arith.constant 0 : index
    %13 = vector.load %arg2[%c3, %c0_8, %c0_9] : memref<5x4x32xf32, #tpu.memory_space<vmem>>, vector<1x4x32xf32>
    %14 = vector.shape_cast %13 : vector<1x4x32xf32> to vector<4x32xf32>
    %15 = vector.shape_cast %14 : vector<4x32xf32> to vector<4x32x1xf32>
    %c4 = arith.constant 4 : index
    %c0_10 = arith.constant 0 : index
    %c0_11 = arith.constant 0 : index
    %16 = vector.load %arg2[%c4, %c0_10, %c0_11] : memref<5x4x32xf32, #tpu.memory_space<vmem>>, vector<1x4x32xf32>
    %17 = vector.shape_cast %16 : vector<1x4x32xf32> to vector<4x32xf32>
    %18 = vector.shape_cast %17 : vector<4x32xf32> to vector<4x32x1xf32>
    %19 = vector.shape_cast %1 : vector<4x128xf32> to vector<4x1x128xf32>
    %20 = vector.broadcast %6 : vector<4x32x1xf32> to vector<4x32x128xf32>
    %21 = vector.broadcast %19 : vector<4x1x128xf32> to vector<4x32x128xf32>
    %22 = arith.mulf %20, %21 : vector<4x32x128xf32>
    %23 = vector.shape_cast %2 : vector<4x128xf32> to vector<4x1x128xf32>
    %24 = vector.broadcast %9 : vector<4x32x1xf32> to vector<4x32x128xf32>
    %25 = vector.broadcast %23 : vector<4x1x128xf32> to vector<4x32x128xf32>
    %26 = arith.mulf %24, %25 : vector<4x32x128xf32>
    %27 = arith.addf %22, %26 : vector<4x32x128xf32>
    %28 = vector.shape_cast %3 : vector<4x128xf32> to vector<4x1x128xf32>
    %29 = vector.broadcast %12 : vector<4x32x1xf32> to vector<4x32x128xf32>
    %30 = vector.broadcast %28 : vector<4x1x128xf32> to vector<4x32x128xf32>
    %31 = arith.mulf %29, %30 : vector<4x32x128xf32>
    %32 = arith.addf %27, %31 : vector<4x32x128xf32>
    %33 = vector.broadcast %15 : vector<4x32x1xf32> to vector<4x32x128xf32>
    %34 = arith.addf %32, %33 : vector<4x32x128xf32>
    %35 = math.tanh %34 : vector<4x32x128xf32>
    %cst_12 = arith.constant 1.000000e+00 : f32
    %36 = vector.broadcast %cst_12 : f32 to vector<4x32x128xf32>
    %37 = arith.addf %35, %36 : vector<4x32x128xf32>
    %38 = arith.mulf %34, %37 : vector<4x32x128xf32>
    %39 = vector.broadcast %18 : vector<4x32x1xf32> to vector<4x32x128xf32>
    %40 = arith.mulf %39, %38 : vector<4x32x128xf32>
    %cst_13 = arith.constant dense<0.000000e+00> : vector<32x128xf32>
    %41 = vector.multi_reduction <add>, %40, %cst_13 [0] : vector<4x32x128xf32> to vector<32x128xf32>
    %42 = arith.addf %0, %41 : vector<32x128xf32>
    %c0_14 = arith.constant 0 : index
    %c0_15 = arith.constant 0 : index
    %43 = vector.load %arg3[%c0_14, %c0_15] : memref<32x1xf32, #tpu.memory_space<vmem>>, vector<32x1xf32>
    %44 = vector.broadcast %43 : vector<32x1xf32> to vector<32x128xf32>
    %45 = arith.addf %42, %44 : vector<32x128xf32>
    %c0_16 = arith.constant 0 : index
    %c0_17 = arith.constant 0 : index
    %46 = vector.load %arg7[%c0_16, %c0_17] : memref<32x128xf32, #tpu.memory_space<vmem>>, vector<32x128xf32>
    tpu.vector_store %arg7[%c0_16, %c0_17], %45 {strides = array<i32>} : memref<32x128xf32, #tpu.memory_space<vmem>>, vector<32x128xf32>,
    %cst_18 = arith.constant 0.000000e+00 : f32
    %47 = vector.broadcast %cst_18 : f32 to vector<8x128xf32>
    %c0_i32 = arith.constant 0 : i32
    %c8_i32 = arith.constant 8 : i32
    %48 = arith.muli %c0_i32, %c8_i32 : i32
    %49 = tpu.assume_multiple %48, 8 : i32
    %50 = arith.index_cast %49 : i32 to index
    %c0_19 = arith.constant 0 : index
    %51 = vector.load %arg7[%50, %c0_19] : memref<32x128xf32, #tpu.memory_space<vmem>>, vector<8x128xf32>
    %52 = math.sin %51 : vector<8x128xf32>
    %53 = math.cos %51 : vector<8x128xf32>
    %c0_20 = arith.constant 0 : index
    %54 = arith.index_cast %49 : i32 to index
    %c0_21 = arith.constant 0 : index
    %55 = vector.load %arg4[%c0_20, %54, %c0_21] : memref<5x32x8xf32, #tpu.memory_space<vmem>>, vector<1x8x8xf32>
    %56 = vector.shape_cast %55 : vector<1x8x8xf32> to vector<8x8xf32>
    %57 = vector.shape_cast %56 : vector<8x8xf32> to vector<8x8x1xf32>
    %c1_22 = arith.constant 1 : index
    %58 = arith.index_cast %49 : i32 to index
    %c0_23 = arith.constant 0 : index
    %59 = vector.load %arg4[%c1_22, %58, %c0_23] : memref<5x32x8xf32, #tpu.memory_space<vmem>>, vector<1x8x8xf32>
    %60 = vector.shape_cast %59 : vector<1x8x8xf32> to vector<8x8xf32>
    %61 = vector.shape_cast %60 : vector<8x8xf32> to vector<8x8x1xf32>
    %c2_24 = arith.constant 2 : index
    %62 = arith.index_cast %49 : i32 to index
    %c0_25 = arith.constant 0 : index
    %63 = vector.load %arg4[%c2_24, %62, %c0_25] : memref<5x32x8xf32, #tpu.memory_space<vmem>>, vector<1x8x8xf32>
    %64 = vector.shape_cast %63 : vector<1x8x8xf32> to vector<8x8xf32>
    %65 = vector.shape_cast %64 : vector<8x8xf32> to vector<8x8x1xf32>
    %c3_26 = arith.constant 3 : index
    %66 = arith.index_cast %49 : i32 to index
    %c0_27 = arith.constant 0 : index
    %67 = vector.load %arg4[%c3_26, %66, %c0_27] : memref<5x32x8xf32, #tpu.memory_space<vmem>>, vector<1x8x8xf32>
    %68 = vector.shape_cast %67 : vector<1x8x8xf32> to vector<8x8xf32>
    %69 = vector.shape_cast %68 : vector<8x8xf32> to vector<8x8x1xf32>
    %c4_28 = arith.constant 4 : index
    %70 = arith.index_cast %49 : i32 to index
    %c0_29 = arith.constant 0 : index
    %71 = vector.load %arg4[%c4_28, %70, %c0_29] : memref<5x32x8xf32, #tpu.memory_space<vmem>>, vector<1x8x8xf32>
    %72 = vector.shape_cast %71 : vector<1x8x8xf32> to vector<8x8xf32>
    %73 = vector.shape_cast %72 : vector<8x8xf32> to vector<8x8x1xf32>
    %74 = vector.shape_cast %51 : vector<8x128xf32> to vector<8x1x128xf32>
    %75 = vector.broadcast %57 : vector<8x8x1xf32> to vector<8x8x128xf32>
    %76 = vector.broadcast %74 : vector<8x1x128xf32> to vector<8x8x128xf32>
    %77 = arith.mulf %75, %76 : vector<8x8x128xf32>
    %78 = vector.shape_cast %52 : vector<8x128xf32> to vector<8x1x128xf32>
    %79 = vector.broadcast %61 : vector<8x8x1xf32> to vector<8x8x128xf32>
    %80 = vector.broadcast %78 : vector<8x1x128xf32> to vector<8x8x128xf32>
    %81 = arith.mulf %79, %80 : vector<8x8x128xf32>
    %82 = arith.addf %77, %81 : vector<8x8x128xf32>
    %83 = vector.shape_cast %53 : vector<8x128xf32> to vector<8x1x128xf32>
    %84 = vector.broadcast %65 : vector<8x8x1xf32> to vector<8x8x128xf32>
    %85 = vector.broadcast %83 : vector<8x1x128xf32> to vector<8x8x128xf32>
    %86 = arith.mulf %84, %85 : vector<8x8x128xf32>
    %87 = arith.addf %82, %86 : vector<8x8x128xf32>
    %88 = vector.broadcast %69 : vector<8x8x1xf32> to vector<8x8x128xf32>
    %89 = arith.addf %87, %88 : vector<8x8x128xf32>
    %90 = math.tanh %89 : vector<8x8x128xf32>
    %cst_30 = arith.constant 1.000000e+00 : f32
    %91 = vector.broadcast %cst_30 : f32 to vector<8x8x128xf32>
    %92 = arith.addf %90, %91 : vector<8x8x128xf32>
    %93 = arith.mulf %89, %92 : vector<8x8x128xf32>
    %94 = vector.broadcast %73 : vector<8x8x1xf32> to vector<8x8x128xf32>
    %95 = arith.mulf %94, %93 : vector<8x8x128xf32>
    %cst_31 = arith.constant dense<0.000000e+00> : vector<8x128xf32>
    %96 = vector.multi_reduction <add>, %95, %cst_31 [0] : vector<8x8x128xf32> to vector<8x128xf32>
    %97 = arith.addf %47, %96 : vector<8x128xf32>
    %c1_i32 = arith.constant 1 : i32
    %c8_i32_32 = arith.constant 8 : i32
    %98 = arith.muli %c1_i32, %c8_i32_32 : i32
    %99 = tpu.assume_multiple %98, 8 : i32
    %100 = arith.index_cast %99 : i32 to index
    %c0_33 = arith.constant 0 : index
    %101 = vector.load %arg7[%100, %c0_33] : memref<32x128xf32, #tpu.memory_space<vmem>>, vector<8x128xf32>
    %102 = math.sin %101 : vector<8x128xf32>
    %103 = math.cos %101 : vector<8x128xf32>
    %c0_34 = arith.constant 0 : index
    %104 = arith.index_cast %99 : i32 to index
    %c0_35 = arith.constant 0 : index
    %105 = vector.load %arg4[%c0_34, %104, %c0_35] : memref<5x32x8xf32, #tpu.memory_space<vmem>>, vector<1x8x8xf32>
    %106 = vector.shape_cast %105 : vector<1x8x8xf32> to vector<8x8xf32>
    %107 = vector.shape_cast %106 : vector<8x8xf32> to vector<8x8x1xf32>
    %c1_36 = arith.constant 1 : index
    %108 = arith.index_cast %99 : i32 to index
    %c0_37 = arith.constant 0 : index
    %109 = vector.load %arg4[%c1_36, %108, %c0_37] : memref<5x32x8xf32, #tpu.memory_space<vmem>>, vector<1x8x8xf32>
    %110 = vector.shape_cast %109 : vector<1x8x8xf32> to vector<8x8xf32>
    %111 = vector.shape_cast %110 : vector<8x8xf32> to vector<8x8x1xf32>
    %c2_38 = arith.constant 2 : index
    %112 = arith.index_cast %99 : i32 to index
    %c0_39 = arith.constant 0 : index
    %113 = vector.load %arg4[%c2_38, %112, %c0_39] : memref<5x32x8xf32, #tpu.memory_space<vmem>>, vector<1x8x8xf32>
    %114 = vector.shape_cast %113 : vector<1x8x8xf32> to vector<8x8xf32>
    %115 = vector.shape_cast %114 : vector<8x8xf32> to vector<8x8x1xf32>
    %c3_40 = arith.constant 3 : index
    %116 = arith.index_cast %99 : i32 to index
    %c0_41 = arith.constant 0 : index
    %117 = vector.load %arg4[%c3_40, %116, %c0_41] : memref<5x32x8xf32, #tpu.memory_space<vmem>>, vector<1x8x8xf32>
    %118 = vector.shape_cast %117 : vector<1x8x8xf32> to vector<8x8xf32>
    %119 = vector.shape_cast %118 : vector<8x8xf32> to vector<8x8x1xf32>
    %c4_42 = arith.constant 4 : index
    %120 = arith.index_cast %99 : i32 to index
    %c0_43 = arith.constant 0 : index
    %121 = vector.load %arg4[%c4_42, %120, %c0_43] : memref<5x32x8xf32, #tpu.memory_space<vmem>>, vector<1x8x8xf32>
    %122 = vector.shape_cast %121 : vector<1x8x8xf32> to vector<8x8xf32>
    %123 = vector.shape_cast %122 : vector<8x8xf32> to vector<8x8x1xf32>
    %124 = vector.shape_cast %101 : vector<8x128xf32> to vector<8x1x128xf32>
    %125 = vector.broadcast %107 : vector<8x8x1xf32> to vector<8x8x128xf32>
    %126 = vector.broadcast %124 : vector<8x1x128xf32> to vector<8x8x128xf32>
    %127 = arith.mulf %125, %126 : vector<8x8x128xf32>
    %128 = vector.shape_cast %102 : vector<8x128xf32> to vector<8x1x128xf32>
    %129 = vector.broadcast %111 : vector<8x8x1xf32> to vector<8x8x128xf32>
    %130 = vector.broadcast %128 : vector<8x1x128xf32> to vector<8x8x128xf32>
    %131 = arith.mulf %129, %130 : vector<8x8x128xf32>
    %132 = arith.addf %127, %131 : vector<8x8x128xf32>
    %133 = vector.shape_cast %103 : vector<8x128xf32> to vector<8x1x128xf32>
    %134 = vector.broadcast %115 : vector<8x8x1xf32> to vector<8x8x128xf32>
    %135 = vector.broadcast %133 : vector<8x1x128xf32> to vector<8x8x128xf32>
    %136 = arith.mulf %134, %135 : vector<8x8x128xf32>
    %137 = arith.addf %132, %136 : vector<8x8x128xf32>
    %138 = vector.broadcast %119 : vector<8x8x1xf32> to vector<8x8x128xf32>
    %139 = arith.addf %137, %138 : vector<8x8x128xf32>
    %140 = math.tanh %139 : vector<8x8x128xf32>
    %cst_44 = arith.constant 1.000000e+00 : f32
    %141 = vector.broadcast %cst_44 : f32 to vector<8x8x128xf32>
    %142 = arith.addf %140, %141 : vector<8x8x128xf32>
    %143 = arith.mulf %139, %142 : vector<8x8x128xf32>
    %144 = vector.broadcast %123 : vector<8x8x1xf32> to vector<8x8x128xf32>
    %145 = arith.mulf %144, %143 : vector<8x8x128xf32>
    %cst_45 = arith.constant dense<0.000000e+00> : vector<8x128xf32>
    %146 = vector.multi_reduction <add>, %145, %cst_45 [0] : vector<8x8x128xf32> to vector<8x128xf32>
    %147 = arith.addf %97, %146 : vector<8x128xf32>
    %c2_i32 = arith.constant 2 : i32
    %c8_i32_46 = arith.constant 8 : i32
    %148 = arith.muli %c2_i32, %c8_i32_46 : i32
    %149 = tpu.assume_multiple %148, 8 : i32
    %150 = arith.index_cast %149 : i32 to index
    %c0_47 = arith.constant 0 : index
    %151 = vector.load %arg7[%150, %c0_47] : memref<32x128xf32, #tpu.memory_space<vmem>>, vector<8x128xf32>
    %152 = math.sin %151 : vector<8x128xf32>
    %153 = math.cos %151 : vector<8x128xf32>
    %c0_48 = arith.constant 0 : index
    %154 = arith.index_cast %149 : i32 to index
    %c0_49 = arith.constant 0 : index
    %155 = vector.load %arg4[%c0_48, %154, %c0_49] : memref<5x32x8xf32, #tpu.memory_space<vmem>>, vector<1x8x8xf32>
    %156 = vector.shape_cast %155 : vector<1x8x8xf32> to vector<8x8xf32>
    %157 = vector.shape_cast %156 : vector<8x8xf32> to vector<8x8x1xf32>
    %c1_50 = arith.constant 1 : index
    %158 = arith.index_cast %149 : i32 to index
    %c0_51 = arith.constant 0 : index
    %159 = vector.load %arg4[%c1_50, %158, %c0_51] : memref<5x32x8xf32, #tpu.memory_space<vmem>>, vector<1x8x8xf32>
    %160 = vector.shape_cast %159 : vector<1x8x8xf32> to vector<8x8xf32>
    %161 = vector.shape_cast %160 : vector<8x8xf32> to vector<8x8x1xf32>
    %c2_52 = arith.constant 2 : index
    %162 = arith.index_cast %149 : i32 to index
    %c0_53 = arith.constant 0 : index
    %163 = vector.load %arg4[%c2_52, %162, %c0_53] : memref<5x32x8xf32, #tpu.memory_space<vmem>>, vector<1x8x8xf32>
    %164 = vector.shape_cast %163 : vector<1x8x8xf32> to vector<8x8xf32>
    %165 = vector.shape_cast %164 : vector<8x8xf32> to vector<8x8x1xf32>
    %c3_54 = arith.constant 3 : index
    %166 = arith.index_cast %149 : i32 to index
    %c0_55 = arith.constant 0 : index
    %167 = vector.load %arg4[%c3_54, %166, %c0_55] : memref<5x32x8xf32, #tpu.memory_space<vmem>>, vector<1x8x8xf32>
    %168 = vector.shape_cast %167 : vector<1x8x8xf32> to vector<8x8xf32>
    %169 = vector.shape_cast %168 : vector<8x8xf32> to vector<8x8x1xf32>
    %c4_56 = arith.constant 4 : index
    %170 = arith.index_cast %149 : i32 to index
    %c0_57 = arith.constant 0 : index
    %171 = vector.load %arg4[%c4_56, %170, %c0_57] : memref<5x32x8xf32, #tpu.memory_space<vmem>>, vector<1x8x8xf32>
    %172 = vector.shape_cast %171 : vector<1x8x8xf32> to vector<8x8xf32>
    %173 = vector.shape_cast %172 : vector<8x8xf32> to vector<8x8x1xf32>
    %174 = vector.shape_cast %151 : vector<8x128xf32> to vector<8x1x128xf32>
    %175 = vector.broadcast %157 : vector<8x8x1xf32> to vector<8x8x128xf32>
    %176 = vector.broadcast %174 : vector<8x1x128xf32> to vector<8x8x128xf32>
    %177 = arith.mulf %175, %176 : vector<8x8x128xf32>
    %178 = vector.shape_cast %152 : vector<8x128xf32> to vector<8x1x128xf32>
    %179 = vector.broadcast %161 : vector<8x8x1xf32> to vector<8x8x128xf32>
    %180 = vector.broadcast %178 : vector<8x1x128xf32> to vector<8x8x128xf32>
    %181 = arith.mulf %179, %180 : vector<8x8x128xf32>
    %182 = arith.addf %177, %181 : vector<8x8x128xf32>
    %183 = vector.shape_cast %153 : vector<8x128xf32> to vector<8x1x128xf32>
    %184 = vector.broadcast %165 : vector<8x8x1xf32> to vector<8x8x128xf32>
    %185 = vector.broadcast %183 : vector<8x1x128xf32> to vector<8x8x128xf32>
    %186 = arith.mulf %184, %185 : vector<8x8x128xf32>
    %187 = arith.addf %182, %186 : vector<8x8x128xf32>
    %188 = vector.broadcast %169 : vector<8x8x1xf32> to vector<8x8x128xf32>
    %189 = arith.addf %187, %188 : vector<8x8x128xf32>
    %190 = math.tanh %189 : vector<8x8x128xf32>
    %cst_58 = arith.constant 1.000000e+00 : f32
    %191 = vector.broadcast %cst_58 : f32 to vector<8x8x128xf32>
    %192 = arith.addf %190, %191 : vector<8x8x128xf32>
    %193 = arith.mulf %189, %192 : vector<8x8x128xf32>
    %194 = vector.broadcast %173 : vector<8x8x1xf32> to vector<8x8x128xf32>
    %195 = arith.mulf %194, %193 : vector<8x8x128xf32>
    %cst_59 = arith.constant dense<0.000000e+00> : vector<8x128xf32>
    %196 = vector.multi_reduction <add>, %195, %cst_59 [0] : vector<8x8x128xf32> to vector<8x128xf32>
    %197 = arith.addf %147, %196 : vector<8x128xf32>
    %c3_i32 = arith.constant 3 : i32
    %c8_i32_60 = arith.constant 8 : i32
    %198 = arith.muli %c3_i32, %c8_i32_60 : i32
    %199 = tpu.assume_multiple %198, 8 : i32
    %200 = arith.index_cast %199 : i32 to index
    %c0_61 = arith.constant 0 : index
    %201 = vector.load %arg7[%200, %c0_61] : memref<32x128xf32, #tpu.memory_space<vmem>>, vector<8x128xf32>
    %202 = math.sin %201 : vector<8x128xf32>
    %203 = math.cos %201 : vector<8x128xf32>
    %c0_62 = arith.constant 0 : index
    %204 = arith.index_cast %199 : i32 to index
    %c0_63 = arith.constant 0 : index
    %205 = vector.load %arg4[%c0_62, %204, %c0_63] : memref<5x32x8xf32, #tpu.memory_space<vmem>>, vector<1x8x8xf32>
    %206 = vector.shape_cast %205 : vector<1x8x8xf32> to vector<8x8xf32>
    %207 = vector.shape_cast %206 : vector<8x8xf32> to vector<8x8x1xf32>
    %c1_64 = arith.constant 1 : index
    %208 = arith.index_cast %199 : i32 to index
    %c0_65 = arith.constant 0 : index
    %209 = vector.load %arg4[%c1_64, %208, %c0_65] : memref<5x32x8xf32, #tpu.memory_space<vmem>>, vector<1x8x8xf32>
    %210 = vector.shape_cast %209 : vector<1x8x8xf32> to vector<8x8xf32>
    %211 = vector.shape_cast %210 : vector<8x8xf32> to vector<8x8x1xf32>
    %c2_66 = arith.constant 2 : index
    %212 = arith.index_cast %199 : i32 to index
    %c0_67 = arith.constant 0 : index
    %213 = vector.load %arg4[%c2_66, %212, %c0_67] : memref<5x32x8xf32, #tpu.memory_space<vmem>>, vector<1x8x8xf32>
    %214 = vector.shape_cast %213 : vector<1x8x8xf32> to vector<8x8xf32>
    %215 = vector.shape_cast %214 : vector<8x8xf32> to vector<8x8x1xf32>
    %c3_68 = arith.constant 3 : index
    %216 = arith.index_cast %199 : i32 to index
    %c0_69 = arith.constant 0 : index
    %217 = vector.load %arg4[%c3_68, %216, %c0_69] : memref<5x32x8xf32, #tpu.memory_space<vmem>>, vector<1x8x8xf32>
    %218 = vector.shape_cast %217 : vector<1x8x8xf32> to vector<8x8xf32>
    %219 = vector.shape_cast %218 : vector<8x8xf32> to vector<8x8x1xf32>
    %c4_70 = arith.constant 4 : index
    %220 = arith.index_cast %199 : i32 to index
    %c0_71 = arith.constant 0 : index
    %221 = vector.load %arg4[%c4_70, %220, %c0_71] : memref<5x32x8xf32, #tpu.memory_space<vmem>>, vector<1x8x8xf32>
    %222 = vector.shape_cast %221 : vector<1x8x8xf32> to vector<8x8xf32>
    %223 = vector.shape_cast %222 : vector<8x8xf32> to vector<8x8x1xf32>
    %224 = vector.shape_cast %201 : vector<8x128xf32> to vector<8x1x128xf32>
    %225 = vector.broadcast %207 : vector<8x8x1xf32> to vector<8x8x128xf32>
    %226 = vector.broadcast %224 : vector<8x1x128xf32> to vector<8x8x128xf32>
    %227 = arith.mulf %225, %226 : vector<8x8x128xf32>
    %228 = vector.shape_cast %202 : vector<8x128xf32> to vector<8x1x128xf32>
    %229 = vector.broadcast %211 : vector<8x8x1xf32> to vector<8x8x128xf32>
    %230 = vector.broadcast %228 : vector<8x1x128xf32> to vector<8x8x128xf32>
    %231 = arith.mulf %229, %230 : vector<8x8x128xf32>
    %232 = arith.addf %227, %231 : vector<8x8x128xf32>
    %233 = vector.shape_cast %203 : vector<8x128xf32> to vector<8x1x128xf32>
    %234 = vector.broadcast %215 : vector<8x8x1xf32> to vector<8x8x128xf32>
    %235 = vector.broadcast %233 : vector<8x1x128xf32> to vector<8x8x128xf32>
    %236 = arith.mulf %234, %235 : vector<8x8x128xf32>
    %237 = arith.addf %232, %236 : vector<8x8x128xf32>
    %238 = vector.broadcast %219 : vector<8x8x1xf32> to vector<8x8x128xf32>
    %239 = arith.addf %237, %238 : vector<8x8x128xf32>
    %240 = math.tanh %239 : vector<8x8x128xf32>
    %cst_72 = arith.constant 1.000000e+00 : f32
    %241 = vector.broadcast %cst_72 : f32 to vector<8x8x128xf32>
    %242 = arith.addf %240, %241 : vector<8x8x128xf32>
    %243 = arith.mulf %239, %242 : vector<8x8x128xf32>
    %244 = vector.broadcast %223 : vector<8x8x1xf32> to vector<8x8x128xf32>
    %245 = arith.mulf %244, %243 : vector<8x8x128xf32>
    %cst_73 = arith.constant dense<0.000000e+00> : vector<8x128xf32>
    %246 = vector.multi_reduction <add>, %245, %cst_73 [0] : vector<8x8x128xf32> to vector<8x128xf32>
    %247 = arith.addf %197, %246 : vector<8x128xf32>
    %c4_i32 = arith.constant 4 : i32
    %c0_74 = arith.constant 0 : index
    %c0_75 = arith.constant 0 : index
    %248 = vector.load %arg5[%c0_74, %c0_75] : memref<8x1xf32, #tpu.memory_space<vmem>>, vector<8x1xf32>
    %249 = vector.broadcast %248 : vector<8x1xf32> to vector<8x128xf32>
    %250 = arith.addf %247, %249 : vector<8x128xf32>
    %c0_76 = arith.constant 0 : index
    %c0_77 = arith.constant 0 : index
    %251 = vector.load %arg6[%c0_76, %c0_77] : memref<8x128xf32, #tpu.memory_space<vmem>>, vector<8x128xf32>
    tpu.vector_store %arg6[%c0_76, %c0_77], %250 {strides = array<i32>} : memref<8x128xf32, #tpu.memory_space<vmem>>, vector<8x128xf32>,
    return
  }
  func.func @transform_0(%arg0: i32) -> (i32, i32) {
    %c0_i32 = arith.constant 0 : i32
    %c0_i32_0 = arith.constant 0 : i32
    return %c0_i32, %arg0 : i32, i32
  }
  func.func @transform_1(%arg0: i32) -> (i32, i32, i32) {
    %c0_i32 = arith.constant 0 : i32
    %c0_i32_0 = arith.constant 0 : i32
    %c0_i32_1 = arith.constant 0 : i32
    %c0_i32_2 = arith.constant 0 : i32
    return %c0_i32, %c0_i32_0, %c0_i32_1 : i32, i32, i32
  }
  func.func @transform_2(%arg0: i32) -> (i32, i32) {
    %c0_i32 = arith.constant 0 : i32
    %c0_i32_0 = arith.constant 0 : i32
    %c0_i32_1 = arith.constant 0 : i32
    return %c0_i32, %c0_i32_0 : i32, i32
  }
  func.func @transform_3(%arg0: i32) -> (i32, i32, i32) {
    %c0_i32 = arith.constant 0 : i32
    %c0_i32_0 = arith.constant 0 : i32
    %c0_i32_1 = arith.constant 0 : i32
    %c0_i32_2 = arith.constant 0 : i32
    return %c0_i32, %c0_i32_0, %c0_i32_1 : i32, i32, i32
  }
  func.func @transform_4(%arg0: i32) -> (i32, i32) {
    %c0_i32 = arith.constant 0 : i32
    %c0_i32_0 = arith.constant 0 : i32
    %c0_i32_1 = arith.constant 0 : i32
    return %c0_i32, %c0_i32_0 : i32, i32
  }
  func.func @transform_5(%arg0: i32) -> (i32, i32) {
    %c0_i32 = arith.constant 0 : i32
    %c0_i32_0 = arith.constant 0 : i32
    return %c0_i32, %arg0 : i32, i32
  }
}

</mosaic_0001>

<bundles_post_ra>
// kernel: tpu_custom_call.1
= control target key start
LH: loop header
LB: loop body
LE: loop exit
PB: predicated region body
PF: predicated region fallthrough
CT: control target
= control target key end

     0   :  { %10 = vsyncpa [#allocation5], 0  ;;  %s7468_s0 = inlined_call_operand.vmem [shape: f32[4,256], index: 0, kind: input, shape index: {}]   ;;  %s7469_s1 = inlined_call_operand.vmem [shape: f32[5,4,32], index: 1, kind: input, shape index: {}]   ;;  %s7470_s2 = inlined_call_operand.vmem [shape: f32[32,1], index: 2, kind: input, shape index: {}]   ;;  %s7471_s3 = inlined_call_operand.vmem [shape: f32[5,32,8], index: 3, kind: input, shape index: {}]   ;;  %s7472_s4 = inlined_call_operand.vmem [shape: f32[8,1], index: 4, kind: input, shape index: {}]   ;;  %s7473_s5 = inlined_call_operand.hbm [shape: f32[8,256], index: 5, kind: output, shape index: {}]  }
   0x1   :  { %12 = vsyncpa [#allocation5 + $0x1], 0  ;;  %s5060_s18 = smov 0   ;;  %s5062_s19 = smov 0  }
   0x2   :  { %s5064_s20 = smov 0   ;;  %s5066_s21 = smov 0  }
   0x3 LB: > { %s5081_s22 = sadd.s32 4294967295, %s5019_s21   ;;  %s4699_s23 = sadd.s32 4294967294, %s5019_s21   ;;  %s5019_s21 = sphi %s5066_s21, %s7794_s21   ;;  %s5015_s20 = sphi %s5064_s20, %s7793_s20   ;;  %s5011_s19 = sphi %s5062_s19, %s7792_s19   ;;  %s5007_s18 = sphi %s5060_s18, %s7791_s18  }
   0x4   : > { %s5085_s24 = sadd.s32 1, %s5019_s21   ;;  %s135_s25 = sadd.s32 1, %s5015_s20 }
   0x5   : > { %s132_s26 = ssub.s32 %s5019_s21, %s5085_s24  ;;  %p145_p0 = scmp.ne.s32.totalorder %s5015_s20, %s5011_s19 }
   0x6   : > { %p133_p1 = scmp.eq.s32.totalorder %s132_s26, 0  ;;  %p146_p2 = scmp.eq.s32.totalorder %s5081_s22, 1 }
   0x7   : > { %p151_p3 = scmp.ne.s32.totalorder %s5011_s19, %s5007_s18  ;;  %p152_p4 = scmp.eq.s32.totalorder %s4699_s23, 1 }
   0x8   : > { %s5096_s27 = scalar_select %p133_p1, %s5015_s20, %s135_s25  }
   0x9   : > { %p5098_p5 = por %p146_p2, %p145_p0  ;;  %p5102_p6 = por %p152_p4, %p151_p3 }
   0xa   : > { %p4702_p7 = scmp.ge.s32.totalorder %s5019_s21, 1  ;;  %p189_p8 = scmp.lt.s32.totalorder %s5019_s21, 3 }
   0xc   : > { %p190_p9 = pnand %p4702_p7, %p189_p8 }
   0xe   : > { %193 = sbr.rel (%p190_p9) target bundleno = 697 (0x2b9), region = 40 }
  0x15   : > { %v429_v0 = vlaneseq  ;;  %v428_v2 = vld [vmem:[%s7469_s1] sm:$0xf]  ;;  %v4713_v11 = vld [vmem:[%s7469_s1 + $0x4] sm:$0xf]  ;;  %v5021_v13 = vmov 0   ;;  %p216_p10 = scmp.lt.s32.totalorder %s5081_s22, 1 }
  0x16   : > { %4840 = vset.pattern.permute.xlu1 %v5021_v13  ;;  %4839 = vset.pattern.permute.xlu0 %v5021_v13  ;;  %v4714_v17 = vld [vmem:[%s7469_s1 + $0x8] sm:$0xf]  ;;  %v5154_v29 = vld [vmem:[%s7469_s1 + $0xc] sm:$0xf]  ;;  %v7480_v32 = vmov 2102212464  }
  0x17   : > { %v5108_v1 = vshrl.u32 %v429_v0, 7  ;;  %s217_s9 = scalar_select %p216_p10, %s5081_s22, 1  ;;  %v7484_v34 = vmov 920167782   ;;  %v7482_v39 = vmov 1326507024  }
  0x18   : > { %v7474_v41 = vmov 683565275   ;;  %v7478_v43 = vmov 2475754826   ;;  %v7476_v46 = vmov 2131351028  }
  0x19   : > { %v5114_v3 = vsub.s32 0, %v5108_v1  ;;  %v5118_v5 = vsub.s32 1, %v5108_v1  ;;  %v5122_v7 = vsub.s32 2, %v5108_v1  ;;  %v5126_v9 = vsub.s32 3, %v5108_v1  ;;  %s4704_s10 = sshll.u32 %s217_s9, 2  ;;  %s213_s6 = sand.u32 1, %s5011_s19  }
  0x1a   : > { %s219_s15 = scalar_lea.vmem %s7468_s0, %s4704_s10  ;;  %s4703_s7 = sshll.u32 %s213_s6, 3 }
  0x1b   : > { %v432_v4 = vrot.slane %v428_v2, %v5114_v3  ;;  %v451_v6 = vrot.slane %v428_v2, %v5118_v5  ;;  %7523 = vst [vmem:[#allocation7_spill] sm:$0xff] %v5122_v7  ;;  %v470_v8 = vrot.slane %v428_v2, %v5122_v7  ;;  %v489_v10 = vrot.slane %v428_v2, %v5126_v9  ;;  %v5145_v19 = vld [vmem:[%s219_s15] sm:$0xf]  ;;  %s4769_s8 = sshll.u32 %s5081_s22, 7  ;;  %s215_s9 = scalar_lea.vmem [#allocation4], %s4703_s7 }
  0x1c   : > { %v510_v12 = vrot.slane %v4713_v11, %v5114_v3  ;;  %v529_v14 = vrot.slane %v4713_v11, %v5118_v5  ;;  %v548_v15 = vrot.slane %v4713_v11, %v5122_v7  ;;  %v567_v16 = vrot.slane %v4713_v11, %v5126_v9  ;;  %s4624_s10 = sshll.u32 %s215_s9, 4  ;;  %s7426_s13 = scalar_lea.hbm %s7473_s5, %s4769_s8  ;;  %s7428_s10 = int_to_ptr.vmem [resolvable:$true] %s4624_s10 }
  0x1d   : > { %442 = vbcast.lane.b32.xlu1 %v432_v4, 272  ;;  %434 = vbcast.lane.b32.xlu0 %v432_v4, 256  ;;  %v588_v18 = vrot.slane %v4714_v17, %v5114_v3  ;;  %v224_v20 = vand.u32 2139095040, %v5145_v19  ;;  %v607_v21 = vrot.slane %v4714_v17, %v5118_v5  ;;  %v626_v24 = vrot.slane %v4714_v17, %v5122_v7  ;;  %s4611_s14 = scalar_lea.sflag [#allocation5], %s213_s6  ;;  %s4957_s15 = scalar_lea.vmem %s7428_s10, 128 }
  0x1e   : > { %v645_v27 = vrot.slane %v4714_v17, %v5126_v9  ;;  %v666_v31 = vrot.slane %v5154_v29, %v5114_v3  ;;  %v221_v36 = vand.u32 2147483647, %v5145_v19  ;;  %v685_v53 = vrot.slane %v5154_v29, %v5118_v5  ;;  %p4958_p11 = scmp.ne.s32.totalorder %s7428_s10, %s4957_s15  ;;  %s5029_s22 = smov [#allocation4]  }
  0x1f   : > { %v225_v22 = vshrl.u32 %v224_v20, 23  ;;  %v704_v2 = vrot.slane %v5154_v29, %v5122_v7  ;;  %v723_v17 = vrot.slane %v5154_v29, %v5126_v9  ;;  %vm223_vm7 = vcmp.lt.s32.totalorder %v5145_v19, 0  ;;  %s4961_s16 = sshll.u32 %s5029_s22, 4  ;;  %s4962_s16 = int_to_ptr.vmem [resolvable:$false] %s4961_s16 }
  0x20   : > { %v228_v51 = vand.u32 8388607, %v221_v36  ;;  %vm5354_vm8 = vcmp.le.f32.partialorder %v221_v36, 0.7853982  ;;  %vm313_vm15 = vweird.f32 %v5145_v19  ;;  %p4959_p12 = pnand %p4958_p11, %p5098_p5  ;;  %s4963_s17 = scalar_lea.vmem %s4962_s16, 256 }
  0x21   : > { %446 = vbcast.lane.b32.xlu1 %v432_v4, 280  ;;  %438 = vbcast.lane.b32.xlu0 %v432_v4, 264  ;;  %v4705_v23 = vadd.s32 4294967169, %v225_v22  ;;  %p4964_p0 = scmp.lt.s32.totalorder %s7428_s10, %s4962_s16  ;;  %p4965_p1 = scmp.lt.s32.totalorder %s4963_s17, %s4957_s15 }
  0x22   : > { %v229_v58 = vor.u32 8388608, %v228_v51  ;;  %p4960_p13 = pneg %p4959_p12 }
  0x23   : > { %v231_v25 = vadd.s32 1, %v4705_v23  ;;  %p4966_p2 = por %p4965_p1, %p4964_p0 }
  0x24   : > { %v269_v0 = vshll.u32 %v229_v58, 8 }
  0x25   : > { %457 = vbcast.lane.b32.xlu1 %v451_v6, 264  ;;  %453 = vbcast.lane.b32.xlu0 %v451_v6, 256  ;;  %vm232_vm0 = vcmp.gt.s32.totalorder %v231_v25, 0  ;;  %p4967_p3 = pnand %p4966_p2, %p4960_p13 }
  0x26   : > { %v233_v26 = vsel %vm232_vm0, %v231_v25, 0  ;;  %v4716_v25 = vld [vmem:[%s7469_s1 + $0x10] sm:$0xf] }
  0x27   : > { %v235_v28 = vand.u32 31, %v233_v26  ;;  %v234_v37 = vshrl.u32 %v233_v26, 5  ;;  %v782_v51 = vrot.slane %v4716_v25, %v5122_v7  ;;  %v801_v58 = vrot.slane %v4716_v25, %v5126_v9 }
  0x29   : > { %465 = vbcast.lane.b32.xlu1 %v451_v6, 280  ;;  %461 = vbcast.lane.b32.xlu0 %v451_v6, 272  ;;  %v236_v30 = vsub.s32 32, %v235_v28  ;;  %v247_v33 = vshll.u32 %v7480_v32, %v235_v28  ;;  %v250_v38 = vshll.u32 %v7484_v34, %v235_v28  ;;  %v238_v42 = vshll.u32 %v7474_v41, %v235_v28 }
  0x2a   : > { %v241_v44 = vshll.u32 %v7478_v43, %v235_v28  ;;  %v244_v48 = vshll.u32 %v7476_v46, %v235_v28  ;;  %vm256_vm1 = vcmp.lt.s32.totalorder %v234_v37, 4  ;;  %vm253_vm2 = vcmp.lt.s32.totalorder %v234_v37, 1 }
  0x2b   : > { %v248_v35 = vshrl.u32 %v7484_v34, %v236_v30  ;;  %v251_v40 = vshrl.u32 %v7482_v39, %v236_v30  ;;  %v239_v45 = vshrl.u32 %v7478_v43, %v236_v30  ;;  %v242_v47 = vshrl.u32 %v7476_v46, %v236_v30 }
  0x2c   : > { %v245_v49 = vshrl.u32 %v7480_v32, %v236_v30  ;;  %vm255_vm3 = vcmp.lt.s32.totalorder %v234_v37, 3  ;;  %vm254_vm4 = vcmp.lt.s32.totalorder %v234_v37, 2  ;;  %v237_v11 = vshrl.u32 %v7474_v41, %v236_v30 }
  0x2d   : > { %476 = vbcast.lane.b32.xlu1 %v470_v8, 264  ;;  %472 = vbcast.lane.b32.xlu0 %v470_v8, 256  ;;  %v249_v50 = vor.u32 %v248_v35, %v247_v33  ;;  %v252_v52 = vor.u32 %v251_v40, %v250_v38  ;;  %v240_v54 = vor.u32 %v239_v45, %v238_v42 }
  0x2e   : > { %v243_v55 = vor.u32 %v242_v47, %v241_v44  ;;  %v246_v56 = vor.u32 %v245_v49, %v244_v48  ;;  %v744_v30 = vrot.slane %v4716_v25, %v5114_v3  ;;  %v763_v42 = vrot.slane %v4716_v25, %v5118_v5 }
  0x2f   : > { %v262_v57 = vsel %vm256_vm1, %v249_v50, 920167782  ;;  %v266_v59 = vsel %vm256_vm1, %v252_v52, 1326507024 }
  0x30   : > { %v261_v60 = vsel %vm253_vm2, %v240_v54, %v243_v55  ;;  %v263_v61 = vsel %vm255_vm3, %v246_v56, %v262_v57  ;;  %v265_v62 = vsel %vm253_vm2, %v243_v55, %v246_v56  ;;  %v267_v63 = vsel %vm255_vm3, %v249_v50, %v266_v59 }
  0x31   : > { %484 = vbcast.lane.b32.xlu1 %v470_v8, 280  ;;  %480 = vbcast.lane.b32.xlu0 %v470_v8, 272  ;;  %v264_v4 = vsel %vm254_vm4, %v261_v60, %v263_v61  ;;  %v268_v6 = vsel %vm254_vm4, %v265_v62, %v267_v63 }
  0x35   : > { %495 = vbcast.lane.b32.xlu1 %v489_v10, 264  ;;  %491 = vbcast.lane.b32.xlu0 %v489_v10, 256 }
  0x39   : > { %503 = vbcast.lane.b32.xlu1 %v489_v10, 280  ;;  %499 = vbcast.lane.b32.xlu0 %v489_v10, 272  ;;  %v5183_v8 = vmul.u32.u64.low %v269_v0, %v264_v4  ;;  %v5184_v10 = vmul.u32.u64.high %v269_v0, %v264_v4, %v5183_v8  ;;  %v1128_v4 = vld [vmem:[%s7470_s2] sm:$0xff] }
  0x3d   : > { %516 = vbcast.lane.b32.xlu1 %v510_v12, 264  ;;  %512 = vbcast.lane.b32.xlu0 %v510_v12, 256 }
  0x41   : > { %524 = vbcast.lane.b32.xlu1 %v510_v12, 280  ;;  %520 = vbcast.lane.b32.xlu0 %v510_v12, 272  ;;  %v5188_v12 = vmul.u32.u64.low %v269_v0, %v268_v6  ;;  %v5189_v13 = vmul.u32.u64.high %v269_v0, %v268_v6, %v5188_v12 }
  0x42   : > { %v1130_v12 = vld [vmem:[%s7470_s2 + $0x10] sm:$0xff] }
  0x43   : > { %vm278_vm5 = vc.u32 %v5189_v13, %v5183_v8 }
  0x45   : > { %535 = vbcast.lane.b32.xlu1 %v529_v14, 264  ;;  %531 = vbcast.lane.b32.xlu0 %v529_v14, 256 }
  0x49   : > { %543 = vbcast.lane.b32.xlu1 %v529_v14, 280  ;;  %539 = vbcast.lane.b32.xlu0 %v529_v14, 272  ;;  %v258_v14 = vsel %vm256_vm1, %v246_v56, 2102212464 }
  0x4a   : > { %v259_v20 = vsel %vm255_vm3, %v243_v55, %v258_v14  ;;  %v1131_v14 = vld [vmem:[%s7470_s2 + $0x18] sm:$0xff] }
  0x4d   : > { %554 = vbcast.lane.b32.xlu1 %v548_v15, 264  ;;  %550 = vbcast.lane.b32.xlu0 %v548_v15, 256 }
  0x51   : > { %562 = vbcast.lane.b32.xlu1 %v548_v15, 280  ;;  %558 = vbcast.lane.b32.xlu0 %v548_v15, 272 }
  0x55   : > { %573 = vbcast.lane.b32.xlu1 %v567_v16, 264  ;;  %569 = vbcast.lane.b32.xlu0 %v567_v16, 256 }
  0x59   : > { %581 = vbcast.lane.b32.xlu1 %v567_v16, 280  ;;  %577 = vbcast.lane.b32.xlu0 %v567_v16, 272 }
  0x5d   : > { %594 = vbcast.lane.b32.xlu1 %v588_v18, 264  ;;  %590 = vbcast.lane.b32.xlu0 %v588_v18, 256 }
  0x61   : > { %602 = vbcast.lane.b32.xlu1 %v588_v18, 280  ;;  %598 = vbcast.lane.b32.xlu0 %v588_v18, 272  ;;  %v257_v18 = vsel %vm253_vm2, %v237_v11, %v240_v54 }
  0x62   : > { %v260_v23 = vsel %vm254_vm4, %v257_v18, %v259_v20 }
  0x63   : > { %v276_v28 = vmul.u32 %v269_v0, %v260_v23 }
  0x65   : > { %613 = vbcast.lane.b32.xlu1 %v607_v21, 264  ;;  %609 = vbcast.lane.b32.xlu0 %v607_v21, 256 }
  0x69   : > { %621 = vbcast.lane.b32.xlu1 %v607_v21, 280  ;;  %617 = vbcast.lane.b32.xlu0 %v607_v21, 272 }
  0x6d   : > { %632 = vbcast.lane.b32.xlu1 %v626_v24, 264  ;;  %628 = vbcast.lane.b32.xlu0 %v626_v24, 256 }
  0x71   : > { %640 = vbcast.lane.b32.xlu1 %v626_v24, 280  ;;  %636 = vbcast.lane.b32.xlu0 %v626_v24, 272  ;;  %v279_v24 = vadd.s32 1, %v5184_v10 }
  0x73   : > { %v280_v29 = vsel %vm278_vm5, %v279_v24, %v5184_v10 }
  0x74   : > { %v281_v35 = vadd.s32 %v280_v29, %v276_v28 }
  0x75   : > { %651 = vbcast.lane.b32.xlu1 %v645_v27, 264  ;;  %647 = vbcast.lane.b32.xlu0 %v645_v27, 256 }
  0x76   : > { %v282_v40 = vadd.s32 536870912, %v281_v35 }
  0x78   : > { %v5230_v47 = vshrl.u32 %v282_v40, 30 }
  0x79   : > { %659 = vbcast.lane.b32.xlu1 %v645_v27, 280  ;;  %655 = vbcast.lane.b32.xlu0 %v645_v27, 272 }
  0x7a   : > { %v284_v50 = vshll.u32 %v5230_v47, 30  ;;  %v307_v34 = vsub.s32 4, %v5230_v47 }
  0x7c   : > { %v5242_v54 = vsub.s32 %v281_v35, %v284_v50  ;;  %v5294_v50 = vsub.s32 4, %v5108_v1 }
  0x7d   : > { %672 = vbcast.lane.b32.xlu1 %v666_v31, 264  ;;  %668 = vbcast.lane.b32.xlu0 %v666_v31, 256 }
  0x7e   : > { %v287_v56 = vsub.s32 0, %v5242_v54 }
  0x80   : > { %v4706_v59 = vmin.u32 %v287_v56, %v5242_v54 }
  0x81   : > { %680 = vbcast.lane.b32.xlu1 %v666_v31, 280  ;;  %676 = vbcast.lane.b32.xlu0 %v666_v31, 272 }
  0x82   : > { %v289_v62 = vclz %v4706_v59 }
  0x84   : > { %v4707_v6 = vadd.s32 4294967294, %v289_v62  ;;  %v5304_v62 = vsub.s32 7, %v5108_v1 }
  0x85   : > { %691 = vbcast.lane.b32.xlu1 %v685_v53, 264  ;;  %687 = vbcast.lane.b32.xlu0 %v685_v53, 256 }
  0x86   : > { %vm4708_vm6 = vcmp.lt.s32.totalorder %v4707_v6, 0  ;;  %7538 = vst [vmem:[#allocation22_spill] sm:$0xff] %v5304_v62 }
  0x87   : > { %v292_v25 = vsel %vm4708_vm6, 0, %v4707_v6 }
  0x88   : > { %v297_v35 = vsub.s32 4294967266, %v292_v25 }
  0x89   : > { %699 = vbcast.lane.b32.xlu1 %v685_v53, 280  ;;  %695 = vbcast.lane.b32.xlu0 %v685_v53, 272 }
  0x8d   : > { %710 = vbcast.lane.b32.xlu1 %v704_v2, 264  ;;  %706 = vbcast.lane.b32.xlu0 %v704_v2, 256 }
  0x8f   : > { %v5192_v15 = vpop.permute.xlu1 %442  ;;  %v5194_v16 = vpop.permute.xlu0 %434 }
  0x90   : > { %7524 = vst [vmem:[#allocation8_spill] sm:$0xff] %v5192_v15 }
  0x91   : > { %718 = vbcast.lane.b32.xlu1 %v704_v2, 280  ;;  %714 = vbcast.lane.b32.xlu0 %v704_v2, 272  ;;  %v1129_v2 = vld [vmem:[%s7470_s2 + $0x8] sm:$0xff] }
  0x93   : > { %v5200_v21 = vpop.permute.xlu1 %446  ;;  %v5202_v22 = vpop.permute.xlu0 %438 }
  0x94   : > { %7525 = vst [vmem:[#allocation9_spill] sm:$0xff] %v5200_v21  ;;  %v5028_v21 = vmov 1966171168  }
  0x95   : > { %729 = vbcast.lane.b32.xlu1 %v723_v17, 264  ;;  %725 = vbcast.lane.b32.xlu0 %v723_v17, 256 }
  0x97   : > { %v5211_v26 = vpop.permute.xlu1 %457  ;;  %v5213_v27 = vpop.permute.xlu0 %453 }
  0x99   : > { %737 = vbcast.lane.b32.xlu1 %v723_v17, 280  ;;  %733 = vbcast.lane.b32.xlu0 %v723_v17, 272  ;;  %v1368_v17 = vld [vmem:[%s7471_s3] sm:$0xff] }
  0x9a   : > { %v1379_v23 = vrot.slane %v1368_v17, %v5118_v5  ;;  %v1372_v24 = vrot.slane %v1368_v17, %v5114_v3  ;;  %v1393_v40 = vrot.slane %v1368_v17, %v5126_v9  ;;  %v1400_v6 = vrot.slane %v1368_v17, %v5294_v50 }
  0x9b   : > { %v5217_v31 = vpop.permute.xlu1 %465  ;;  %v5219_v33 = vpop.permute.xlu0 %461 }
  0x9c   : > { %7526 = vst [vmem:[#allocation10_spill] sm:$0xff] %v5217_v31  ;;  %7527 = vst [vmem:[#allocation11_spill] sm:$0xff] %v5219_v33 }
  0x9d   : > { %750 = vbcast.lane.b32.xlu1 %v744_v30, 264  ;;  %746 = vbcast.lane.b32.xlu0 %v744_v30, 256 }
  0x9f   : > { %v5221_v37 = vpop.permute.xlu1 %476  ;;  %v5223_v38 = vpop.permute.xlu0 %472 }
  0xa1   : > { %758 = vbcast.lane.b32.xlu1 %v744_v30, 280  ;;  %754 = vbcast.lane.b32.xlu0 %v744_v30, 272  ;;  %v5289_v30 = vsub.s32 5, %v5108_v1 }
  0xa3   : > { %v5226_v44 = vpop.permute.xlu1 %484  ;;  %v5228_v45 = vpop.permute.xlu0 %480  ;;  %7537 = vst [vmem:[#allocation21_spill] sm:$0xff] %v5289_v30  ;;  %v1407_v59 = vrot.slane %v1368_v17, %v5289_v30 }
  0xa4   : > { %7528 = vst [vmem:[#allocation12_spill] sm:$0xff] %v5226_v44  ;;  %7529 = vst [vmem:[#allocation13_spill] sm:$0xff] %v5228_v45 }
  0xa5   : > { %769 = vbcast.lane.b32.xlu1 %v763_v42, 264  ;;  %765 = vbcast.lane.b32.xlu0 %v763_v42, 256 }
  0xa7   : > { %v5232_v48 = vpop.permute.xlu1 %495  ;;  %v5234_v49 = vpop.permute.xlu0 %491 }
  0xa9   : > { %777 = vbcast.lane.b32.xlu1 %v763_v42, 280  ;;  %773 = vbcast.lane.b32.xlu0 %v763_v42, 272  ;;  %v1386_v42 = vrot.slane %v1368_v17, %v5122_v7 }
  0xab   : > { %v5238_v52 = vpop.permute.xlu1 %503  ;;  %v5240_v53 = vpop.permute.xlu0 %499 }
  0xac   : > { %7530 = vst [vmem:[#allocation14_spill] sm:$0xff] %v5238_v52  ;;  %7531 = vst [vmem:[#allocation15_spill] sm:$0xff] %v5240_v53 }
  0xad   : > { %788 = vbcast.lane.b32.xlu1 %v782_v51, 264  ;;  %784 = vbcast.lane.b32.xlu0 %v782_v51, 256 }
  0xaf   : > { %v5244_v55 = vpop.permute.xlu1 %516  ;;  %v5247_v57 = vpop.permute.xlu0 %512 }
  0xb1   : > { %796 = vbcast.lane.b32.xlu1 %v782_v51, 280  ;;  %792 = vbcast.lane.b32.xlu0 %v782_v51, 272 }
  0xb3   : > { %v5251_v60 = vpop.permute.xlu1 %524  ;;  %v5253_v61 = vpop.permute.xlu0 %520 }
  0xb4   : > { %7532 = vst [vmem:[#allocation16_spill] sm:$0xff] %v5251_v60  ;;  %7533 = vst [vmem:[#allocation17_spill] sm:$0xff] %v5253_v61 }
  0xb5   : > { %807 = vbcast.lane.b32.xlu1 %v801_v58, 264  ;;  %803 = vbcast.lane.b32.xlu0 %v801_v58, 256 }
  0xb7   : > { %v5255_v63 = vpop.permute.xlu1 %535  ;;  %v5257_v0 = vpop.permute.xlu0 %531 }
  0xb9   : > { %815 = vbcast.lane.b32.xlu1 %v801_v58, 280  ;;  %811 = vbcast.lane.b32.xlu0 %v801_v58, 272  ;;  %v277_v58 = vadd.s32 %v5183_v8, %v5189_v13  ;;  %v1421_v8 = vrot.slane %v1368_v17, %v5304_v62  ;;  %v294_v13 = vshll.u32 %v5242_v54, %v292_v25 }
  0xbb   : > { %v5265_v10 = vpop.permute.xlu1 %543  ;;  %v5267_v11 = vpop.permute.xlu0 %539 }
  0xbc   : > { %7534 = vst [vmem:[#allocation18_spill] sm:$0xff] %v5265_v10  ;;  %v819_v10 = vunpack.c.l.s4 %v5028_v21 }
  0xbd   : > { %1139 = vperm.xlu1 %4840, %v1129_v2   ;;  %1134 = vperm.xlu0 %4839, %v1128_v4   ;;  %v293_v2 = vsub.s32 32, %v292_v25  ;;  %v298_v4 = vadd.s32 127, %v297_v35 }
  0xbf   : > { %v5278_v18 = vpop.permute.xlu1 %554  ;;  %v5280_v20 = vpop.permute.xlu0 %550  ;;  %v299_v41 = vshll.u32 %v298_v4, 23 }
  0xc1   : > { %1144 = vperm.xlu1 %4840, %v1130_v12   ;;  %1149 = vperm.xlu0 %4839, %v1131_v14   ;;  %v5308_v12 = vsub.s32 6, %v5108_v1  ;;  %v300_v32 = vor.u32 4788187, %v299_v41 }
  0xc3   : > { %v5284_v28 = vpop.permute.xlu1 %562  ;;  %v5286_v29 = vpop.permute.xlu0 %558  ;;  %v1414_v35 = vrot.slane %v1368_v17, %v5308_v12  ;;  %v301_v17 = vand.u32 2147483647, %v300_v32 }
  0xc4   : > { %7535 = vst [vmem:[#allocation19_spill] sm:$0xff] %v5284_v28  ;;  %7536 = vst [vmem:[#allocation20_spill] sm:$0xff] %v5286_v29 }
  0xc5   : > { %1381 = vbcast.lane.b32.xlu0 %v1379_v23, 256  ;;  %1374 = vbcast.lane.b32.xlu1 %v1372_v24, 256  ;;  %v295_v24 = vshrl.u32 %v277_v58, %v293_v2 }
  0xc7   : > { %v5296_v51 = vpop.permute.xlu1 %573  ;;  %v5298_v56 = vpop.permute.xlu0 %569  ;;  %v296_v43 = vor.u32 %v295_v24, %v294_v13 }
  0xc9   : > { %1395 = vbcast.lane.b32.xlu0 %v1393_v40, 256  ;;  %1388 = vbcast.lane.b32.xlu1 %v1386_v42, 256  ;;  %v4725_v40 = vld [vmem:[%s7471_s3 + $0x20] sm:$0xff] }
  0xca   : > { %v1438_v39 = vrot.slane %v4725_v40, %v5118_v5  ;;  %v1431_v54 = vrot.slane %v4725_v40, %v5114_v3  ;;  %v1452_v2 = vrot.slane %v4725_v40, %v5126_v9  ;;  %v1445_v4 = vrot.slane %v4725_v40, %v5122_v7 }
  0xcb   : > { %v5310_v14 = vpop.permute.xlu1 %581  ;;  %v5312_v23 = vpop.permute.xlu0 %577  ;;  %v1466_v13 = vrot.slane %v4725_v40, %v5289_v30  ;;  %v1459_v24 = vrot.slane %v4725_v40, %v5294_v50 }
  0xcc   : > { %7539 = vst [vmem:[#allocation23_spill] sm:$0xff] %v5310_v14  ;;  %7540 = vst [vmem:[#allocation24_spill] sm:$0xff] %v5312_v23 }
  0xcd   : > { %1409 = vbcast.lane.b32.xlu0 %v1407_v59, 256  ;;  %1402 = vbcast.lane.b32.xlu1 %v1400_v6, 256  ;;  %v303_v59 = vcvt.s32.f32 %v296_v43  ;;  %v1480_v43 = vrot.slane %v4725_v40, %v5304_v62 }
  0xcf   : > { %v5320_v42 = vpop.permute.xlu1 %594  ;;  %v5322_v46 = vpop.permute.xlu0 %590 }
  0xd1   : > { %1423 = vbcast.lane.b32.xlu0 %v1421_v8, 256  ;;  %1416 = vbcast.lane.b32.xlu1 %v1414_v35, 256  ;;  %v304_v8 = vmul.f32 %v303_v59, %v301_v17  ;;  %v4726_v17 = vld [vmem:[%s7471_s3 + $0x40] sm:$0xff] }
  0xd2   : > { %v1511_v44 = vrot.slane %v4726_v17, %v5126_v9 }
  0xd3   : > { %v5326_v25 = vpop.permute.xlu1 %602  ;;  %v5328_v58 = vpop.permute.xlu0 %598 }
  0xd4   : > { %7541 = vst [vmem:[#allocation25_spill] sm:$0xff] %v5326_v25  ;;  %7542 = vst [vmem:[#allocation26_spill] sm:$0xff] %v5328_v58 }
  0xd5   : > { %1440 = vbcast.lane.b32.xlu0 %v1438_v39, 256  ;;  %1433 = vbcast.lane.b32.xlu1 %v1431_v54, 256  ;;  %v305_v39 = vxor.u32 2147483648, %v304_v8  ;;  %v1473_v54 = vrot.slane %v4725_v40, %v5308_v12  ;;  %v1497_v40 = vrot.slane %v4726_v17, %v5118_v5 }
  0xd7   : > { %v5332_v6 = vpop.permute.xlu1 %613  ;;  %v5334_v41 = vpop.permute.xlu0 %609 }
  0xd9   : > { %1454 = vbcast.lane.b32.xlu0 %v1452_v2, 256  ;;  %1447 = vbcast.lane.b32.xlu1 %v1445_v4, 256 }
  0xdb   : > { %v5338_v35 = vpop.permute.xlu1 %621  ;;  %v5340_v32 = vpop.permute.xlu0 %617 }
  0xdc   : > { %7543 = vst [vmem:[#allocation27_spill] sm:$0xff] %v5338_v35  ;;  %7544 = vst [vmem:[#allocation28_spill] sm:$0xff] %v5340_v32 }
  0xdd   : > { %1468 = vbcast.lane.b32.xlu0 %v1466_v13, 256  ;;  %1461 = vbcast.lane.b32.xlu1 %v1459_v24, 256  ;;  %v306_v13 = vsel %vm223_vm7, %v305_v39, %v304_v8  ;;  %v1490_v24 = vrot.slane %v4726_v17, %v5114_v3  ;;  %v1504_v8 = vrot.slane %v4726_v17, %v5122_v7 }
  0xde   : > { %v309_v36 = vsel %vm5354_vm8, %v5145_v19, %v306_v13  ;;  %v308_v39 = vsel %vm223_vm7, %v307_v34, %v5230_v47  ;;  %v1518_v13 = vrot.slane %v4726_v17, %v5294_v50  ;;  %v1539_v47 = vrot.slane %v4726_v17, %v5304_v62 }
  0xdf   : > { %v5348_v59 = vpop.permute.xlu1 %632  ;;  %v5350_v2 = vpop.permute.xlu0 %628  ;;  %4841 = vcosq.f32 %v309_v36 }
  0xe0   : > { %4843 = vsinq.f32 %v309_v36  ;;  %v1532_v36 = vrot.slane %v4726_v17, %v5308_v12 }
  0xe1   : > { %1482 = vbcast.lane.b32.xlu0 %v1480_v43, 256  ;;  %1475 = vbcast.lane.b32.xlu1 %v1473_v54, 256 }
  0xe3   : > { %v5363_v52 = vpop.permute.xlu1 %640  ;;  %v5365_v14 = vpop.permute.xlu0 %636 }
  0xe4   : > { %7547 = vst [vmem:[#allocation29_spill] sm:$0xff] %v5363_v52  ;;  %7548 = vst [vmem:[#allocation30_spill] sm:$0xff] %v5365_v14  ;;  %v1525_v52 = vrot.slane %v4726_v17, %v5289_v30 }
  0xe5   : > { %1499 = vbcast.lane.b32.xlu0 %v1497_v40, 256  ;;  %1492 = vbcast.lane.b32.xlu1 %v1490_v24, 256  ;;  %v310_v40 = vsel %vm5354_vm8, 0, %v308_v39 }
  0xe6   : > { %v314_v34 = vadd.s32 3, %v310_v40 }
  0xe7   : > { %v5375_v43 = vpop.permute.xlu1 %651  ;;  %v5377_v54 = vpop.permute.xlu0 %647 }
  0xe8   : > { %v315_v39 = vand.u32 3, %v314_v34 }
  0xe9   : > { %1513 = vbcast.lane.b32.xlu0 %v1511_v44, 256  ;;  %1506 = vbcast.lane.b32.xlu1 %v1504_v8, 256  ;;  %v4727_v44 = vld [vmem:[%s7471_s3 + $0x60] sm:$0xff]  ;;  %v4842_v4 = vpop.eup %4841 }
  0xea   : > { %v4844_v28 = vpop.eup %4843  ;;  %v321_v60 = vxor.u32 2147483648, %v4842_v4  ;;  %vm320_vm9 = vcmp.eq.s32.totalorder %v315_v39, 2  ;;  %v1570_v34 = vrot.slane %v4727_v44, %v5126_v9  ;;  %vm317_vm10 = vcmp.eq.s32.totalorder %v315_v39, 0 }
  0xeb   : > { %v5383_v24 = vpop.permute.xlu1 %659  ;;  %v5385_v35 = vpop.permute.xlu0 %655  ;;  %vm316_vm13 = vcmp.lt.s32.totalorder %v315_v39, 2  ;;  %v1584_v53 = vrot.slane %v4727_v44, %v5289_v30 }
  0xec   : > { %7549 = vst [vmem:[#allocation31_spill] sm:$0xff] %v5383_v24  ;;  %7550 = vst [vmem:[#allocation32_spill] sm:$0xff] %v5385_v35  ;;  %v1556_v24 = vrot.slane %v4727_v44, %v5118_v5  ;;  %v318_v35 = vxor.u32 2147483648, %v4844_v28 }
  0xed   : > { %1527 = vbcast.lane.b32.xlu0 %v1525_v52, 256  ;;  %1520 = vbcast.lane.b32.xlu1 %v1518_v13, 256  ;;  %v1549_v52 = vrot.slane %v4727_v44, %v5114_v3  ;;  %v418_v13 = vand.u32 3, %v310_v40 }
  0xee   : > { %v319_v21 = vsel %vm317_vm10, %v4842_v4, %v318_v35 }
  0xef   : > { %v5392_v8 = vpop.permute.xlu1 %672  ;;  %v5394_v25 = vpop.permute.xlu0 %668  ;;  %vm420_vm11 = vcmp.eq.s32.totalorder %v418_v13, 0  ;;  %vm423_vm12 = vcmp.eq.s32.totalorder %v418_v13, 2  ;;  %vm419_vm14 = vcmp.lt.s32.totalorder %v418_v13, 2 }
  0xf0   : > { %v425_v14 = vsel %vm423_vm12, %v321_v60, %v4844_v28 }
  0xf1   : > { %1541 = vbcast.lane.b32.xlu0 %v1539_v47, 256  ;;  %1534 = vbcast.lane.b32.xlu1 %v1532_v36, 256  ;;  %v1563_v47 = vrot.slane %v4727_v44, %v5122_v7 }
  0xf3   : > { %v5398_v31 = vpop.permute.xlu1 %680  ;;  %v5400_v17 = vpop.permute.xlu0 %676 }
  0xf4   : > { %7551 = vst [vmem:[#allocation33_spill] sm:$0xff] %v5398_v31  ;;  %7552 = vst [vmem:[#allocation34_spill] sm:$0xff] %v5400_v17  ;;  %v820_v31 = vunpack.c.0.s8 %v819_v10  ;;  %v322_v17 = vsel %vm320_vm9, %v321_v60, %v4844_v28  ;;  %v5423_v60 = vld [vmem:[%s7471_s3 + $0x80] sm:$0xff] }
  0xf5   : > { %1558 = vbcast.lane.b32.xlu0 %v1556_v24, 256  ;;  %1551 = vbcast.lane.b32.xlu1 %v1549_v52, 256  ;;  %v1577_v24 = vrot.slane %v4727_v44, %v5294_v50  ;;  %v422_v52 = vsel %vm420_vm11, %v4842_v4, %v318_v35  ;;  %v323_v10 = vsel %vm316_vm13, %v319_v21, %v322_v17 }
  0xf6   : > { %v5415_v58 = vsub.s32 %v820_v31, %v5108_v1  ;;  %v426_v39 = vsel %vm419_vm14, %v422_v52, %v425_v14  ;;  %v324_v28 = vsel %vm313_vm15, nan, %v323_v10 }
  0xf7   : > { %v5404_v36 = vpop.permute.xlu1 %691  ;;  %v5406_v40 = vpop.permute.xlu0 %687  ;;  %v427_v14 = vsel %vm313_vm15, nan, %v426_v39  ;;  %v1629_v39 = vrot.slane %v5423_v60, %v5126_v9 }
  0xf8   : > { %7555 = vst [vmem:[#allocation37_spill] sm:$0xff] %v5415_v58  ;;  %v824_v31 = vrot.slane %v5145_v19, %v5415_v58  ;;  %v885_v13 = vrot.slane %v324_v28, %v5415_v58  ;;  %v962_v17 = vrot.slane %v427_v14, %v5415_v58 }
  0xf9   : > { %1572 = vbcast.lane.b32.xlu0 %v1570_v34, 256  ;;  %1565 = vbcast.lane.b32.xlu1 %v1563_v47, 256  ;;  %v1598_v34 = vrot.slane %v4727_v44, %v5304_v62  ;;  %v1591_v47 = vrot.slane %v4727_v44, %v5308_v12  ;;  %v1608_v44 = vrot.slane %v5423_v60, %v5114_v3 }
  0xfa   : > { %v825_v4 = vcombine.high %v824_v31, %v824_v31  ;;  %v832_v19 = vrot.slane %v824_v31, %v5415_v58  ;;  %v886_v52 = vcombine.high %v885_v13, %v885_v13  ;;  %v963_v10 = vcombine.high %v962_v17, %v962_v17 }
  0xfb   : > { %v5410_v23 = vpop.permute.xlu1 %699  ;;  %v5412_v45 = vpop.permute.xlu0 %695  ;;  %v893_v31 = vrot.slane %v885_v13, %v5415_v58 }
  0xfc   : > { %7553 = vst [vmem:[#allocation35_spill] sm:$0xff] %v5410_v23  ;;  %7554 = vst [vmem:[#allocation36_spill] sm:$0xff] %v5412_v45  ;;  %v840_v28 = vcombine.high %v832_v19, %v832_v19  ;;  %v977_v45 = vrot.slane %v963_v10, %v5415_v58 }
  0xfd   : > { %1586 = vbcast.lane.b32.xlu0 %v1584_v53, 256  ;;  %1579 = vbcast.lane.b32.xlu1 %v1577_v24, 256  ;;  %v1615_v53 = vrot.slane %v5423_v60, %v5118_v5  ;;  %v901_v32 = vcombine.high %v893_v31, %v893_v31 }
  0xfe   : > { %v979_v61 = vcombine.high %v977_v45, %v977_v45  ;;  %v5470_v10 = vrot.slane %v840_v28, %v5114_v3 }
  0xff   : > { %v5425_v35 = vpop.permute.xlu1 %710  ;;  %v5427_v1 = vpop.permute.xlu0 %706 }
 0x100   : > { %7560 = vst [vmem:[#allocation42_spill] sm:$0xff] %v5470_v10 }
 0x101   : > { %1600 = vbcast.lane.b32.xlu0 %v1598_v34, 256  ;;  %1593 = vbcast.lane.b32.xlu1 %v1591_v47, 256  ;;  %v1622_v34 = vrot.slane %v5423_v60, %v5122_v7  ;;  %v839_v47 = vrot.slane %v825_v4, %v5415_v58  ;;  %v1636_v4 = vrot.slane %v5423_v60, %v5294_v50 }
 0x103   : > { %v5437_v21 = vpop.permute.xlu1 %718  ;;  %v5439_v24 = vpop.permute.xlu0 %714  ;;  %v841_v23 = vcombine.high %v839_v47, %v839_v47 }
 0x104   : > { %7556 = vst [vmem:[#allocation38_spill] sm:$0xff] %v5437_v21  ;;  %7557 = vst [vmem:[#allocation39_spill] sm:$0xff] %v5439_v24  ;;  %v900_v24 = vrot.slane %v886_v52, %v5415_v58  ;;  %v5467_v52 = vrot.slane %v839_v47, %v5114_v3  ;;  %v1650_v47 = vrot.slane %v5423_v60, %v5308_v12 }
 0x105   : > { %1617 = vbcast.lane.b32.xlu0 %v1615_v53, 256  ;;  %1610 = vbcast.lane.b32.xlu1 %v1608_v44, 256  ;;  %v970_v53 = vrot.slane %v962_v17, %v5415_v58  ;;  %v1643_v44 = vrot.slane %v5423_v60, %v5289_v30  ;;  %v5464_v17 = vrot.slane %v832_v19, %v5114_v3  ;;  %v5483_v19 = vld [vmem:[%s7471_s3 + $0x8] sm:$0xff] }
 0x106   : > { %v902_v29 = vcombine.high %v900_v24, %v900_v24  ;;  %v1657_v58 = vrot.slane %v5423_v60, %v5304_v62  ;;  %v5488_v28 = vrot.slane %v900_v24, %v5114_v3  ;;  %v5508_v24 = vrot.slane %v979_v61, %v5114_v3 }
 0x107   : > { %v5447_v14 = vpop.permute.xlu1 %729  ;;  %v5449_v21 = vpop.permute.xlu0 %725  ;;  %v978_v33 = vcombine.high %v970_v53, %v970_v53 }
 0x109   : > { %1631 = vbcast.lane.b32.xlu0 %v1629_v39, 256  ;;  %1624 = vbcast.lane.b32.xlu1 %v1622_v34, 256  ;;  %v5473_v39 = vrot.slane %v841_v23, %v5114_v3  ;;  %v5476_v34 = vrot.slane %v893_v31, %v5114_v3  ;;  %v5491_v23 = vrot.slane %v901_v32, %v5114_v3 }
 0x10a   : > { %v5494_v31 = vrot.slane %v970_v53, %v5114_v3  ;;  %v5505_v60 = vrot.slane %v978_v33, %v5114_v3  ;;  %v867_v53 = vmul.f32 %v5467_v52, %v5211_v26  ;;  %v2240_v33 = vrot.slane %v5483_v19, %v5118_v5 }
 0x10b   : > { %v5459_v15 = vpop.permute.xlu1 %737  ;;  %v5461_v13 = vpop.permute.xlu0 %733  ;;  %7561 = vst [vmem:[#allocation43_spill] sm:$0xff] %v5473_v39  ;;  %v924_v61 = vmul.f32 %v5476_v34, %v5244_v55  ;;  %v871_v26 = vmul.f32 %v5470_v10, %v5221_v37  ;;  %v2268_v55 = vrot.slane %v5483_v19, %v5289_v30  ;;  %v2247_v37 = vrot.slane %v5483_v19, %v5122_v7 }
 0x10c   : > { %7558 = vst [vmem:[#allocation40_spill] sm:$0xff] %v5459_v15  ;;  %7559 = vst [vmem:[#allocation41_spill] sm:$0xff] %v5461_v13  ;;  %v862_v15 = vmul.f32 %v5464_v17, %v5194_v16  ;;  %v866_v16 = vmul.f32 %v5467_v52, %v5213_v27  ;;  %v923_v27 = vmul.f32 %v5476_v34, %v5247_v57 }
 0x10d   : > { %1645 = vbcast.lane.b32.xlu0 %v1643_v44, 256  ;;  %1638 = vbcast.lane.b32.xlu1 %v1636_v4, 256  ;;  %v5497_v44 = vrot.slane %v977_v45, %v5114_v3  ;;  %v5502_v4 = vrot.slane %v902_v29, %v5114_v3  ;;  %v863_v45 = vmul.f32 %v5464_v17, %v5202_v22 }
 0x10e   : > { %v2254_v29 = vrot.slane %v5483_v19, %v5126_v9  ;;  %v2233_v22 = vrot.slane %v5483_v19, %v5114_v3  ;;  %v875_v57 = vmul.f32 %v5473_v39, %v5232_v48  ;;  %v932_v30 = vmul.f32 %v5491_v23, %v5278_v18 }
 0x10f   : > { %v5510_v32 = vpop.permute.xlu1 %750  ;;  %v5512_v13 = vpop.permute.xlu0 %746  ;;  %v1005_v7 = vmul.f32 %v5497_v44, %v5332_v6  ;;  %v2261_v48 = vrot.slane %v5483_v19, %v5294_v50  ;;  %v931_v18 = vmul.f32 %v5491_v23, %v5280_v20  ;;  %v1009_v6 = vmul.f32 %v5505_v60, %v5348_v59 }
 0x110   : > { %7562 = vst [vmem:[#allocation44_spill] sm:$0xff] %v5510_v32  ;;  %7563 = vst [vmem:[#allocation45_spill] sm:$0xff] %v5512_v13  ;;  %v928_v13 = vmul.f32 %v5488_v28, %v5255_v63  ;;  %v1001_v32 = vmul.f32 %v5494_v31, %v5320_v42  ;;  %v874_v63 = vmul.f32 %v5473_v39, %v5234_v49 }
 0x111   : > { %1659 = vbcast.lane.b32.xlu0 %v1657_v58, 256  ;;  %1652 = vbcast.lane.b32.xlu1 %v1650_v47, 256  ;;  %v870_v58 = vmul.f32 %v5470_v10, %v5223_v38  ;;  %v927_v47 = vmul.f32 %v5488_v28, %v5257_v0  ;;  %v1000_v38 = vmul.f32 %v5494_v31, %v5322_v46 }
 0x112   : > { %v940_v42 = vadd.f32 %v924_v61, %v863_v45  ;;  %v939_v49 = vadd.f32 %v923_v27, %v862_v15  ;;  %v944_v39 = vadd.f32 %v928_v13, %v867_v53  ;;  %v1004_v46 = vmul.f32 %v5497_v44, %v5334_v41  ;;  %v5607_v27 = vld [vmem:[%s7471_s3 + $0x28] sm:$0xff] }
 0x113   : > { %v5552_v10 = vpop.permute.xlu1 %758  ;;  %v5554_v0 = vpop.permute.xlu0 %754  ;;  %v936_v45 = vmul.f32 %v5502_v4, %v5296_v51  ;;  %v948_v61 = vadd.f32 %v932_v30, %v871_v26  ;;  %v1008_v15 = vmul.f32 %v5505_v60, %v5350_v2  ;;  %v1013_v20 = vmul.f32 %v5508_v24, %v5375_v43 }
 0x114   : > { %7564 = vst [vmem:[#allocation46_spill] sm:$0xff] %v5552_v10  ;;  %v943_v10 = vadd.f32 %v927_v47, %v866_v16  ;;  %v1016_v13 = vadd.f32 %v1000_v38, %v939_v49  ;;  %v1021_v53 = vadd.f32 %v1005_v7, %v944_v39  ;;  %v947_v51 = vadd.f32 %v931_v18, %v870_v58  ;;  %v7567_v38 = vld [vmem:[#allocation11_spill] sm:$0xff]  ;;  %v7569_v18 = vld [vmem:[#allocation28_spill] sm:$0xff] }
 0x115   : > { %2242 = vbcast.lane.b32.xlu0 %v2240_v33, 256  ;;  %2235 = vbcast.lane.b32.xlu1 %v2233_v22, 256  ;;  %v1017_v33 = vadd.f32 %v1001_v32, %v940_v42  ;;  %v935_v22 = vmul.f32 %v5502_v4, %v5298_v56  ;;  %v1012_v30 = vmul.f32 %v5508_v24, %v5377_v54 }
 0x116   : > { %v5580_v59 = vadd.f32 %v1016_v13, %v5394_v25  ;;  %v1020_v56 = vadd.f32 %v1004_v46, %v943_v10  ;;  %v952_v16 = vadd.f32 %v936_v45, %v875_v57  ;;  %v5587_v43 = vadd.f32 %v1021_v53, %v5404_v36  ;;  %v7566_v57 = vld [vmem:[#allocation17_spill] sm:$0xff]  ;;  %v7574_v53 = vld [vmem:[#allocation24_spill] sm:$0xff] }
 0x117   : > { %v5575_v41 = vadd.f32 %v1017_v33, %v5392_v8  ;;  %v5582_v32 = vpop.permute.xlu1 %769  ;;  %v5584_v2 = vpop.permute.xlu0 %765  ;;  %v1025_v8 = vadd.f32 %v1009_v6, %v948_v61  ;;  %v951_v7 = vadd.f32 %v935_v22, %v874_v63  ;;  %v2282_v54 = vrot.slane %v5483_v19, %v5304_v62  ;;  %v7571_v33 = vld [vmem:[#allocation7_spill] sm:$0xff]  ;;  %v7572_v22 = vld [vmem:[#allocation13_spill] sm:$0xff] }
 0x118   : > { %v5590_v39 = vadd.f32 %v1020_v56, %v5406_v40  ;;  %v1029_v10 = vadd.f32 %v1013_v20, %v952_v16  ;;  %v2275_v36 = vrot.slane %v5483_v19, %v5308_v12  ;;  %v2299_v58 = vrot.slane %v5607_v27, %v5118_v5 }
 0x119   : > { %2256 = vbcast.lane.b32.xlu0 %v2254_v29, 256  ;;  %2249 = vbcast.lane.b32.xlu1 %v2247_v37, 256  ;;  %v1024_v29 = vadd.f32 %v1008_v15, %v947_v51  ;;  %4845 = vtanh.f32 %v5575_v41  ;;  %v5596_v25 = vadd.f32 %v1025_v8, %v5425_v35  ;;  %v1028_v26 = vadd.f32 %v1012_v30, %v951_v7  ;;  %v7573_v15 = vld [vmem:[#allocation42_spill] sm:$0xff] }
 0x11a   : > { %4847 = vtanh.f32 %v5580_v59  ;;  %v5611_v35 = vadd.f32 %v1029_v10, %v5447_v14  ;;  %v2292_v14 = vrot.slane %v5607_v27, %v5114_v3  ;;  %v929_v47 = vmul.f32 %v5488_v28, %v5267_v11  ;;  %v7570_v11 = vld [vmem:[#allocation26_spill] sm:$0xff]  ;;  %v7576_v10 = vld [vmem:[#allocation15_spill] sm:$0xff] }
 0x11b   : > { %v5602_v40 = vadd.f32 %v1024_v29, %v5427_v1  ;;  %4849 = vtanh.f32 %v5587_v43  ;;  %v5615_v19 = vadd.f32 %v1028_v26, %v5449_v21  ;;  %v5619_v1 = vpop.permute.xlu0 %773  ;;  %v7565_v21 = vld [vmem:[#allocation8_spill] sm:$0xff]  ;;  %v925_v63 = vmul.f32 %v5476_v34, %v7566_v57  ;;  %v7575_v30 = vld [vmem:[#allocation30_spill] sm:$0xff] }
 0x11c   : > { %4851 = vtanh.f32 %v5590_v39  ;;  %v864_v37 = vmul.f32 %v5464_v17, %v7565_v21  ;;  %v868_v42 = vmul.f32 %v5467_v52, %v7567_v38  ;;  %v1006_v46 = vmul.f32 %v5497_v44, %v7569_v18 }
 0x11d   : > { %2270 = vbcast.lane.b32.xlu0 %v2268_v55, 256  ;;  %2263 = vbcast.lane.b32.xlu1 %v2261_v48, 256  ;;  %v5617_v55 = vpop.permute.xlu1 %777  ;;  %4853 = vtanh.f32 %v5596_v25  ;;  %v7568_v48 = vld [vmem:[#allocation20_spill] sm:$0xff]  ;;  %v1002_v45 = vmul.f32 %v5494_v31, %v7570_v11  ;;  %v2313_v6 = vrot.slane %v5607_v27, %v5126_v9  ;;  %v2306_v61 = vrot.slane %v5607_v27, %v7571_v33 }
 0x11e   : > { %4855 = vtanh.f32 %v5602_v40  ;;  %v933_v49 = vmul.f32 %v5491_v23, %v7568_v48  ;;  %v872_v13 = vmul.f32 %v7573_v15, %v7572_v22  ;;  %v945_v20 = vadd.f32 %v929_v47, %v868_v42  ;;  %v7579_v42 = vld [vmem:[#allocation21_spill] sm:$0xff]  ;;  %v7580_v11 = vld [vmem:[#allocation36_spill] sm:$0xff] }
 0x11f   : > { %4857 = vtanh.f32 %v5611_v35  ;;  %v937_v51 = vmul.f32 %v5502_v4, %v7574_v53  ;;  %v1010_v56 = vmul.f32 %v5505_v60, %v7575_v30  ;;  %v5655_v8 = vpop.permute.xlu0 %784  ;;  %v941_v29 = vadd.f32 %v925_v63, %v864_v37  ;;  %v7581_v53 = vld [vmem:[#allocation34_spill] sm:$0xff] }
 0x120   : > { %4859 = vtanh.f32 %v5615_v19  ;;  %v1022_v21 = vadd.f32 %v1006_v46, %v945_v20  ;;  %v2327_v48 = vrot.slane %v5607_v27, %v7579_v42  ;;  %v2320_v18 = vrot.slane %v5607_v27, %v5294_v50 }
 0x121   : > { %2284 = vbcast.lane.b32.xlu0 %v2282_v54, 256  ;;  %2277 = vbcast.lane.b32.xlu1 %v2275_v36, 256  ;;  %v5653_v16 = vpop.permute.xlu1 %788  ;;  %v7577_v36 = vld [vmem:[#allocation43_spill] sm:$0xff]  ;;  %v1018_v38 = vadd.f32 %v1002_v45, %v941_v29 }
 0x122   : > { %v876_v26 = vmul.f32 %v7577_v36, %v7576_v10  ;;  %v5666_v22 = vadd.f32 %v1022_v21, %v7580_v11  ;;  %v7582_v45 = vld [vmem:[#allocation39_spill] sm:$0xff]  ;;  %v7583_v21 = vld [vmem:[#allocation41_spill] sm:$0xff] }
 0x123   : > { %v4846_v7 = vpop.eup %4845  ;;  %v5669_v30 = vadd.f32 %v1018_v38, %v7581_v53 }
 0x124   : > { %v4848_v54 = vpop.eup %4847  ;;  %v953_v63 = vadd.f32 %v937_v51, %v876_v26  ;;  %v5683_v26 = vld [vmem:[%s7471_s3 + $0x48] sm:$0xff]  ;;  %4861 = vtanh.f32 %v5666_v22 }
 0x125   : > { %2301 = vbcast.lane.b32.xlu0 %v2299_v58, 256  ;;  %2294 = vbcast.lane.b32.xlu1 %v2292_v14, 256  ;;  %v949_v58 = vadd.f32 %v933_v49, %v872_v13  ;;  %v7578_v14 = vld [vmem:[#allocation32_spill] sm:$0xff]  ;;  %v4850_v57 = vpop.eup %4849  ;;  %v5674_v29 = vpop.permute.xlu1 %796  ;;  %4863 = vtanh.f32 %v5669_v30 }
 0x126   : > { %v1014_v47 = vmul.f32 %v5508_v24, %v7578_v14  ;;  %v4852_v37 = vpop.eup %4851  ;;  %v1069_v14 = vadd.f32 1.0, %v4850_v57  ;;  %v1065_v57 = vadd.f32 1.0, %v4846_v7  ;;  %v2351_v7 = vrot.slane %v5683_v26, %v5114_v3 }
 0x127   : > { %v1026_v49 = vadd.f32 %v1010_v56, %v949_v58  ;;  %v4854_v13 = vpop.eup %4853  ;;  %v1068_v51 = vadd.f32 1.0, %v4852_v37  ;;  %v2341_v56 = vrot.slane %v5607_v27, %v5304_v62  ;;  %v2334_v58 = vrot.slane %v5607_v27, %v5308_v12 }
 0x128   : > { %v4856_v46 = vpop.eup %4855  ;;  %v1030_v20 = vadd.f32 %v1014_v47, %v953_v63  ;;  %v1073_v37 = vadd.f32 1.0, %v4854_v13  ;;  %v1085_v27 = vmul.f32 %v1069_v14, %v5587_v43 }
 0x129   : > { %2315 = vbcast.lane.b32.xlu0 %v2313_v6, 256  ;;  %2308 = vbcast.lane.b32.xlu1 %v2306_v61, 256  ;;  %v5672_v6 = vadd.f32 %v1026_v49, %v7582_v45  ;;  %v5676_v61 = vpop.permute.xlu0 %792  ;;  %v4858_v10 = vpop.eup %4857  ;;  %v1072_v63 = vadd.f32 1.0, %v4856_v46  ;;  %v1084_v49 = vmul.f32 %v1068_v51, %v5590_v39  ;;  %v7584_v51 = vld [vmem:[#allocation44_spill] sm:$0xff] }
 0x12a   : > { %v4860_v47 = vpop.eup %4859  ;;  %v5689_v38 = vadd.f32 %v1030_v20, %v7583_v21  ;;  %v1077_v11 = vadd.f32 1.0, %v4858_v10  ;;  %v808_v46 = vpop.permute.xlu1 %807  ;;  %v2372_v20 = vrot.slane %v5683_v26, %v5126_v9  ;;  %v1101_v43 = vmul.f32 %v1085_v27, %v5582_v32 }
 0x12b   : > { %4865 = vtanh.f32 %v5672_v6  ;;  %v1076_v53 = vadd.f32 1.0, %v4860_v47  ;;  %v1100_v39 = vmul.f32 %v1084_v49, %v5584_v2  ;;  %v1089_v10 = vmul.f32 %v1073_v37, %v5596_v25 }
 0x12c   : > { %4867 = vtanh.f32 %v5689_v38  ;;  %v1088_v14 = vmul.f32 %v1072_v63, %v5602_v40  ;;  %v7586_v63 = vld [vmem:[#allocation16_spill] sm:$0xff] }
 0x12d   : > { %2329 = vbcast.lane.b32.xlu0 %v2327_v48, 256  ;;  %2322 = vbcast.lane.b32.xlu1 %v2320_v18, 256  ;;  %v1064_v48 = vadd.f32 1.0, %v4848_v54  ;;  %v2358_v18 = vrot.slane %v5683_v26, %v5118_v5  ;;  %v1081_v54 = vmul.f32 %v1065_v57, %v5575_v41  ;;  %v804_v45 = vpop.permute.xlu0 %803  ;;  %v1093_v41 = vmul.f32 %v1077_v11, %v5611_v35  ;;  %v7587_v35 = vld [vmem:[#allocation18_spill] sm:$0xff] }
 0x12e   : > { %v1105_v21 = vmul.f32 %v1089_v10, %v5653_v16  ;;  %v1104_v57 = vmul.f32 %v1088_v14, %v5655_v8  ;;  %v1092_v32 = vmul.f32 %v1076_v53, %v5615_v19  ;;  %v4862_v37 = vpop.eup %4861  ;;  %v926_v27 = vmul.f32 %v5476_v34, %v7586_v63  ;;  %v5720_v49 = vpop.permute.xlu1 %815  ;;  %v7588_v34 = vld [vmem:[#allocation9_spill] sm:$0xff]  ;;  %v7592_v14 = vld [vmem:[#allocation27_spill] sm:$0xff] }
 0x12f   : > { %v1080_v13 = vmul.f32 %v1064_v48, %v5580_v59  ;;  %v2365_v59 = vrot.slane %v5683_v26, %v7571_v33  ;;  %v1109_v40 = vmul.f32 %v1093_v41, %v808_v46  ;;  %v930_v11 = vmul.f32 %v5488_v28, %v7587_v35  ;;  %v4864_v8 = vpop.eup %4863  ;;  %v7589_v28 = vld [vmem:[#allocation10_spill] sm:$0xff]  ;;  %v7593_v41 = vld [vmem:[#allocation12_spill] sm:$0xff] }
 0x130   : > { %v1108_v48 = vmul.f32 %v1092_v32, %v804_v45  ;;  %v2386_v19 = vrot.slane %v5683_v26, %v7579_v42  ;;  %v869_v46 = vmul.f32 %v5467_v52, %v7589_v28  ;;  %v7590_v45 = vld [vmem:[#allocation19_spill] sm:$0xff]  ;;  %v1066_v32 = vadd.f32 1.0, %v4864_v8  ;;  %v7595_v8 = vld [vmem:[#allocation33_spill] sm:$0xff] }
 0x131   : > { %2343 = vbcast.lane.b32.xlu0 %v2341_v56, 256  ;;  %2336 = vbcast.lane.b32.xlu1 %v2334_v58, 256  ;;  %v1097_v56 = vmul.f32 %v1081_v54, %v7584_v51  ;;  %v7585_v58 = vld [vmem:[#allocation45_spill] sm:$0xff]  ;;  %v5722_v16 = vpop.permute.xlu0 %811  ;;  %v1070_v51 = vadd.f32 1.0, %v4862_v37 }
 0x132   : > { %v1096_v47 = vmul.f32 %v1080_v13, %v7585_v58  ;;  %v865_v13 = vmul.f32 %v5464_v17, %v7588_v34  ;;  %v1082_v34 = vmul.f32 %v1066_v32, %v5669_v30 }
 0x133   : > { %v1115_v2 = vadd.f32 %v1101_v43, %v1097_v56  ;;  %v934_v43 = vmul.f32 %v5491_v23, %v7590_v45  ;;  %v2400_v23 = vrot.slane %v5683_v26, %v5304_v62  ;;  %v1086_v63 = vmul.f32 %v1070_v51, %v5666_v22  ;;  %v7597_v45 = vld [vmem:[#allocation35_spill] sm:$0xff] }
 0x134   : > { %v1112_v25 = vadd.f32 %v1100_v39, %v1096_v47  ;;  %v7591_v39 = vld [vmem:[#allocation25_spill] sm:$0xff]  ;;  %v942_v17 = vadd.f32 %v926_v27, %v865_v13 }
 0x135   : > { %2360 = vbcast.lane.b32.xlu0 %v2358_v18, 256  ;;  %2353 = vbcast.lane.b32.xlu1 %v2351_v7, 256  ;;  %v1116_v18 = vadd.f32 %v1115_v2, %v1105_v21  ;;  %v2379_v7 = vrot.slane %v5683_v26, %v5294_v50  ;;  %v4866_v54 = vpop.eup %4865  ;;  %v1003_v10 = vmul.f32 %v5494_v31, %v7591_v39 }
 0x136   : > { %v1113_v53 = vadd.f32 %v1112_v25, %v1104_v57  ;;  %v4868_v47 = vpop.eup %4867  ;;  %v946_v21 = vadd.f32 %v930_v11, %v869_v46  ;;  %v1074_v2 = vadd.f32 1.0, %v4866_v54  ;;  %v7594_v11 = vld [vmem:[#allocation29_spill] sm:$0xff]  ;;  %v1102_v22 = vmul.f32 %v1086_v63, %v5619_v1 }
 0x137   : > { %v1117_v56 = vadd.f32 %v1116_v18, %v1109_v40  ;;  %v1019_v40 = vadd.f32 %v1003_v10, %v942_v17  ;;  %v1078_v27 = vadd.f32 1.0, %v4868_v47 }
 0x138   : > { %v1114_v58 = vadd.f32 %v1113_v53, %v1108_v48  ;;  %v2393_v48 = vrot.slane %v5683_v26, %v5308_v12  ;;  %v1090_v13 = vmul.f32 %v1074_v2, %v5672_v6 }
 0x139   : > { %2374 = vbcast.lane.b32.xlu0 %v2372_v20, 256  ;;  %2367 = vbcast.lane.b32.xlu1 %v2365_v59, 256  ;;  %v1007_v20 = vmul.f32 %v5497_v44, %v7592_v14  ;;  %v873_v59 = vmul.f32 %v7573_v15, %v7593_v41  ;;  %v5749_v44 = vld [vmem:[%s7471_s3 + $0x68] sm:$0xff]  ;;  %v5758_v18 = vadd.f32 %v1019_v40, %v7595_v8 }
 0x13a   : > { %v2417_v26 = vrot.slane %v5749_v44, %v5118_v5  ;;  %v2410_v10 = vrot.slane %v5749_v44, %v5114_v3  ;;  %v1098_v14 = vmul.f32 %v1082_v34, %v5554_v0  ;;  %v1106_v30 = vmul.f32 %v1090_v13, %v5676_v61  ;;  %v5821_v34 = vld [vmem:[%s7471_s3 + $0x88] sm:$0xff] }
 0x13b   : > { %v950_v15 = vadd.f32 %v934_v43, %v873_v59  ;;  %v1023_v37 = vadd.f32 %v1007_v20, %v946_v21  ;;  %v1094_v1 = vmul.f32 %v1078_v27, %v5689_v38  ;;  %v7598_v20 = vld [vmem:[#allocation14_spill] sm:$0xff]  ;;  %4869 = vtanh.f32 %v5758_v18  ;;  %v7605_v27 = vld [vmem:[#allocation40_spill] sm:$0xff] }
 0x13c   : > { %v1140_v57 = vpop.permute.xlu1 %1139  ;;  %v1135_v52 = vpop.permute.xlu0 %1134  ;;  %v877_v51 = vmul.f32 %v7577_v36, %v7598_v20  ;;  %v1118_v59 = vadd.f32 %v1102_v22, %v1098_v14  ;;  %v2431_v38 = vrot.slane %v5749_v44, %v5126_v9  ;;  %v7602_v36 = vld [vmem:[#allocation38_spill] sm:$0xff]  ;;  %v2424_v21 = vrot.slane %v5749_v44, %v7571_v33 }
 0x13d   : > { %v5742_v31 = vadd.f32 %v1140_v57, %v1117_v56  ;;  %v5744_v25 = vadd.f32 %v1135_v52, %v1114_v58  ;;  %2388 = vbcast.lane.b32.xlu0 %v2386_v19, 256  ;;  %2381 = vbcast.lane.b32.xlu1 %v2379_v7, 256  ;;  %v1011_v19 = vmul.f32 %v5505_v60, %v7594_v11  ;;  %v7596_v60 = vld [vmem:[#allocation23_spill] sm:$0xff]  ;;  %v7609_v13 = vmov 920167782  }
 0x13e   : > { %v938_v46 = vmul.f32 %v5502_v4, %v7596_v60  ;;  %v5771_v43 = vadd.f32 %v1023_v37, %v7597_v45  ;;  %v7599_v56 = vld [vmem:[#allocation31_spill] sm:$0xff]  ;;  %v1110_v0 = vmul.f32 %v1094_v1, %v5722_v16  ;;  %v1119_v52 = vadd.f32 %v1118_v59, %v1106_v30 }
 0x13f   : > { %v2024_v35 = vand.u32 2139095040, %v5742_v31  ;;  %v1164_v53 = vand.u32 2139095040, %v5744_v25  ;;  %v1015_v4 = vmul.f32 %v5508_v24, %v7599_v56  ;;  %v1027_v58 = vadd.f32 %v1011_v19, %v950_v15 }
 0x140   : > { %v1145_v7 = vpop.permute.xlu1 %1144  ;;  %v5761_v54 = vpop.permute.xlu0 %1149  ;;  %4871 = vtanh.f32 %v5771_v43  ;;  %v954_v57 = vadd.f32 %v938_v46, %v877_v51  ;;  %v1120_v15 = vadd.f32 %v1119_v52, %v1110_v0  ;;  %v2438_v63 = vrot.slane %v5749_v44, %v5294_v50 }
 0x141   : > { %v2025_v28 = vshrl.u32 %v2024_v35, 23  ;;  %2402 = vbcast.lane.b32.xlu0 %v2400_v23, 256  ;;  %v1165_v39 = vshrl.u32 %v1164_v53, 23  ;;  %2395 = vbcast.lane.b32.xlu1 %v2393_v48, 256  ;;  %v5792_v17 = vadd.f32 %v1027_v58, %v7602_v36  ;;  %v2445_v48 = vrot.slane %v5749_v44, %v7579_v42 }
 0x142   : > { %v1031_v2 = vadd.f32 %v1015_v4, %v954_v57  ;;  %v5810_v19 = vadd.f32 %v1145_v7, %v1120_v15  ;;  %v2452_v7 = vrot.slane %v5749_v44, %v5308_v12  ;;  %v7610_v45 = vmov 1326507024  }
 0x143   : > { %v4729_v6 = vadd.s32 4294967169, %v2025_v28  ;;  %v4717_v24 = vadd.s32 4294967169, %v1165_v39  ;;  %4873 = vtanh.f32 %v5792_v17  ;;  %v2476_v30 = vrot.slane %v5821_v34, %v5118_v5 }
 0x144   : > { %v5783_v47 = vpop.permute.xlu1 %1374  ;;  %v5785_v41 = vpop.permute.xlu0 %1381  ;;  %v5806_v35 = vadd.f32 %v1031_v2, %v7605_v27  ;;  %7606 = vst [vmem:[#allocation28_spill] sm:$0xff] %v5810_v19  ;;  %v2885_v60 = vand.u32 2139095040, %v5810_v19  ;;  %v7496_v1 = vand.u32 2147483647, %v5742_v31  ;;  %v7613_v20 = vmov 2102212464  }
 0x145   : > { %7600 = vst [vmem:[#allocation8_spill] sm:$0xff] %v5783_v47  ;;  %7601 = vst [vmem:[#allocation17_spill] sm:$0xff] %v5785_v41  ;;  %v2031_v61 = vadd.s32 1, %v4729_v6  ;;  %2419 = vbcast.lane.b32.xlu0 %v2417_v26, 256  ;;  %2412 = vbcast.lane.b32.xlu1 %v2410_v10, 256  ;;  %v1171_v37 = vadd.s32 1, %v4717_v24  ;;  %v2459_v26 = vrot.slane %v5749_v44, %v5304_v62  ;;  %v4870_v22 = vpop.eup %4869 }
 0x146   : > { %4875 = vtanh.f32 %v5806_v35  ;;  %v2469_v44 = vrot.slane %v5821_v34, %v5114_v3  ;;  %v7614_v4 = vmov 2475754826   ;;  %v7615_v59 = vmov 2131351028  }
 0x147   : > { %vm2032_vm0 = vcmp.gt.s32.totalorder %v2031_v61, 0  ;;  %vm1172_vm1 = vcmp.gt.s32.totalorder %v1171_v37, 0  ;;  %v1067_v36 = vadd.f32 1.0, %v4870_v22  ;;  %v2886_v57 = vshrl.u32 %v2885_v60, 23 }
 0x148   : > { %v2033_v23 = vsel %vm2032_vm0, %v2031_v61, 0  ;;  %v5796_v16 = vpop.permute.xlu1 %1388  ;;  %v5798_v32 = vpop.permute.xlu0 %1395  ;;  %v5843_v56 = vsel %vm1172_vm1, %v1171_v37, 0 }
 0x149   : > { %7603 = vst [vmem:[#allocation11_spill] sm:$0xff] %v5796_v16  ;;  %7604 = vst [vmem:[#allocation20_spill] sm:$0xff] %v5798_v32  ;;  %v2035_v40 = vand.u32 31, %v2033_v23  ;;  %2433 = vbcast.lane.b32.xlu0 %v2431_v38, 256  ;;  %2426 = vbcast.lane.b32.xlu1 %v2424_v21, 256  ;;  %v5840_v6 = vshrl.u32 %v2033_v23, 5 }
 0x14a   : > { %v4872_v46 = vpop.eup %4871  ;;  %v7616_v23 = vmov 683565275   ;;  %v5862_v22 = vand.u32 31, %v5843_v56 }
 0x14b   : > { %v5808_v11 = vsub.s32 32, %v2035_v40  ;;  %v2047_v51 = vshll.u32 %v7613_v20, %v2035_v40  ;;  %v2050_v38 = vshll.u32 %v7609_v13, %v2035_v40  ;;  %v1071_v24 = vadd.f32 1.0, %v4872_v46 }
 0x14c   : > { %v5812_v8 = vpop.permute.xlu1 %1402  ;;  %v5814_v53 = vpop.permute.xlu0 %1409  ;;  %v2038_v2 = vshll.u32 %v7616_v23, %v2035_v40  ;;  %v2041_v15 = vshll.u32 %v7614_v4, %v2035_v40  ;;  %vm2056_vm2 = vcmp.lt.s32.totalorder %v5840_v6, 4  ;;  %vm2053_vm3 = vcmp.lt.s32.totalorder %v5840_v6, 1 }
 0x14d   : > { %7607 = vst [vmem:[#allocation26_spill] sm:$0xff] %v5812_v8  ;;  %7608 = vst [vmem:[#allocation13_spill] sm:$0xff] %v5814_v53  ;;  %2447 = vbcast.lane.b32.xlu0 %v2445_v48, 256  ;;  %2440 = vbcast.lane.b32.xlu1 %v2438_v63, 256  ;;  %v2048_v28 = vshrl.u32 %v7609_v13, %v5808_v11  ;;  %v2051_v39 = vshrl.u32 %v7610_v45, %v5808_v11  ;;  %v4874_v52 = vpop.eup %4873  ;;  %vm2055_vm4 = vcmp.lt.s32.totalorder %v5840_v6, 3 }
 0x14e   : > { %v2039_v58 = vshrl.u32 %v7614_v4, %v5808_v11  ;;  %v2042_v0 = vshrl.u32 %v7615_v59, %v5808_v11  ;;  %v2045_v61 = vshrl.u32 %v7613_v20, %v5808_v11  ;;  %v2044_v48 = vshll.u32 %v7615_v59, %v2035_v40 }
 0x14f   : > { %v2049_v21 = vor.u32 %v2048_v28, %v2047_v51  ;;  %v2052_v37 = vor.u32 %v2051_v39, %v2050_v38  ;;  %v2483_v28 = vrot.slane %v5821_v34, %v7571_v33  ;;  %v1075_v39 = vadd.f32 1.0, %v4874_v52  ;;  %v5904_v52 = vld [vmem:[%s7471_s3 + $0x10] sm:$0xff] }
 0x150   : > { %v5831_v10 = vpop.permute.xlu1 %1416  ;;  %v5833_v14 = vpop.permute.xlu0 %1423  ;;  %v5868_v60 = vor.u32 %v2039_v58, %v2038_v2  ;;  %v5870_v40 = vor.u32 %v2042_v0, %v2041_v15  ;;  %v5872_v46 = vor.u32 %v2045_v61, %v2044_v48  ;;  %v1087_v38 = vmul.f32 %v1071_v24, %v5771_v43  ;;  %v7621_v15 = vld [vmem:[#allocation46_spill] sm:$0xff] }
 0x151   : > { %7611 = vst [vmem:[#allocation42_spill] sm:$0xff] %v5831_v10  ;;  %7612 = vst [vmem:[#allocation24_spill] sm:$0xff] %v5833_v14  ;;  %2461 = vbcast.lane.b32.xlu0 %v2459_v26, 256  ;;  %2454 = vbcast.lane.b32.xlu1 %v2452_v7, 256  ;;  %v2028_v26 = vand.u32 8388607, %v7496_v1  ;;  %v2490_v7 = vrot.slane %v5821_v34, %v5126_v9  ;;  %v4876_v61 = vpop.eup %4875 }
 0x152   : > { %v2062_v51 = vsel %vm2056_vm2, %v2049_v21, 920167782  ;;  %v2066_v1 = vsel %vm2056_vm2, %v2052_v37, 1326507024  ;;  %v4742_v58 = vadd.s32 4294967169, %v2886_v57  ;;  %v5899_v57 = vsub.s32 32, %v5862_v22 }
 0x153   : > { %v2029_v43 = vor.u32 8388608, %v2028_v26  ;;  %v2063_v24 = vsel %vm2055_vm4, %v5872_v46, %v2062_v51  ;;  %v1091_v37 = vmul.f32 %v1075_v39, %v5792_v17  ;;  %v2065_v26 = vsel %vm2053_vm3, %v5870_v40, %v5872_v46 }
 0x154   : > { %v5855_v63 = vpop.permute.xlu1 %1433  ;;  %v5857_v27 = vpop.permute.xlu0 %1440  ;;  %v1103_v51 = vmul.f32 %v1087_v38, %v5617_v55  ;;  %v5915_v14 = vadd.f32 1.0, %v4876_v61  ;;  %vm2054_vm5 = vcmp.lt.s32.totalorder %v5840_v6, 2  ;;  %v2892_v10 = vadd.s32 1, %v4742_v58 }
 0x155   : > { %7617 = vst [vmem:[#allocation30_spill] sm:$0xff] %v5855_v63  ;;  %7618 = vst [vmem:[#allocation15_spill] sm:$0xff] %v5857_v27  ;;  %2478 = vbcast.lane.b32.xlu0 %v2476_v30, 256  ;;  %2471 = vbcast.lane.b32.xlu1 %v2469_v44, 256  ;;  %v1083_v30 = vmul.f32 %v1067_v36, %v5758_v18  ;;  %v2504_v44 = vrot.slane %v5821_v34, %v7579_v42  ;;  %v5932_v38 = vshll.u32 %v2029_v43, 8 }
 0x156   : > { %v2497_v18 = vrot.slane %v5821_v34, %v5294_v50  ;;  %v2061_v36 = vsel %vm2053_vm3, %v5868_v60, %v5870_v40  ;;  %v2518_v39 = vrot.slane %v5821_v34, %v5304_v62  ;;  %v2511_v55 = vrot.slane %v5821_v34, %v5308_v12 }
 0x157   : > { %v1099_v48 = vmul.f32 %v1083_v30, %v7621_v15  ;;  %v2064_v17 = vsel %vm2054_vm5, %v2061_v36, %v2063_v24  ;;  %v1188_v61 = vshrl.u32 %v7609_v13, %v5899_v57  ;;  %v1179_v36 = vshrl.u32 %v7614_v4, %v5899_v57 }
 0x158   : > { %v5881_v2 = vpop.permute.xlu1 %1447  ;;  %v5883_v0 = vpop.permute.xlu0 %1454  ;;  %v1182_v34 = vshrl.u32 %v7615_v59, %v5899_v57  ;;  %v1191_v24 = vshrl.u32 %v7610_v45, %v5899_v57  ;;  %v5947_v43 = vmul.u32.u64.low %v5932_v38, %v2064_v17  ;;  %v5948_v15 = vmul.u32.u64.high %v5932_v38, %v2064_v17, %v5947_v43 }
 0x159   : > { %7619 = vst [vmem:[#allocation43_spill] sm:$0xff] %v5881_v2  ;;  %7620 = vst [vmem:[#allocation32_spill] sm:$0xff] %v5883_v0  ;;  %2492 = vbcast.lane.b32.xlu0 %v2490_v7, 256  ;;  %2485 = vbcast.lane.b32.xlu1 %v2483_v28, 256  ;;  %v2067_v7 = vsel %vm2055_vm4, %v2049_v21, %v2066_v1  ;;  %v3101_v1 = vrot.slane %v5904_v52, %v5118_v5  ;;  %vm2893_vm6 = vcmp.gt.s32.totalorder %v2892_v10, 0 }
 0x15a   : > { %v2068_v21 = vsel %vm2054_vm5, %v2065_v26, %v2067_v7  ;;  %v1185_v53 = vshrl.u32 %v7613_v20, %v5899_v57  ;;  %v1190_v17 = vshll.u32 %v7609_v13, %v5862_v22  ;;  %v2894_v8 = vsel %vm2893_vm6, %v2892_v10, 0 }
 0x15b   : > { %v5958_v7 = vmul.u32.u64.low %v5932_v38, %v2068_v21  ;;  %v5959_v58 = vmul.u32.u64.high %v5932_v38, %v2068_v21, %v5958_v7  ;;  %v1181_v21 = vshll.u32 %v7614_v4, %v5862_v22  ;;  %v3115_v2 = vrot.slane %v5904_v52, %v5126_v9 }
 0x15c   : > { %v5918_v28 = vpop.permute.xlu1 %1461  ;;  %v5920_v30 = vpop.permute.xlu0 %1468  ;;  %v1184_v7 = vshll.u32 %v7615_v59, %v5862_v22 }
 0x15d   : > { %7622 = vst [vmem:[#allocation21_spill] sm:$0xff] %v5918_v28  ;;  %7623 = vst [vmem:[#allocation36_spill] sm:$0xff] %v5920_v30  ;;  %2506 = vbcast.lane.b32.xlu0 %v2504_v44, 256  ;;  %2499 = vbcast.lane.b32.xlu1 %v2497_v18, 256  ;;  %v5938_v44 = vshrl.u32 %v5843_v56, 5  ;;  %v1187_v18 = vshll.u32 %v7613_v20, %v5862_v22  ;;  %v1121_v30 = vadd.f32 %v1103_v51, %v1099_v48 }
 0x15e   : > { %v1178_v28 = vshll.u32 %v7616_v23, %v5862_v22  ;;  %v2058_v48 = vsel %vm2056_vm2, %v5872_v46, 2102212464  ;;  %v7626_v51 = vand.u32 2147483647, %v5744_v25  ;;  %v5988_v10 = vor.u32 %v1182_v34, %v1181_v21 }
 0x15f   : > { %v1189_v0 = vor.u32 %v1188_v61, %v1187_v18  ;;  %vm1196_vm7 = vcmp.lt.s32.totalorder %v5938_v44, 4  ;;  %vm1193_vm8 = vcmp.lt.s32.totalorder %v5938_v44, 1  ;;  %vm1195_vm9 = vcmp.lt.s32.totalorder %v5938_v44, 3 }
 0x160   : > { %v5953_v56 = vpop.permute.xlu1 %1475  ;;  %v5955_v26 = vpop.permute.xlu0 %1482  ;;  %v5986_v22 = vor.u32 %v1179_v36, %v1178_v28  ;;  %vm2078_vm10 = vc.u32 %v5959_v58, %v5947_v43  ;;  %vm1194_vm11 = vcmp.lt.s32.totalorder %v5938_v44, 2 }
 0x161   : > { %7624 = vst [vmem:[#allocation34_spill] sm:$0xff] %v5953_v56  ;;  %7625 = vst [vmem:[#allocation39_spill] sm:$0xff] %v5955_v26  ;;  %2520 = vbcast.lane.b32.xlu0 %v2518_v39, 256  ;;  %2513 = vbcast.lane.b32.xlu1 %v2511_v55, 256  ;;  %v3094_v26 = vrot.slane %v5904_v52, %v5114_v3  ;;  %v1192_v56 = vor.u32 %v1191_v24, %v1190_v17  ;;  %v1168_v55 = vand.u32 8388607, %v7626_v51 }
 0x162   : > { %v2037_v39 = vshrl.u32 %v7616_v23, %v5808_v11  ;;  %v5990_v24 = vor.u32 %v1185_v53, %v1184_v7  ;;  %v1107_v11 = vmul.f32 %v1091_v37, %v5674_v29  ;;  %v1202_v46 = vsel %vm1196_vm7, %v1189_v0, 920167782 }
 0x163   : > { %v2896_v17 = vand.u32 31, %v2894_v8  ;;  %v3108_v51 = vrot.slane %v5904_v52, %v7571_v33  ;;  %v2059_v53 = vsel %vm2055_vm4, %v5870_v40, %v2058_v48  ;;  %v3129_v29 = vrot.slane %v5904_v52, %v7579_v42 }
 0x164   : > { %v5980_v61 = vpop.permute.xlu1 %1492  ;;  %v5982_v18 = vpop.permute.xlu0 %1499  ;;  %v2057_v28 = vsel %vm2053_vm3, %v2037_v39, %v5868_v60  ;;  %v2079_v37 = vadd.s32 1, %v5948_v15  ;;  %v3122_v60 = vrot.slane %v5904_v52, %v5294_v50  ;;  %v1169_v40 = vor.u32 8388608, %v1168_v55 }
 0x165   : > { %7627 = vst [vmem:[#allocation41_spill] sm:$0xff] %v5980_v61  ;;  %7628 = vst [vmem:[#allocation44_spill] sm:$0xff] %v5982_v18  ;;  %3103 = vbcast.lane.b32.xlu0 %v3101_v1, 256  ;;  %3096 = vbcast.lane.b32.xlu1 %v3094_v26, 256  ;;  %v1206_v1 = vsel %vm1196_vm7, %v1192_v56, 1326507024  ;;  %v1201_v56 = vsel %vm1193_vm8, %v5986_v22, %v5988_v10  ;;  %v1203_v26 = vsel %vm1195_vm9, %v5990_v24, %v1202_v46 }
 0x166   : > { %v2060_v21 = vsel %vm2054_vm5, %v2057_v28, %v2059_v53  ;;  %v1205_v7 = vsel %vm1193_vm8, %v5988_v10, %v5990_v24  ;;  %v1207_v39 = vsel %vm1195_vm9, %v1189_v0, %v1206_v1  ;;  %v6034_v48 = vsub.s32 32, %v2896_v17 }
 0x167   : > { %v1122_v6 = vadd.f32 %v1121_v30, %v1107_v11  ;;  %v1095_v55 = vmul.f32 %v5915_v14, %v5806_v35  ;;  %v2080_v46 = vsel %vm2078_vm10, %v2079_v37, %v5948_v15  ;;  %v1204_v28 = vsel %vm1194_vm11, %v1201_v56, %v1203_v26 }
 0x168   : > { %v6011_v36 = vpop.permute.xlu1 %1506  ;;  %v6013_v34 = vpop.permute.xlu0 %1513  ;;  %v1208_v1 = vsel %vm1194_vm11, %v1205_v7, %v1207_v39  ;;  %v3143_v35 = vrot.slane %v5904_v52, %v5304_v62  ;;  %v2909_v30 = vshrl.u32 %v7609_v13, %v6034_v48  ;;  %v2900_v39 = vshrl.u32 %v7614_v4, %v6034_v48 }
 0x169   : > { %7629 = vst [vmem:[#allocation45_spill] sm:$0xff] %v6011_v36  ;;  %7630 = vst [vmem:[#allocation16_spill] sm:$0xff] %v6013_v34  ;;  %3117 = vbcast.lane.b32.xlu0 %v3115_v2, 256  ;;  %3110 = vbcast.lane.b32.xlu1 %v3108_v51, 256  ;;  %v6040_v2 = vld [vmem:[%s7471_s3 + $0x30] sm:$0xff]  ;;  %v2076_v51 = vmul.u32 %v5932_v38, %v2060_v21  ;;  %v6054_v34 = vshll.u32 %v1169_v40, 8  ;;  %v3136_v38 = vrot.slane %v5904_v52, %v5308_v12 }
 0x16a   : > { %v3160_v15 = vrot.slane %v6040_v2, %v5118_v5  ;;  %v2912_v40 = vshrl.u32 %v7610_v45, %v6034_v48  ;;  %v6078_v21 = vshrl.u32 %v2894_v8, 5  ;;  %v1111_v8 = vmul.f32 %v1095_v55, %v5720_v49 }
 0x16b   : > { %v6065_v11 = vadd.s32 %v2080_v46, %v2076_v51  ;;  %v6075_v56 = vmul.u32.u64.low %v6054_v34, %v1208_v1  ;;  %v6076_v26 = vmul.u32.u64.high %v6054_v34, %v1208_v1, %v6075_v56  ;;  %v2903_v46 = vshrl.u32 %v7615_v59, %v6034_v48 }
 0x16c   : > { %v6047_v0 = vpop.permute.xlu1 %1520  ;;  %v6049_v53 = vpop.permute.xlu0 %1527  ;;  %v2911_v51 = vshll.u32 %v7609_v13, %v2896_v17  ;;  %v3174_v56 = vrot.slane %v6040_v2, %v5126_v9  ;;  %v3153_v14 = vrot.slane %v6040_v2, %v5114_v3  ;;  %v1177_v49 = vshrl.u32 %v7616_v23, %v5899_v57 }
 0x16d   : > { %7631 = vst [vmem:[#allocation18_spill] sm:$0xff] %v6047_v0  ;;  %7632 = vst [vmem:[#allocation9_spill] sm:$0xff] %v6049_v53  ;;  %3131 = vbcast.lane.b32.xlu0 %v3129_v29, 256  ;;  %3124 = vbcast.lane.b32.xlu1 %v3122_v60, 256  ;;  %v6068_v37 = vmul.u32.u64.low %v6054_v34, %v1204_v28  ;;  %v6069_v29 = vmul.u32.u64.high %v6054_v34, %v1204_v28, %v6068_v37  ;;  %v2908_v60 = vshll.u32 %v7613_v20, %v2896_v17  ;;  %v2082_v36 = vadd.s32 536870912, %v6065_v11 }
 0x16e   : > { %v2906_v28 = vshrl.u32 %v7613_v20, %v6034_v48  ;;  %v2905_v53 = vshll.u32 %v7615_v59, %v2896_v17  ;;  %v2913_v0 = vor.u32 %v2912_v40, %v2911_v51  ;;  %v1198_v55 = vsel %vm1196_vm7, %v5990_v24, 2102212464 }
 0x16f   : > { %v2910_v1 = vor.u32 %v2909_v30, %v2908_v60  ;;  %vm2917_vm12 = vcmp.lt.s32.totalorder %v6078_v21, 4  ;;  %v1123_v40 = vadd.f32 %v1122_v6, %v1111_v8  ;;  %v1197_v24 = vsel %vm1193_vm8, %v1177_v49, %v5986_v22 }
 0x170   : > { %v6081_v7 = vpop.permute.xlu1 %1534  ;;  %v6083_v52 = vpop.permute.xlu0 %1541  ;;  %v1199_v51 = vsel %vm1195_vm9, %v5988_v10, %v1198_v55  ;;  %v1219_v6 = vadd.s32 1, %v6069_v29  ;;  %vm2914_vm13 = vcmp.lt.s32.totalorder %v6078_v21, 1  ;;  %vm2916_vm14 = vcmp.lt.s32.totalorder %v6078_v21, 3 }
 0x171   : > { %7633 = vst [vmem:[#allocation10_spill] sm:$0xff] %v6081_v7  ;;  %7634 = vst [vmem:[#allocation19_spill] sm:$0xff] %v6083_v52  ;;  %3145 = vbcast.lane.b32.xlu0 %v3143_v35, 256  ;;  %3138 = vbcast.lane.b32.xlu1 %v3136_v38, 256  ;;  %v2899_v52 = vshll.u32 %v7616_v23, %v2896_v17  ;;  %v2902_v7 = vshll.u32 %v7614_v4, %v2896_v17  ;;  %v7635_v35 = vand.u32 2147483647, %v5810_v19 }
 0x172   : > { %v2907_v17 = vor.u32 %v2906_v28, %v2905_v53  ;;  %v2923_v57 = vsel %vm2917_vm12, %v2910_v1, 920167782  ;;  %v3188_v53 = vrot.slane %v6040_v2, %v7579_v42  ;;  %vm1218_vm15 = vc.u32 %v6076_v26, %v6068_v37 }
 0x173   : > { %v2889_v30 = vand.u32 8388607, %v7635_v35  ;;  %v2901_v61 = vor.u32 %v2900_v39, %v2899_v52  ;;  %v2904_v18 = vor.u32 %v2903_v46, %v2902_v7  ;;  %v2927_v7 = vsel %vm2917_vm12, %v2913_v0, 1326507024 }
 0x174   : > { %v6108_v38 = vpop.permute.xlu1 %1551  ;;  %v6110_v60 = vpop.permute.xlu0 %1558  ;;  %v6132_v52 = vshrl.u32 %v2082_v36, 30  ;;  %v2924_v0 = vsel %vm2916_vm14, %v2907_v17, %v2923_v57  ;;  %v1200_v39 = vsel %vm1194_vm11, %v1197_v24, %v1199_v51  ;;  %v2928_v36 = vsel %vm2916_vm14, %v2910_v1, %v2927_v7 }
 0x175   : > { %7636 = vst [vmem:[#allocation25_spill] sm:$0xff] %v6108_v38  ;;  %7637 = vst [vmem:[#allocation27_spill] sm:$0xff] %v6110_v60  ;;  %3162 = vbcast.lane.b32.xlu0 %v3160_v15, 256  ;;  %3155 = vbcast.lane.b32.xlu1 %v3153_v14, 256  ;;  %v2890_v15 = vor.u32 8388608, %v2889_v30  ;;  %v2922_v10 = vsel %vm2914_vm13, %v2901_v61, %v2904_v18  ;;  %v2926_v46 = vsel %vm2914_vm13, %v2904_v18, %v2907_v17 }
 0x176   : > { %vm2915_vm0 = vcmp.lt.s32.totalorder %v6078_v21, 2  ;;  %v6148_v28 = vadd.f32 %v5761_v54, %v1123_v40  ;;  %v1220_v8 = vsel %vm1218_vm15, %v1219_v6, %v6069_v29  ;;  %v3202_v55 = vrot.slane %v6040_v2, %v5304_v62 }
 0x177   : > { %v2925_v49 = vsel %vm2915_vm0, %v2922_v10, %v2924_v0  ;;  %v2084_v35 = vshll.u32 %v6132_v52, 30  ;;  %v1216_v1 = vmul.u32 %v6054_v34, %v1200_v39  ;;  %v2929_v54 = vsel %vm2915_vm0, %v2926_v46, %v2928_v36 }
 0x178   : > { %v6128_v14 = vpop.permute.xlu1 %1565  ;;  %v6130_v22 = vpop.permute.xlu0 %1572  ;;  %7640 = vst [vmem:[#allocation33_spill] sm:$0xff] %v6148_v28  ;;  %v2930_v30 = vshll.u32 %v2890_v15, 8  ;;  %v3746_v24 = vand.u32 2139095040, %v6148_v28  ;;  %v2898_v39 = vshrl.u32 %v7616_v23, %v6034_v48  ;;  %vm2023_vm10 = vcmp.lt.s32.totalorder %v5742_v31, 0 }
 0x179   : > { %7638 = vst [vmem:[#allocation12_spill] sm:$0xff] %v6128_v14  ;;  %7639 = vst [vmem:[#allocation29_spill] sm:$0xff] %v6130_v22  ;;  %3176 = vbcast.lane.b32.xlu0 %v3174_v56, 256  ;;  %v1221_v29 = vadd.s32 %v1220_v8, %v1216_v1  ;;  %v6176_v34 = vsub.s32 %v6065_v11, %v2084_v35 }
 0x17a   : > { %v6163_v40 = vmul.u32.u64.low %v2930_v30, %v2925_v49  ;;  %v6164_v57 = vmul.u32.u64.high %v2930_v30, %v2925_v49, %v6163_v40  ;;  %v6168_v51 = vmul.u32.u64.low %v2930_v30, %v2929_v54  ;;  %v6169_v7 = vmul.u32.u64.high %v2930_v30, %v2929_v54, %v6168_v51 }
 0x17b   : > { %v1222_v15 = vadd.s32 536870912, %v1221_v29  ;;  %v3747_v0 = vshrl.u32 %v3746_v24, 23  ;;  %v2087_v8 = vsub.s32 0, %v6176_v34  ;;  %v2918_v49 = vsel %vm2914_vm13, %v2898_v39, %v2901_v61 }
 0x17c   : > { %v6153_v56 = vpop.permute.xlu1 %1579  ;;  %v6155_v44 = vpop.permute.xlu0 %1586  ;;  %vm2939_vm1 = vc.u32 %v6169_v7, %v6163_v40 }
 0x17d   : > { %7641 = vst [vmem:[#allocation23_spill] sm:$0xff] %v6153_v56  ;;  %7642 = vst [vmem:[#allocation35_spill] sm:$0xff] %v6155_v44  ;;  %3190 = vbcast.lane.b32.xlu0 %v3188_v53, 256  ;;  %v2919_v53 = vsel %vm2917_vm12, %v2907_v17, 2102212464  ;;  %v2940_v17 = vadd.s32 1, %v6164_v57  ;;  %v4730_v54 = vmin.u32 %v2087_v8, %v6176_v34 }
 0x17e   : > { %v2920_v11 = vsel %vm2916_vm14, %v2904_v18, %v2919_v53  ;;  %v4755_v35 = vadd.s32 4294967169, %v3747_v0 }
 0x17f   : > { %v2921_v61 = vsel %vm2915_vm0, %v2918_v49, %v2920_v11  ;;  %v2941_v18 = vsel %vm2939_vm1, %v2940_v17, %v6164_v57  ;;  %vm2113_vm0 = vweird.f32 %v5742_v31 }
 0x180   : > { %v6171_v6 = vpop.permute.xlu1 %1593  ;;  %v6173_v10 = vpop.permute.xlu0 %1600  ;;  %v3753_v51 = vadd.s32 1, %v4755_v35  ;;  %v2937_v53 = vmul.u32 %v2930_v30, %v2921_v61  ;;  %v3167_v30 = vrot.slane %v6040_v2, %v7571_v33 }
 0x181   : > { %7643 = vst [vmem:[#allocation14_spill] sm:$0xff] %v6171_v6  ;;  %7644 = vst [vmem:[#allocation31_spill] sm:$0xff] %v6173_v10  ;;  %3204 = vbcast.lane.b32.xlu0 %v3202_v55, 256  ;;  %v6191_v55 = vshrl.u32 %v1222_v15, 30  ;;  %v6208_v15 = vld [vmem:[%s7471_s3 + $0x50] sm:$0xff] }
 0x182   : > { %v2942_v8 = vadd.s32 %v2941_v18, %v2937_v53  ;;  %v3219_v21 = vrot.slane %v6208_v15, %v5118_v5  ;;  %vm3754_vm2 = vcmp.gt.s32.totalorder %v3753_v51, 0  ;;  %3169 = vbcast.lane.b32.xlu1 %v3167_v30, 256  ;;  %v3247_v30 = vrot.slane %v6208_v15, %v7579_v42 }
 0x183   : > { %7647 = vst [vmem:[#allocation46_spill] sm:$0xff] %v6191_v55  ;;  %v1224_v24 = vshll.u32 %v6191_v55, 30  ;;  %v3755_v61 = vsel %vm3754_vm2, %v3753_v51, 0 }
 0x184   : > { %v6182_v46 = vpop.permute.xlu1 %1610  ;;  %v6184_v36 = vpop.permute.xlu0 %1617  ;;  %v2943_v35 = vadd.s32 536870912, %v2942_v8  ;;  %v6268_v22 = vshrl.u32 %v3755_v61, 5 }
 0x185   : > { %7645 = vst [vmem:[#allocation38_spill] sm:$0xff] %v6182_v46  ;;  %7646 = vst [vmem:[#allocation40_spill] sm:$0xff] %v6184_v36  ;;  %v6216_v49 = vsub.s32 %v1221_v29, %v1224_v24  ;;  %3221 = vbcast.lane.b32.xlu0 %v3219_v21, 256  ;;  %v3757_v29 = vand.u32 31, %v3755_v61  ;;  %v3233_v21 = vrot.slane %v6208_v15, %v5126_v9 }
 0x186   : > { %v6229_v24 = vshrl.u32 %v2943_v35, 30  ;;  %vm3778_vm5 = vcmp.lt.s32.totalorder %v6268_v22, 4  ;;  %vm3775_vm6 = vcmp.lt.s32.totalorder %v6268_v22, 1  ;;  %vm3777_vm7 = vcmp.lt.s32.totalorder %v6268_v22, 3 }
 0x187   : > { %v6244_v35 = vsub.s32 32, %v3757_v29  ;;  %v3769_v56 = vshll.u32 %v7613_v20, %v3757_v29  ;;  %v3760_v6 = vshll.u32 %v7616_v23, %v3757_v29  ;;  %v3763_v60 = vshll.u32 %v7614_v4, %v3757_v29 }
 0x188   : > { %v6196_v48 = vpop.permute.xlu1 %1624  ;;  %v6198_v1 = vpop.permute.xlu0 %1631  ;;  %7654 = vst [vmem:[#allocation53_spill] sm:$0xff] %v6229_v24  ;;  %v3766_v32 = vshll.u32 %v7615_v59, %v3757_v29  ;;  %vm3776_vm8 = vcmp.lt.s32.totalorder %v6268_v22, 2  ;;  %v6396_v22 = vld [vmem:[%s7471_s3 + $0x18] sm:$0xff] }
 0x189   : > { %7648 = vst [vmem:[#allocation47_spill] sm:$0xff] %v6196_v48  ;;  %7649 = vst [vmem:[#allocation48_spill] sm:$0xff] %v6198_v1  ;;  %v2089_v1 = vclz %v4730_v54  ;;  %v1227_v54 = vsub.s32 0, %v6216_v49  ;;  %3235 = vbcast.lane.b32.xlu0 %v3233_v21, 256  ;;  %v2945_v48 = vshll.u32 %v6229_v24, 30  ;;  %v3261_v21 = vrot.slane %v6208_v15, %v5304_v62 }
 0x18a   : > { %v3761_v44 = vshrl.u32 %v7614_v4, %v6244_v35  ;;  %v3764_v14 = vshrl.u32 %v7615_v59, %v6244_v35 }
 0x18b   : > { %v4731_v17 = vadd.s32 4294967294, %v2089_v1  ;;  %v3181_v1 = vrot.slane %v6040_v2, %v5294_v50  ;;  %v6260_v10 = vsub.s32 %v2942_v8, %v2945_v48  ;;  %v3767_v48 = vshrl.u32 %v7613_v20, %v6244_v35 }
 0x18c   : > { %v6210_v0 = vpop.permute.xlu1 %1638  ;;  %v6212_v39 = vpop.permute.xlu0 %1645  ;;  %v3772_v8 = vshll.u32 %v7609_v13, %v3757_v29  ;;  %v3762_v63 = vor.u32 %v3761_v44, %v3760_v6  ;;  %v3765_v27 = vor.u32 %v3764_v14, %v3763_v60 }
 0x18d   : > { %7650 = vst [vmem:[#allocation49_spill] sm:$0xff] %v6210_v0  ;;  %7651 = vst [vmem:[#allocation50_spill] sm:$0xff] %v6212_v39  ;;  %vm4732_vm3 = vcmp.lt.s32.totalorder %v4731_v17, 0  ;;  %3183 = vbcast.lane.b32.xlu1 %v3181_v1, 256  ;;  %v3195_v0 = vrot.slane %v6040_v2, %v5308_v12  ;;  %3249 = vbcast.lane.b32.xlu0 %v3247_v30, 256  ;;  %v3212_v1 = vrot.slane %v6208_v15, %v5114_v3 }
 0x18e   : > { %v6236_v51 = vsel %vm4732_vm3, 0, %v4731_v17  ;;  %v3770_v2 = vshrl.u32 %v7609_v13, %v6244_v35  ;;  %v2948_v38 = vsub.s32 0, %v6260_v10  ;;  %v2077_v13 = vadd.s32 %v5947_v43, %v5959_v58 }
 0x18f   : > { %v3768_v41 = vor.u32 %v3767_v48, %v3766_v32  ;;  %v2094_v44 = vshll.u32 %v6176_v34, %v6236_v51  ;;  %v3783_v6 = vsel %vm3775_vm6, %v3762_v63, %v3765_v27 }
 0x190   : > { %v6218_v57 = vpop.permute.xlu1 %1652  ;;  %v6220_v11 = vpop.permute.xlu0 %1659  ;;  %v3771_v61 = vor.u32 %v3770_v2, %v3769_v56  ;;  %v4743_v58 = vmin.u32 %v2948_v38, %v6260_v10 }
 0x191   : > { %7652 = vst [vmem:[#allocation51_spill] sm:$0xff] %v6218_v57  ;;  %7653 = vst [vmem:[#allocation52_spill] sm:$0xff] %v6220_v11  ;;  %v4718_v11 = vmin.u32 %v1227_v54, %v6216_v49  ;;  %v2097_v54 = vsub.s32 4294967266, %v6236_v51  ;;  %3197 = vbcast.lane.b32.xlu1 %v3195_v0, 256  ;;  %v3773_v0 = vshrl.u32 %v7610_v45, %v6244_v35  ;;  %3263 = vbcast.lane.b32.xlu0 %v3261_v21, 256 }
 0x192   : > { %v3784_v59 = vsel %vm3778_vm5, %v3771_v61, 920167782  ;;  %v3787_v34 = vsel %vm3775_vm6, %v3765_v27, %v3768_v41 }
 0x193   : > { %v1229_v17 = vclz %v4718_v11  ;;  %v2098_v11 = vadd.s32 127, %v2097_v54  ;;  %v3774_v20 = vor.u32 %v3773_v0, %v3772_v8  ;;  %v3785_v38 = vsel %vm3777_vm7, %v3768_v41, %v3784_v59 }
 0x194   : > { %v6225_v18 = vpop.permute.xlu1 %2235  ;;  %v6227_v53 = vpop.permute.xlu0 %2242  ;;  %v3786_v48 = vsel %vm3776_vm8, %v3783_v6, %v3785_v38  ;;  %v6341_v6 = vld [vmem:[%s7471_s3 + $0x70] sm:$0xff] }
 0x195   : > { %v4719_v30 = vadd.s32 4294967294, %v1229_v17  ;;  %3214 = vbcast.lane.b32.xlu1 %v3212_v1, 256  ;;  %v2093_v17 = vsub.s32 32, %v6236_v51  ;;  %v2099_v21 = vshll.u32 %v2098_v11, 23  ;;  %v7655_v1 = vand.u32 2147483647, %v6148_v28 }
 0x196   : > { %v3788_v43 = vsel %vm3778_vm5, %v3774_v20, 1326507024  ;;  %7658 = vst [vmem:[#allocation56_spill] sm:$0xff] %v6341_v6 }
 0x197   : > { %vm4720_vm4 = vcmp.lt.s32.totalorder %v4719_v30, 0  ;;  %v3750_v16 = vand.u32 8388607, %v7655_v1  ;;  %v2095_v4 = vshrl.u32 %v2077_v13, %v2093_v17  ;;  %v2100_v32 = vor.u32 4788187, %v2099_v21 }
 0x198   : > { %v6240_v57 = vpop.permute.xlu1 %2249  ;;  %v6242_v39 = vpop.permute.xlu0 %2256  ;;  %v6300_v60 = vsel %vm4720_vm4, 0, %v4719_v30  ;;  %v3789_v51 = vsel %vm3777_vm7, %v3771_v61, %v3788_v43  ;;  %vm1163_vm4 = vcmp.lt.s32.totalorder %v5744_v25, 0 }
 0x199   : > { %v3751_v14 = vor.u32 8388608, %v3750_v16  ;;  %v2096_v11 = vor.u32 %v2095_v4, %v2094_v44  ;;  %v1237_v30 = vsub.s32 4294967266, %v6300_v60  ;;  %v2950_v16 = vclz %v4743_v58 }
 0x19a   : > { %v2101_v8 = vand.u32 2147483647, %v2100_v32  ;;  %v3790_v17 = vsel %vm3776_vm8, %v3787_v34, %v3789_v51  ;;  %v1217_v34 = vadd.s32 %v6068_v37, %v6076_v26 }
 0x19b   : > { %v6322_v20 = vshll.u32 %v3751_v14, 8  ;;  %v2103_v1 = vcvt.s32.f32 %v2096_v11  ;;  %v1238_v61 = vadd.s32 127, %v1237_v30  ;;  %v4744_v4 = vadd.s32 4294967294, %v2950_v16 }
 0x19c   : > { %v6254_v46 = vpop.permute.xlu1 %2263  ;;  %v6256_v36 = vpop.permute.xlu0 %2270  ;;  %v1233_v14 = vsub.s32 32, %v6300_v60  ;;  %v3780_v30 = vsel %vm3778_vm5, %v3768_v41, 2102212464  ;;  %v3759_v16 = vshrl.u32 %v7616_v23, %v6244_v35  ;;  %v3226_v23 = vrot.slane %v6208_v15, %v7571_v33 }
 0x19d   : > { %v6329_v59 = vmul.u32.u64.low %v6322_v20, %v3786_v48  ;;  %v6330_v58 = vmul.u32.u64.high %v6322_v20, %v3786_v48, %v6329_v59  ;;  %v6334_v43 = vmul.u32.u64.low %v6322_v20, %v3790_v17  ;;  %v6335_v44 = vmul.u32.u64.high %v6322_v20, %v3790_v17, %v6334_v43 }
 0x19e   : > { %v2104_v32 = vmul.f32 %v2103_v1, %v2101_v8  ;;  %v1239_v51 = vshll.u32 %v1238_v61, 23  ;;  %vm4745_vm9 = vcmp.lt.s32.totalorder %v4744_v4, 0  ;;  %v3278_v48 = vrot.slane %v6341_v6, %v5118_v5  ;;  %3228 = vbcast.lane.b32.xlu1 %v3226_v23, 256 }
 0x19f   : > { %7656 = vst [vmem:[#allocation54_spill] sm:$0xff] %v6329_v59  ;;  %7657 = vst [vmem:[#allocation55_spill] sm:$0xff] %v6335_v44  ;;  %v1235_v17 = vshrl.u32 %v1217_v34, %v1233_v14  ;;  %v6359_v28 = vsel %vm4745_vm9, 0, %v4744_v4  ;;  %v3779_v37 = vsel %vm3775_vm6, %v3759_v16, %v3762_v63  ;;  %v3781_v41 = vsel %vm3777_vm7, %v3765_v27, %v3780_v30  ;;  %v7659_v63 = vld [vmem:[#allocation37_spill] sm:$0xff] }
 0x1a0   : > { %v6275_v45 = vpop.permute.xlu1 %2277  ;;  %v6277_v54 = vpop.permute.xlu0 %2284  ;;  %v2105_v8 = vxor.u32 2147483648, %v2104_v32  ;;  %3280 = vbcast.lane.b32.xlu0 %v3278_v48, 256  ;;  %v1240_v26 = vor.u32 4788187, %v1239_v51  ;;  %v3801_v35 = vadd.s32 1, %v6330_v58  ;;  %v3292_v61 = vrot.slane %v6341_v6, %v5126_v9 }
 0x1a1   : > { %v1234_v4 = vshll.u32 %v6216_v49, %v6300_v60  ;;  %vm3800_vm11 = vc.u32 %v6335_v44, %v6329_v59  ;;  %v2530_v27 = vrot.slane %v5742_v31, %v7659_v63  ;;  %v3240_v14 = vrot.slane %v6208_v15, %v5294_v50  ;;  %v6427_v44 = vld [vmem:[%s7471_s3 + $0x38] sm:$0xff] }
 0x1a2   : > { %v2106_v34 = vsel %vm2023_vm10, %v2105_v8, %v2104_v32  ;;  %v2958_v51 = vsub.s32 4294967266, %v6359_v28  ;;  %v3782_v30 = vsel %vm3776_vm8, %v3779_v37, %v3781_v41  ;;  %v3306_v48 = vrot.slane %v6341_v6, %v7579_v42 }
 0x1a3   : > { %v1236_v60 = vor.u32 %v1235_v17, %v1234_v4  ;;  %v1241_v23 = vand.u32 2147483647, %v1240_v26  ;;  %v3802_v47 = vsel %vm3800_vm11, %v3801_v35, %v6330_v58  ;;  %v2523_v32 = vcombine.high %v5742_v31, %v5742_v31  ;;  %3242 = vbcast.lane.b32.xlu1 %v3240_v14, 256 }
 0x1a4   : > { %v6289_v56 = vpop.permute.xlu1 %2294  ;;  %v6291_v2 = vpop.permute.xlu0 %2301  ;;  %3294 = vbcast.lane.b32.xlu0 %v3292_v61, 256  ;;  %v7660_v8 = vand.u32 2147483647, %v5742_v31  ;;  %v3798_v17 = vmul.u32 %v6322_v20, %v3782_v30  ;;  %v2538_v41 = vcombine.high %v2530_v27, %v2530_v27  ;;  %v3254_v58 = vrot.slane %v6208_v15, %v5308_v12 }
 0x1a5   : > { %v2954_v35 = vsub.s32 32, %v6359_v28  ;;  %v2959_v61 = vadd.s32 127, %v2958_v51  ;;  %v2107_v4 = vsub.s32 4, %v6132_v52  ;;  %v3955_v15 = vrot.slane %v6396_v22, %v5114_v3 }
 0x1a6   : > { %vm6400_vm12 = vcmp.le.f32.partialorder %v7660_v8, 0.7853982  ;;  %v6416_v20 = vadd.s32 %v3802_v47, %v3798_v17  ;;  %v1243_v14 = vcvt.s32.f32 %v1236_v60  ;;  %v2546_v51 = vrot.slane %v2530_v27, %v7659_v63 }
 0x1a7   : > { %v2109_v26 = vsel %vm6400_vm12, %v5742_v31, %v2106_v34  ;;  %v2938_v34 = vadd.s32 %v6163_v40, %v6169_v7  ;;  %v2537_v30 = vrot.slane %v2523_v32, %v7659_v63  ;;  %v2560_v47 = vrot.slane %v2538_v41, %v7659_v63  ;;  %3256 = vbcast.lane.b32.xlu1 %v3254_v58, 256 }
 0x1a8   : > { %v6308_v29 = vpop.permute.xlu1 %2308  ;;  %v6310_v0 = vpop.permute.xlu0 %2315  ;;  %4877 = vcosq.f32 %v2109_v26  ;;  %7663 = vst [vmem:[#allocation37_spill] sm:$0xff] %v6416_v20  ;;  %3308 = vbcast.lane.b32.xlu0 %v3306_v48, 256  ;;  %v3271_v48 = vrot.slane %v6341_v6, %v5114_v3  ;;  %v6432_v17 = vmul.f32 %v1243_v14, %v1241_v23  ;;  %v2108_v40 = vsel %vm2023_vm10, %v2107_v4, %v6132_v52 }
 0x1a9   : > { %4879 = vsinq.f32 %v2109_v26  ;;  %v2956_v60 = vshrl.u32 %v2938_v34, %v2954_v35  ;;  %v2960_v26 = vshll.u32 %v2959_v61, 23  ;;  %v3804_v32 = vadd.s32 536870912, %v6416_v20 }
 0x1aa   : > { %7664 = vst [vmem:[#allocation57_spill] sm:$0xff] %v6432_v17  ;;  %v4014_v41 = vrot.slane %v6427_v44, %v5114_v3  ;;  %v2955_v23 = vshll.u32 %v6260_v10, %v6359_v28  ;;  %v2568_v58 = vcombine.high %v2546_v51, %v2546_v51  ;;  %v2539_v35 = vcombine.high %v2537_v30, %v2537_v30 }
 0x1ab   : > { %v2570_v61 = vcombine.high %v2560_v47, %v2560_v47  ;;  %3273 = vbcast.lane.b32.xlu1 %v3271_v48, 256  ;;  %v2110_v52 = vsel %vm6400_vm12, 0, %v2108_v40  ;;  %v3285_v4 = vrot.slane %v6341_v6, %v7571_v33  ;;  %v6460_v10 = vshrl.u32 %v3804_v32, 30  ;;  %v6472_v32 = vld [vmem:[%s7471_s3 + $0x58] sm:$0xff] }
 0x1ac   : > { %v6324_v13 = vpop.permute.xlu1 %2322  ;;  %v6326_v21 = vpop.permute.xlu0 %2329  ;;  %3957 = vbcast.lane.b32.xlu0 %v3955_v15, 256  ;;  %v6451_v34 = vor.u32 %v2956_v60, %v2955_v23  ;;  %v6453_v15 = vor.u32 4788187, %v2960_v26  ;;  %v2575_v37 = vrot.slane %v2546_v51, %v5114_v3  ;;  %v2553_v48 = vrot.slane %v2537_v30, %v7659_v63 }
 0x1ad   : > { %7667 = vst [vmem:[#allocation60_spill] sm:$0xff] %v6460_v10  ;;  %v3969_v40 = vrot.slane %v6396_v22, %v7571_v33  ;;  %v2579_v26 = vrot.slane %v2560_v47, %v5114_v3  ;;  %v2583_v23 = vrot.slane %v2568_v58, %v5114_v3  ;;  %v2567_v24 = vrot.slane %v2539_v35, %v7659_v63 }
 0x1ae   : > { %7665 = vst [vmem:[#allocation58_spill] sm:$0xff] %v6451_v34  ;;  %7666 = vst [vmem:[#allocation59_spill] sm:$0xff] %v6453_v15  ;;  %v2114_v14 = vadd.s32 3, %v2110_v52  ;;  %v6475_v30 = vmul.f32 %v2575_v37, %v6225_v18  ;;  %v3299_v47 = vrot.slane %v6341_v6, %v5294_v50 }
 0x1af   : > { %3287 = vbcast.lane.b32.xlu1 %v3285_v4, 256  ;;  %v6481_v58 = vmul.f32 %v2579_v26, %v6227_v53  ;;  %v6484_v35 = vmul.f32 %v2583_v23, %v6240_v57  ;;  %v2569_v4 = vcombine.high %v2553_v48, %v2553_v48  ;;  %v4073_v53 = vrot.slane %v6472_v32, %v5114_v3 }
 0x1b0   : > { %v6343_v38 = vpop.permute.xlu1 %2336  ;;  %v6345_v11 = vpop.permute.xlu0 %2343  ;;  %4016 = vbcast.lane.b32.xlu0 %v4014_v41, 256  ;;  %v2587_v41 = vrot.slane %v2570_v61, %v5114_v3  ;;  %v2115_v55 = vand.u32 3, %v2114_v14  ;;  %v2591_v61 = vrot.slane %v2553_v48, %v5114_v3  ;;  %v2571_v37 = vcombine.high %v2567_v24, %v2567_v24 }
 0x1b1   : > { %v3313_v57 = vrot.slane %v6341_v6, %v5308_v12  ;;  %v2218_v23 = vand.u32 3, %v2110_v52  ;;  %v2595_v48 = vrot.slane %v2567_v24, %v5114_v3  ;;  %v2599_v15 = vrot.slane %v2569_v4, %v5114_v3 }
 0x1b2   : > { %v4878_v60 = vpop.eup %4877  ;;  %v6491_v18 = vmul.f32 %v2587_v41, %v6242_v39  ;;  %vm2117_vm13 = vcmp.eq.s32.totalorder %v2115_v55, 0  ;;  %vm2120_vm14 = vcmp.eq.s32.totalorder %v2115_v55, 2  ;;  %vm2116_vm15 = vcmp.lt.s32.totalorder %v2115_v55, 2 }
 0x1b3   : > { %v4880_v51 = vpop.eup %4879  ;;  %v2121_v62 = vxor.u32 2147483648, %v4878_v60  ;;  %3301 = vbcast.lane.b32.xlu1 %v3299_v47, 256  ;;  %v6499_v39 = vmul.f32 %v2591_v61, %v6254_v46  ;;  %v3976_v52 = vrot.slane %v6396_v22, %v5126_v9  ;;  %vm2220_vm1 = vcmp.eq.s32.totalorder %v2218_v23, 0 }
 0x1b4   : > { %v6355_v1 = vpop.permute.xlu1 %2353  ;;  %v6357_v43 = vpop.permute.xlu0 %2360  ;;  %v2118_v20 = vxor.u32 2147483648, %v4880_v51  ;;  %3971 = vbcast.lane.b32.xlu0 %v3969_v40, 256  ;;  %vm2223_vm2 = vcmp.eq.s32.totalorder %v2218_v23, 2  ;;  %v6514_v61 = vmul.f32 %v2595_v48, %v6256_v36  ;;  %v3962_v4 = vrot.slane %v6396_v22, %v5118_v5 }
 0x1b5   : > { %v2122_v26 = vsel %vm2120_vm14, %v2121_v62, %v4880_v51  ;;  %vm2219_vm3 = vcmp.lt.s32.totalorder %v2218_v23, 2  ;;  %v6526_v36 = vmul.f32 %v2599_v15, %v6275_v45 }
 0x1b6   : > { %v2119_v14 = vsel %vm2117_vm13, %v4878_v60, %v2118_v20  ;;  %v2222_v47 = vsel %vm2220_vm1, %v4878_v60, %v2118_v20 }
 0x1b7   : > { %v2123_v40 = vsel %vm2116_vm15, %v2119_v14, %v2122_v26  ;;  %v2603_v14 = vrot.slane %v2571_v37, %v5114_v3  ;;  %3315 = vbcast.lane.b32.xlu1 %v3313_v57, 256  ;;  %v2225_v26 = vsel %vm2223_vm2, %v2121_v62, %v4880_v51  ;;  %v4087_v62 = vrot.slane %v6472_v32, %v7571_v33  ;;  %v6536_v51 = vld [vmem:[%s7471_s3 + $0x78] sm:$0xff] }
 0x1b8   : > { %v6384_v16 = vpop.permute.xlu1 %2367  ;;  %v6386_v49 = vpop.permute.xlu0 %2374  ;;  %v2124_v55 = vsel %vm2113_vm0, nan, %v2123_v40  ;;  %4075 = vbcast.lane.b32.xlu0 %v4073_v53, 256  ;;  %v2226_v37 = vsel %vm2219_vm3, %v2222_v47, %v2225_v26  ;;  %7670 = vst [vmem:[#allocation63_spill] sm:$0xff] %v6536_v51  ;;  %v4132_v47 = vrot.slane %v6536_v51, %v5114_v3  ;;  %vm1253_vm3 = vweird.f32 %v5744_v25 }
 0x1b9   : > { %v2628_v46 = vrot.slane %v2124_v55, %v7659_v63  ;;  %v2621_v24 = vcombine.high %v2124_v55, %v2124_v55  ;;  %v6529_v60 = vmul.f32 %v2603_v14, %v6277_v54  ;;  %v2227_v54 = vsel %vm2113_vm0, nan, %v2226_v37 }
 0x1ba   : > { %v4021_v55 = vrot.slane %v6427_v44, %v5118_v5 }
 0x1bb   : > { %v2644_v53 = vrot.slane %v2628_v46, %v7659_v63  ;;  %v2636_v40 = vcombine.high %v2628_v46, %v2628_v46  ;;  %v2635_v6 = vrot.slane %v2621_v24, %v7659_v63  ;;  %3964 = vbcast.lane.b32.xlu1 %v3962_v4, 256  ;;  %v4028_v24 = vrot.slane %v6427_v44, %v7571_v33 }
 0x1bc   : > { %v6412_v8 = vpop.permute.xlu1 %2381  ;;  %v6414_v59 = vpop.permute.xlu0 %2388  ;;  %3978 = vbcast.lane.b32.xlu0 %v3976_v52, 256  ;;  %v4042_v52 = vrot.slane %v6427_v44, %v5294_v50 }
 0x1bd   : > { %v2673_v57 = vrot.slane %v2644_v53, %v5114_v3  ;;  %v2658_v23 = vrot.slane %v2636_v40, %v7659_v63  ;;  %v2666_v48 = vcombine.high %v2644_v53, %v2644_v53  ;;  %v2651_v45 = vrot.slane %v2635_v6, %v7659_v63 }
 0x1be   : > { %v2637_v15 = vcombine.high %v2635_v6, %v2635_v6  ;;  %v4080_v6 = vrot.slane %v6472_v32, %v5118_v5 }
 0x1bf   : > { %v2710_v46 = vmul.f32 %v2673_v57, %v6289_v56  ;;  %v2677_v4 = vrot.slane %v2658_v23, %v5114_v3  ;;  %v2668_v26 = vcombine.high %v2658_v23, %v2658_v23  ;;  %v2734_v56 = vrot.slane %v2227_v54, %v7659_v63  ;;  %4023 = vbcast.lane.b32.xlu1 %v4021_v55, 256 }
 0x1c0   : > { %v6437_v7 = vpop.permute.xlu1 %2395  ;;  %v6439_v27 = vpop.permute.xlu0 %2402  ;;  %v2665_v53 = vrot.slane %v2637_v15, %v7659_v63  ;;  %4089 = vbcast.lane.b32.xlu0 %v4087_v62, 256  ;;  %v2681_v40 = vrot.slane %v2666_v48, %v5114_v3  ;;  %v2667_v37 = vcombine.high %v2651_v45, %v2651_v45  ;;  %v3990_v57 = vrot.slane %v6396_v22, %v7579_v42 }
 0x1c1   : > { %v2718_v48 = vadd.f32 %v2710_v46, %v6475_v30  ;;  %v2742_v46 = vcombine.high %v2734_v56, %v2734_v56 }
 0x1c2   : > { %v2712_v15 = vmul.f32 %v2681_v40, %v6308_v29  ;;  %v2669_v62 = vcombine.high %v2665_v53, %v2665_v53  ;;  %v2697_v30 = vrot.slane %v2667_v37, %v5114_v3 }
 0x1c3   : > { %4030 = vbcast.lane.b32.xlu1 %v4028_v24, 256 }
 0x1c4   : > { %v6456_v19 = vpop.permute.xlu1 %2412  ;;  %v6458_v28 = vpop.permute.xlu0 %2419  ;;  %4044 = vbcast.lane.b32.xlu0 %v4042_v52, 256  ;;  %v2764_v52 = vrot.slane %v2742_v46, %v7659_v63 }
 0x1c7   : > { %4082 = vbcast.lane.b32.xlu1 %v4080_v6, 256 }
 0x1c8   : > { %v6486_v34 = vpop.permute.xlu1 %2426  ;;  %v6488_v17 = vpop.permute.xlu0 %2433  ;;  %4134 = vbcast.lane.b32.xlu0 %v4132_v47, 256 }
 0x1cc   : > { %v6503_v41 = vpop.permute.xlu1 %2440  ;;  %v6505_v10 = vpop.permute.xlu0 %2447  ;;  %3992 = vbcast.lane.b32.xlu0 %v3990_v57, 256  ;;  %v7674_v57 = vrot.slane %v6427_v44, %v5126_v9 }
 0x1cd   : > { %7668 = vst [vmem:[#allocation61_spill] sm:$0xff] %v6505_v10 }
 0x1ce   : > { %4037 = vbcast.lane.b32.xlu1 %v7674_v57, 256 }
 0x1d0   : > { %v6521_v10 = vpop.permute.xlu1 %2454  ;;  %v6523_v20 = vpop.permute.xlu0 %2461 }
 0x1d1   : > { %7669 = vst [vmem:[#allocation62_spill] sm:$0xff] %v6523_v20  ;;  %v2750_v20 = vrot.slane %v2734_v56, %v7659_v63 }
 0x1d3   : > { %v2779_v29 = vrot.slane %v2750_v20, %v5114_v3  ;;  %v2772_v40 = vcombine.high %v2750_v20, %v2750_v20 }
 0x1d4   : > { %v6554_v14 = vpop.permute.xlu1 %2471  ;;  %v6556_v31 = vpop.permute.xlu0 %2478 }
 0x1d5   : > { %7671 = vst [vmem:[#allocation64_spill] sm:$0xff] %v6554_v14  ;;  %7672 = vst [vmem:[#allocation65_spill] sm:$0xff] %v6556_v31  ;;  %v2711_v14 = vmul.f32 %v2677_v4, %v6291_v2  ;;  %v2689_v31 = vrot.slane %v2651_v45, %v5114_v3  ;;  %v2685_v45 = vrot.slane %v2668_v26, %v5114_v3 }
 0x1d6   : > { %v2693_v4 = vrot.slane %v2665_v53, %v5114_v3  ;;  %v2727_v26 = vcombine.high %v2227_v54, %v2227_v54  ;;  %v2787_v53 = vrot.slane %v2772_v40, %v5114_v3  ;;  %v2774_v54 = vcombine.high %v2764_v52, %v2764_v52 }
 0x1d7   : > { %v2714_v55 = vmul.f32 %v2689_v31, %v6324_v13  ;;  %v2719_v33 = vadd.f32 %v2711_v14, %v6481_v58  ;;  %v2713_v23 = vmul.f32 %v2685_v45, %v6310_v0  ;;  %v2720_v13 = vadd.f32 %v2712_v15, %v6484_v35 }
 0x1d8   : > { %v6577_v51 = vpop.permute.xlu1 %2485  ;;  %v6579_v2 = vpop.permute.xlu0 %2492  ;;  %v2816_v31 = vmul.f32 %v2779_v29, %v6355_v1  ;;  %v2716_v0 = vmul.f32 %v2697_v30, %v6343_v38  ;;  %v2741_v20 = vrot.slane %v2727_v26, %v7659_v63  ;;  %v2783_v35 = vrot.slane %v2764_v52, %v5114_v3 }
 0x1d9   : > { %7673 = vst [vmem:[#allocation66_spill] sm:$0xff] %v6579_v2  ;;  %v2715_v2 = vmul.f32 %v2693_v4, %v6326_v21  ;;  %v2722_v58 = vadd.f32 %v2714_v55, %v6499_v39  ;;  %v2701_v21 = vrot.slane %v2669_v62, %v5114_v3  ;;  %v2818_v1 = vmul.f32 %v2787_v53, %v6384_v16 }
 0x1da   : > { %v2824_v24 = vadd.f32 %v2816_v31, %v2718_v48  ;;  %v2721_v14 = vadd.f32 %v2713_v23, %v6491_v18  ;;  %v2757_v45 = vrot.slane %v2741_v20, %v7659_v63  ;;  %v2743_v39 = vcombine.high %v2741_v20, %v2741_v20 }
 0x1db   : > { %v2723_v15 = vadd.f32 %v2715_v2, %v6514_v61  ;;  %v2817_v38 = vmul.f32 %v2783_v35, %v6357_v43  ;;  %v2791_v62 = vrot.slane %v2774_v54, %v5114_v3  ;;  %v2826_v55 = vadd.f32 %v2818_v1, %v2720_v13 }
 0x1dc   : > { %v6593_v37 = vpop.permute.xlu1 %2499  ;;  %v6595_v56 = vpop.permute.xlu0 %2506  ;;  %v6609_v47 = vadd.f32 %v2824_v24, %v6456_v19  ;;  %v2717_v16 = vmul.f32 %v2701_v21, %v6345_v11  ;;  %v2795_v18 = vrot.slane %v2757_v45, %v5114_v3  ;;  %v2771_v61 = vrot.slane %v2743_v39, %v7659_v63  ;;  %v7677_v21 = vld [vmem:[#allocation59_spill] sm:$0xff] }
 0x1dd   : > { %v2773_v23 = vcombine.high %v2757_v45, %v2757_v45  ;;  %v2819_v43 = vmul.f32 %v2791_v62, %v6386_v49  ;;  %v2825_v19 = vadd.f32 %v2817_v38, %v2719_v33  ;;  %v6622_v48 = vadd.f32 %v2826_v55, %v6486_v34  ;;  %v7681_v45 = vld [vmem:[#allocation57_spill] sm:$0xff]  ;;  %v7683_v62 = vld [vmem:[#allocation58_spill] sm:$0xff] }
 0x1de   : > { %4881 = vtanh.f32 %v6609_v47  ;;  %v2820_v2 = vmul.f32 %v2795_v18, %v6412_v8  ;;  %v2799_v11 = vrot.slane %v2771_v61, %v5114_v3  ;;  %v2775_v29 = vcombine.high %v2771_v61, %v2771_v61 }
 0x1df   : > { %v2803_v30 = vrot.slane %v2773_v23, %v5114_v3  ;;  %v2724_v46 = vadd.f32 %v2716_v0, %v6526_v36  ;;  %v6632_v49 = vadd.f32 %v2825_v19, %v6458_v28  ;;  %4883 = vtanh.f32 %v6622_v48  ;;  %v7688_v23 = vld [vmem:[#allocation62_spill] sm:$0xff] }
 0x1e0   : > { %v6611_v4 = vpop.permute.xlu0 %2520  ;;  %v6617_v6 = vpop.permute.xlu1 %2513  ;;  %v2827_v33 = vadd.f32 %v2819_v43, %v2721_v14  ;;  %v2821_v8 = vmul.f32 %v2799_v11, %v6414_v59  ;;  %v2807_v26 = vrot.slane %v2775_v29, %v5114_v3  ;;  %v7675_v13 = vrot.slane %v6472_v32, %v5294_v50  ;;  %v7689_v11 = vld [vmem:[#allocation37_spill] sm:$0xff]  ;;  %v7690_v29 = vld [vmem:[#allocation46_spill] sm:$0xff] }
 0x1e1   : > { %v2822_v40 = vmul.f32 %v2803_v30, %v6437_v7  ;;  %v2828_v31 = vadd.f32 %v2820_v2, %v2722_v58  ;;  %v2725_v36 = vadd.f32 %v2717_v16, %v6529_v60  ;;  %4885 = vtanh.f32 %v6632_v49 }
 0x1e2   : > { %4103 = vbcast.lane.b32.xlu0 %v7675_v13, 256  ;;  %v6646_v28 = vadd.f32 %v2827_v33, %v6488_v17  ;;  %v4094_v52 = vrot.slane %v6472_v32, %v5126_v9  ;;  %v2823_v59 = vmul.f32 %v2807_v26, %v6439_v27  ;;  %v7676_v7 = vrot.slane %v6396_v22, %v5294_v50  ;;  %v7678_v17 = vld [vmem:[#allocation60_spill] sm:$0xff] }
 0x1e3   : > { %v6655_v53 = vadd.f32 %v2828_v31, %v6503_v41  ;;  %v2829_v58 = vadd.f32 %v2821_v8, %v2723_v15  ;;  %v2830_v0 = vadd.f32 %v2822_v40, %v2724_v46  ;;  %v2962_v20 = vand.u32 2147483647, %v7677_v21  ;;  %v7680_v41 = vld [vmem:[#allocation61_spill] sm:$0xff]  ;;  %v7692_v40 = vld [vmem:[#allocation22_spill] sm:$0xff] }
 0x1e4   : > { %v6635_v34 = vpop.permute.xlu0 %3103  ;;  %3985 = vbcast.lane.b32.xlu1 %v7676_v7, 256  ;;  %v6657_v60 = vpop.permute.xlu1 %3096  ;;  %v3806_v35 = vshll.u32 %v7678_v17, 30  ;;  %4887 = vtanh.f32 %v6646_v28  ;;  %v4108_v27 = vrot.slane %v6472_v32, %v7579_v42  ;;  %v7679_v54 = vrot.slane %v6396_v22, %v5308_v12 }
 0x1e5   : > { %4889 = vtanh.f32 %v6655_v53  ;;  %v6671_v24 = vadd.f32 %v2829_v58, %v7680_v41  ;;  %v6674_v14 = vadd.f32 %v2830_v0, %v6521_v10  ;;  %v2831_v15 = vadd.f32 %v2823_v59, %v2725_v36  ;;  %v7687_v10 = vld [vmem:[#allocation63_spill] sm:$0xff] }
 0x1e6   : > { %3999 = vbcast.lane.b32.xlu0 %v7679_v54, 256  ;;  %v7682_v39 = vxor.u32 2147483648, %v7681_v45  ;;  %v2964_v55 = vcvt.s32.f32 %v7683_v62  ;;  %v7684_v16 = vand.u32 2147483647, %v5744_v25  ;;  %v4139_v61 = vrot.slane %v7687_v10, %v5118_v5 }
 0x1e7   : > { %4891 = vtanh.f32 %v6671_v24  ;;  %v6692_v43 = vadd.f32 %v2831_v15, %v7688_v23  ;;  %v6695_v30 = vsub.s32 %v7689_v11, %v3806_v35  ;;  %v7691_v57 = vsub.s32 4, %v7690_v29 }
 0x1e8   : > { %v6664_v1 = vpop.permute.xlu0 %3117  ;;  %v1246_v38 = vsel %vm1163_vm4, %v7682_v39, %v7681_v45  ;;  %vm6684_vm5 = vcmp.le.f32.partialorder %v7684_v16, 0.7853982  ;;  %4096 = vbcast.lane.b32.xlu1 %v4094_v52, 256  ;;  %v4882_v19 = vpop.eup %4881  ;;  %v2965_v2 = vmul.f32 %v2964_v55, %v2962_v20  ;;  %4893 = vtanh.f32 %v6674_v14  ;;  %v7693_v20 = vld [vmem:[#allocation64_spill] sm:$0xff]  ;;  %v7695_v55 = vld [vmem:[#allocation7_spill] sm:$0xff] }
 0x1e9   : > { %v1248_v46 = vsel %vm1163_vm4, %v7691_v57, %v7690_v29  ;;  %v1249_v8 = vsel %vm6684_vm5, %v5744_v25, %v1246_v38  ;;  %4895 = vtanh.f32 %v6692_v43  ;;  %v4004_v26 = vrot.slane %v6396_v22, %v7692_v40  ;;  %v6711_v31 = vpop.permute.xlu1 %3110  ;;  %v4884_v36 = vpop.eup %4883 }
 0x1ea   : > { %4110 = vbcast.lane.b32.xlu0 %v4108_v27, 256  ;;  %v2848_v13 = vadd.f32 1.0, %v4882_v19  ;;  %v6715_v52 = vsel %vm6684_vm5, 0, %v1248_v46  ;;  %v4049_v59 = vrot.slane %v6427_v44, %v7579_v42  ;;  %v2850_v58 = vadd.f32 1.0, %v4884_v36 }
 0x1eb   : > { %v4886_v0 = vpop.eup %4885  ;;  %4897 = vsinq.f32 %v1249_v8  ;;  %v2966_v21 = vxor.u32 2147483648, %v2965_v2  ;;  %v3809_v22 = vsub.s32 0, %v6695_v30  ;;  %v4115_v54 = vrot.slane %v6472_v32, %v5308_v12 }
 0x1ec   : > { %v6703_v33 = vpop.permute.xlu0 %3131  ;;  %4141 = vbcast.lane.b32.xlu1 %v4139_v61, 256  ;;  %v2856_v7 = vmul.f32 %v2848_v13, %v6609_v47  ;;  %v2849_v27 = vadd.f32 1.0, %v4886_v0  ;;  %v2858_v41 = vmul.f32 %v2850_v58, %v6622_v48  ;;  %4899 = vcosq.f32 %v1249_v8  ;;  %v7694_v47 = vld [vmem:[#allocation28_spill] sm:$0xff] }
 0x1ed   : > { %vm2884_vm6 = vcmp.lt.s32.totalorder %v7694_v47, 0  ;;  %v1254_v39 = vadd.s32 3, %v6715_v52  ;;  %v4146_v16 = vrot.slane %v7687_v10, %v7695_v55  ;;  %v6733_v23 = vpop.permute.xlu1 %3124  ;;  %v6738_v19 = vmin.u32 %v3809_v22, %v6695_v30 }
 0x1ee   : > { %4006 = vbcast.lane.b32.xlu0 %v4004_v26, 256  ;;  %v2864_v35 = vmul.f32 %v2856_v7, %v7693_v20  ;;  %v4888_v45 = vpop.eup %4887  ;;  %v2857_v62 = vmul.f32 %v2849_v27, %v6632_v49  ;;  %v2866_v18 = vmul.f32 %v2858_v41, %v6577_v51  ;;  %v2967_v48 = vsel %vm2884_vm6, %v2966_v21, %v2965_v2  ;;  %v7696_v49 = vld [vmem:[#allocation65_spill] sm:$0xff] }
 0x1ef   : > { %v4890_v38 = vpop.eup %4889  ;;  %v2851_v61 = vadd.f32 1.0, %v4888_v45  ;;  %v3391_v29 = vrot.slane %v7694_v47, %v7659_v63  ;;  %v4122_v51 = vrot.slane %v6472_v32, %v7692_v40  ;;  %v4056_v26 = vrot.slane %v6427_v44, %v5308_v12 }
 0x1f0   : > { %v6725_v15 = vpop.permute.xlu0 %3145  ;;  %4051 = vbcast.lane.b32.xlu1 %v4049_v59, 256  ;;  %v2852_v11 = vadd.f32 1.0, %v4890_v38  ;;  %v2865_v46 = vmul.f32 %v2857_v62, %v7696_v49  ;;  %v7697_v59 = vld [vmem:[#allocation56_spill] sm:$0xff]  ;;  %v4153_v58 = vrot.slane %v7687_v10, %v5126_v9  ;;  %v3384_v32 = vcombine.high %v7694_v47, %v7694_v47 }
 0x1f1   : > { %v4892_v57 = vpop.eup %4891  ;;  %v2859_v8 = vmul.f32 %v2851_v61, %v6646_v28  ;;  %v3320_v7 = vrot.slane %v7697_v59, %v7692_v40  ;;  %v7698_v28 = vld [vmem:[#allocation66_spill] sm:$0xff]  ;;  %v3399_v45 = vcombine.high %v3391_v29, %v3391_v29  ;;  %v7699_v61 = vand.u32 2147483647, %v7694_v47 }
 0x1f2   : > { %4117 = vbcast.lane.b32.xlu0 %v4115_v54, 256  ;;  %v4894_v2 = vpop.eup %4893  ;;  %v2860_v13 = vmul.f32 %v2852_v11, %v6655_v53  ;;  %v2853_v36 = vadd.f32 1.0, %v4892_v57  ;;  %v2872_v21 = vadd.f32 %v2865_v46, %v2864_v35  ;;  %v3407_v35 = vrot.slane %v3391_v29, %v7659_v63 }
 0x1f3   : > { %v4896_v0 = vpop.eup %4895  ;;  %v2867_v22 = vmul.f32 %v2859_v8, %v7698_v28  ;;  %v2854_v20 = vadd.f32 1.0, %v4894_v2  ;;  %vm6766_vm7 = vcmp.le.f32.partialorder %v7699_v61, 0.7853982  ;;  %v3398_v8 = vrot.slane %v3384_v32, %v7659_v63 }
 0x1f4   : > { %4148 = vbcast.lane.b32.xlu1 %v4146_v16, 256  ;;  %v6756_v27 = vpop.permute.xlu0 %3162  ;;  %v2868_v53 = vmul.f32 %v2860_v13, %v6593_v37  ;;  %v2861_v54 = vmul.f32 %v2853_v36, %v6671_v24  ;;  %v2855_v41 = vadd.f32 1.0, %v4896_v0  ;;  %v2873_v38 = vadd.f32 %v2872_v21, %v2866_v18  ;;  %v6762_v16 = vpop.permute.xlu1 %3138  ;;  %v7702_v18 = vld [vmem:[#allocation53_spill] sm:$0xff] }
 0x1f5   : > { %v2862_v62 = vmul.f32 %v2854_v20, %v6674_v14  ;;  %v6770_v57 = vpop.eup %4897  ;;  %v2968_v49 = vsub.s32 4, %v7702_v18  ;;  %v2970_v14 = vsel %vm6766_vm7, %v7694_v47, %v2967_v48  ;;  %v4181_v48 = vrot.slane %v7687_v10, %v7692_v40 }
 0x1f6   : > { %4124 = vbcast.lane.b32.xlu0 %v4122_v51, 256  ;;  %v2869_v37 = vmul.f32 %v2861_v54, %v6595_v56  ;;  %v2863_v24 = vmul.f32 %v2855_v41, %v6692_v43  ;;  %v2874_v29 = vadd.f32 %v2873_v38, %v2867_v22  ;;  %4901 = vcosq.f32 %v2970_v14  ;;  %v6780_v51 = vpop.eup %4899 }
 0x1f7   : > { %v2870_v46 = vmul.f32 %v2862_v62, %v6617_v6  ;;  %v3421_v56 = vrot.slane %v3399_v45, %v7659_v63  ;;  %v2969_v43 = vsel %vm2884_vm6, %v2968_v49, %v7702_v18  ;;  %4903 = vsinq.f32 %v2970_v14  ;;  %v6792_v6 = vld [vmem:[%s7471_s3 + $0x90] sm:$0xff] }
 0x1f8   : > { %4058 = vbcast.lane.b32.xlu1 %v4056_v26, 256  ;;  %v2871_v2 = vmul.f32 %v2863_v24, %v6611_v4  ;;  %v2875_v13 = vadd.f32 %v2874_v29, %v2868_v53  ;;  %v2971_v4 = vsel %vm6766_vm7, 0, %v2969_v43  ;;  %v6796_v26 = vpop.permute.xlu0 %3176  ;;  %v6798_v36 = vand.u32 3, %v1254_v39  ;;  %v6808_v20 = vpop.permute.xlu1 %3155 }
 0x1f9   : > { %v3429_v0 = vcombine.high %v3407_v35, %v3407_v35  ;;  %v4063_v28 = vrot.slane %v6427_v44, %v7692_v40  ;;  %v3400_v22 = vcombine.high %v3398_v8, %v3398_v8  ;;  %v2975_v32 = vadd.s32 3, %v2971_v4 }
 0x1fa   : > { %3322 = vbcast.lane.b32.xlu0 %v3320_v7, 256  ;;  %v6804_v7 = vld [vmem:[%s7471_s3 + $0x98] sm:$0xff]  ;;  %v2876_v21 = vadd.f32 %v2875_v13, %v2869_v37  ;;  %v3337_v54 = vrot.slane %v6792_v6, %v5118_v5  ;;  %v3431_v41 = vcombine.high %v3421_v56, %v3421_v56  ;;  %v4167_v38 = vrot.slane %v7687_v10, %v7579_v42 }
 0x1fb   : > { %v4191_v44 = vrot.slane %v6804_v7, %v5114_v3  ;;  %v3436_v62 = vrot.slane %v3407_v35, %v5114_v3  ;;  %v3440_v61 = vrot.slane %v3421_v56, %v5114_v3  ;;  %v3444_v11 = vrot.slane %v3429_v0, %v5114_v3 }
 0x1fc   : > { %4155 = vbcast.lane.b32.xlu1 %v4153_v58, 256  ;;  %v2877_v45 = vadd.f32 %v2876_v21, %v2870_v46  ;;  %v4160_v58 = vrot.slane %v7687_v10, %v5294_v50  ;;  %v3414_v37 = vrot.slane %v3398_v8, %v7659_v63  ;;  %v3428_v18 = vrot.slane %v3400_v22, %v7659_v63  ;;  %v6827_v14 = vpop.permute.xlu0 %3190  ;;  %v6847_v0 = vpop.permute.xlu1 %3169 }
 0x1fd   : > { %v2976_v49 = vand.u32 3, %v2975_v32  ;;  %v3079_v29 = vand.u32 3, %v2971_v4  ;;  %v3448_v46 = vrot.slane %v3431_v41, %v5114_v3  ;;  %v3351_v35 = vrot.slane %v6792_v6, %v5126_v9 }
 0x1fe   : > { %4183 = vbcast.lane.b32.xlu0 %v4181_v48, 256  ;;  %v6824_v24 = vadd.f32 %v2877_v45, %v2871_v2  ;;  %v4174_v56 = vrot.slane %v7687_v10, %v5308_v12  ;;  %v3358_v8 = vrot.slane %v6792_v6, %v5294_v50  ;;  %v6837_v43 = vmul.f32 %v3436_v62, %v6657_v60 }
 0x1ff   : > { %v6840_v13 = vmul.f32 %v3440_v61, %v6635_v34  ;;  %v6843_v48 = vmul.f32 %v3444_v11, %v6711_v31  ;;  %v3330_v4 = vrot.slane %v6792_v6, %v5114_v3  ;;  %v6850_v21 = vmul.f32 %v3448_v46, %v6664_v1 }
 0x200   : > { %7703 = vst [vmem:[#allocation59_spill] sm:$0xff] %v6824_v24  ;;  %4065 = vbcast.lane.b32.xlu1 %v4063_v28, 256  ;;  %v4902_v2 = vpop.eup %4901  ;;  %v3452_v28 = vrot.slane %v3414_v37, %v5114_v3  ;;  %v3430_v60 = vcombine.high %v3414_v37, %v3414_v37  ;;  %v3432_v34 = vcombine.high %v3428_v18, %v3428_v18  ;;  %vm2981_vm8 = vcmp.eq.s32.totalorder %v2976_v49, 2  ;;  %v6853_v45 = vpop.permute.xlu0 %3204 }
 0x201   : > { %v4904_v10 = vpop.eup %4903  ;;  %v2982_v22 = vxor.u32 2147483648, %v4902_v2  ;;  %vm3084_vm9 = vcmp.eq.s32.totalorder %v3079_v29, 2  ;;  %vm2978_vm10 = vcmp.eq.s32.totalorder %v2976_v49, 0  ;;  %vm3081_vm11 = vcmp.eq.s32.totalorder %v3079_v29, 0  ;;  %v3184_v61 = vpop.permute.xlu1 %3183 }
 0x202   : > { %3339 = vbcast.lane.b32.xlu0 %v3337_v54, 256  ;;  %v2979_v32 = vxor.u32 2147483648, %v4904_v10  ;;  %vm2977_vm12 = vcmp.lt.s32.totalorder %v2976_v49, 2  ;;  %vm3080_vm13 = vcmp.lt.s32.totalorder %v3079_v29, 2  ;;  %v3456_v62 = vrot.slane %v3428_v18, %v5114_v3 }
 0x203   : > { %v2983_v31 = vsel %vm2981_vm8, %v2982_v22, %v4904_v10  ;;  %v3086_v54 = vsel %vm3084_vm9, %v2982_v22, %v4904_v10  ;;  %vm2974_vm14 = vweird.f32 %v7694_v47  ;;  %v3477_v37 = vmul.f32 %v3452_v28, %v6733_v23 }
 0x204   : > { %4162 = vbcast.lane.b32.xlu1 %v4160_v58, 256  ;;  %v2980_v41 = vsel %vm2978_vm10, %v4902_v2, %v2979_v32  ;;  %v3083_v1 = vsel %vm3081_vm11, %v4902_v2, %v2979_v32  ;;  %v3460_v46 = vrot.slane %v3430_v60, %v5114_v3  ;;  %v6860_v49 = vmul.f32 %v3456_v62, %v6703_v33 }
 0x205   : > { %v2984_v58 = vsel %vm2977_vm12, %v2980_v41, %v2983_v31  ;;  %v3087_v11 = vsel %vm3080_vm13, %v3083_v1, %v3086_v54  ;;  %v3464_v22 = vrot.slane %v3432_v34, %v5114_v3  ;;  %v3365_v23 = vrot.slane %v6792_v6, %v7579_v42  ;;  %v3198_v32 = vpop.permute.xlu1 %3197  ;;  %v3222_v54 = vpop.permute.xlu0 %3221 }
 0x206   : > { %4193 = vbcast.lane.b32.xlu0 %v4191_v44, 256  ;;  %v2985_v10 = vsel %vm2974_vm14, nan, %v2984_v58  ;;  %v3088_v44 = vsel %vm2974_vm14, nan, %v3087_v11  ;;  %v3479_v47 = vmul.f32 %v3460_v46, %v6762_v16  ;;  %v3372_v16 = vrot.slane %v6792_v6, %v5308_v12 }
 0x207   : > { %v3489_v29 = vrot.slane %v2985_v10, %v7659_v63  ;;  %v3482_v2 = vcombine.high %v2985_v10, %v2985_v10  ;;  %v3595_v18 = vrot.slane %v3088_v44, %v7659_v63  ;;  %v4198_v34 = vrot.slane %v6804_v7, %v5118_v5 }
 0x208   : > { %4169 = vbcast.lane.b32.xlu1 %v4167_v38, 256  ;;  %v3588_v38 = vcombine.high %v3088_v44, %v3088_v44  ;;  %vm1257_vm15 = vcmp.eq.s32.totalorder %v6798_v36, 0  ;;  %vm1260_vm0 = vcmp.eq.s32.totalorder %v6798_v36, 2  ;;  %vm1256_vm1 = vcmp.lt.s32.totalorder %v6798_v36, 2 }
 0x209   : > { %v3505_v28 = vrot.slane %v3489_v29, %v7659_v63  ;;  %v3497_v60 = vcombine.high %v3489_v29, %v3489_v29  ;;  %v3496_v33 = vrot.slane %v3482_v2, %v7659_v63  ;;  %v6871_v31 = vrot.slane %v3595_v18, %v7659_v63  ;;  %v3236_v39 = vpop.permute.xlu0 %3235 }
 0x20a   : > { %3353 = vbcast.lane.b32.xlu0 %v3351_v35, 256  ;;  %v3344_v35 = vrot.slane %v6792_v6, %v7695_v55  ;;  %v3603_v41 = vcombine.high %v3595_v18, %v3595_v18  ;;  %v6886_v44 = vrot.slane %v3588_v38, %v7659_v63 }
 0x20b   : > { %v3534_v1 = vrot.slane %v3505_v28, %v5114_v3  ;;  %v3519_v62 = vrot.slane %v3497_v60, %v7659_v63  ;;  %v3527_v58 = vcombine.high %v3505_v28, %v3505_v28  ;;  %v3512_v11 = vrot.slane %v3496_v33, %v7659_v63  ;;  %v3215_v28 = vpop.permute.xlu1 %3214 }
 0x20c   : > { %4176 = vbcast.lane.b32.xlu1 %v4174_v56, 256  ;;  %v3498_v56 = vcombine.high %v3496_v33, %v3496_v33  ;;  %v3640_v46 = vrot.slane %v6871_v31, %v5114_v3  ;;  %v3625_v10 = vrot.slane %v3603_v41, %v7659_v63  ;;  %v3633_v36 = vcombine.high %v6871_v31, %v6871_v31 }
 0x20d   : > { %v3571_v5 = vmul.f32 %v3534_v1, %v6808_v20  ;;  %v3538_v29 = vrot.slane %v3519_v62, %v5114_v3  ;;  %v3542_v2 = vrot.slane %v3527_v58, %v5114_v3  ;;  %v3529_v18 = vcombine.high %v3519_v62, %v3519_v62 }
 0x20e   : > { %3360 = vbcast.lane.b32.xlu0 %v3358_v8, 256  ;;  %v3550_v8 = vrot.slane %v3512_v11, %v5114_v3  ;;  %v3526_v60 = vrot.slane %v3498_v56, %v7659_v63  ;;  %v3528_v33 = vcombine.high %v3512_v11, %v3512_v11  ;;  %v3677_v41 = vmul.f32 %v3640_v46, %v3215_v28 }
 0x20f   : > { %v3579_v38 = vadd.f32 %v3571_v5, %v6837_v43  ;;  %v3572_v20 = vmul.f32 %v3538_v29, %v6756_v27  ;;  %v3573_v1 = vmul.f32 %v3542_v2, %v6847_v0  ;;  %v3546_v58 = vrot.slane %v3529_v18, %v5114_v3 }
 0x210   : > { %3332 = vbcast.lane.b32.xlu1 %v3330_v4, 256  ;;  %v3575_v62 = vmul.f32 %v3550_v8, %v3184_v61  ;;  %v3554_v53 = vrot.slane %v3526_v60, %v5114_v3  ;;  %v3558_v4 = vrot.slane %v3528_v33, %v5114_v3  ;;  %v3530_v59 = vcombine.high %v3526_v60, %v3526_v60 }
 0x211   : > { %v3580_v56 = vadd.f32 %v3572_v20, %v6840_v13  ;;  %v6904_v11 = vadd.f32 %v3573_v1, %v6843_v48  ;;  %v3574_v43 = vmul.f32 %v3546_v58, %v6796_v26  ;;  %v3644_v27 = vrot.slane %v3625_v10, %v5114_v3 }
 0x212   : > { %3367 = vbcast.lane.b32.xlu0 %v3365_v23, 256  ;;  %v6908_v0 = vadd.f32 %v3575_v62, %v3477_v37  ;;  %v3576_v61 = vmul.f32 %v3554_v53, %v6827_v14  ;;  %v3577_v23 = vmul.f32 %v3558_v4, %v3198_v32  ;;  %v3562_v46 = vrot.slane %v3530_v59, %v5114_v3 }
 0x213   : > { %v3480_v5 = vmul.f32 %v3464_v22, %v6725_v15  ;;  %v3582_v29 = vadd.f32 %v3574_v43, %v6850_v21  ;;  %v3678_v13 = vmul.f32 %v3644_v27, %v3222_v54  ;;  %v3635_v2 = vcombine.high %v3625_v10, %v3625_v10  ;;  %v3250_v22 = vpop.permute.xlu0 %3249 }
 0x214   : > { %3346 = vbcast.lane.b32.xlu1 %v3344_v35, 256  ;;  %v3584_v48 = vadd.f32 %v3576_v61, %v6860_v49  ;;  %v3379_v26 = vrot.slane %v6792_v6, %v7692_v40  ;;  %v6917_v35 = vadd.f32 %v3577_v23, %v3479_v47  ;;  %v3578_v37 = vmul.f32 %v3562_v46, %v6853_v45 }
 0x215   : > { %v3652_v53 = vrot.slane %v3635_v2, %v5114_v3  ;;  %v3604_v59 = vcombine.high %v6886_v44, %v6886_v44  ;;  %v6923_v15 = vadd.f32 %v3677_v41, %v3579_v38  ;;  %v3686_v14 = vadd.f32 %v3678_v13, %v3580_v56 }
 0x216   : > { %3374 = vbcast.lane.b32.xlu0 %v3372_v16, 256  ;;  %v4205_v21 = vrot.slane %v6804_v7, %v7695_v55  ;;  %v3586_v49 = vadd.f32 %v3578_v37, %v3480_v5  ;;  %v7704_v47 = vclz %v6738_v19  ;;  %v7705_v16 = vxor.u32 2147483648, %v6770_v57  ;;  %v3229_v5 = vpop.permute.xlu1 %3228 }
 0x217   : > { %v3680_v32 = vmul.f32 %v3652_v53, %v3236_v39  ;;  %v3632_v6 = vrot.slane %v3604_v59, %v7659_v63  ;;  %v7706_v55 = vxor.u32 2147483648, %v6780_v51  ;;  %v4602_v39 = vld [vmem:[%s7472_s4] sm:$0xff]  ;;  %v1358_v18 = vand.u32 3, %v6715_v52  ;;  %v3264_v33 = vpop.permute.xlu0 %3263 }
 0x218   : > { %4200 = vbcast.lane.b32.xlu1 %v4198_v34, 256  ;;  %v4757_v45 = vadd.s32 4294967294, %v7704_v47  ;;  %v1259_v34 = vsel %vm1257_vm15, %v6780_v51, %v7705_v16  ;;  %v4212_v28 = vrot.slane %v6804_v7, %v5126_v9  ;;  %v4219_v38 = vrot.slane %v6804_v7, %v5294_v50 }
 0x219   : > { %v1262_v54 = vsel %vm1260_vm0, %v7706_v55, %v6770_v57  ;;  %v3660_v19 = vrot.slane %v3632_v6, %v5114_v3  ;;  %v3688_v10 = vadd.f32 %v3680_v32, %v3582_v29  ;;  %vm1360_vm4 = vcmp.eq.s32.totalorder %v1358_v18, 0 }
 0x21a   : > { %3381 = vbcast.lane.b32.xlu0 %v3379_v26, 256  ;;  %vm4758_vm2 = vcmp.lt.s32.totalorder %v4757_v45, 0  ;;  %v1263_v60 = vsel %vm1256_vm1, %v1259_v34, %v1262_v54  ;;  %v3636_v52 = vcombine.high %v3632_v6, %v3632_v6  ;;  %vm1363_vm5 = vcmp.eq.s32.totalorder %v1358_v18, 2  ;;  %v3243_v32 = vpop.permute.xlu1 %3242  ;;  %v7709_v34 = vld [vmem:[#allocation55_spill] sm:$0xff] }
 0x21b   : > { %v3682_v8 = vmul.f32 %v3660_v19, %v3250_v22  ;;  %v6949_v20 = vsel %vm4758_vm2, 0, %v4757_v45  ;;  %v6953_v9 = vsel %vm1253_vm3, nan, %v1263_v60  ;;  %v7707_v1 = vmov %v7705_v16  ;;  %v3281_v61 = vpop.permute.xlu0 %3280 }
 0x21c   : > { %4207 = vbcast.lane.b32.xlu1 %v4205_v21, 256  ;;  %v1362_v58 = vsel %vm1360_vm4, %v6780_v51, %v7707_v1  ;;  %v7708_v62 = vmov %v7706_v55  ;;  %v1669_v50 = vrot.slane %v5744_v25, %v7659_v63  ;;  %vm1359_vm6 = vcmp.lt.s32.totalorder %v1358_v18, 2  ;;  %v7710_v55 = vld [vmem:[#allocation54_spill] sm:$0xff] }
 0x21d   : > { %v3690_v41 = vadd.f32 %v3682_v8, %v3584_v48  ;;  %v1365_v4 = vsel %vm1363_vm5, %v7708_v62, %v6770_v57  ;;  %v3819_v56 = vsub.s32 4294967266, %v6949_v20  ;;  %v1767_v43 = vrot.slane %v6953_v9, %v7659_v63 }
 0x21e   : > { %4605 = vperm.xlu0 %4839, %v4602_v39   ;;  %v4226_v31 = vrot.slane %v6804_v7, %v7579_v42  ;;  %v3668_v27 = vrot.slane %v3636_v52, %v5114_v3  ;;  %v1366_v23 = vsel %vm1359_vm6, %v1362_v58, %v1365_v4  ;;  %v3648_v51 = vrot.slane %v3633_v36, %v5114_v3 }
 0x21f   : > { %v3618_v57 = vrot.slane %v6886_v44, %v7659_v63  ;;  %v6974_v46 = vadd.f32 %v3686_v14, %v3281_v61  ;;  %v1677_v13 = vcombine.high %v1669_v50, %v1669_v50  ;;  %v3820_v48 = vadd.s32 127, %v3819_v56  ;;  %v3295_v53 = vpop.permute.xlu0 %3294 }
 0x220   : > { %4214 = vbcast.lane.b32.xlu1 %v4212_v28, 256  ;;  %v3684_v29 = vmul.f32 %v3668_v27, %v3264_v33  ;;  %v3679_v2 = vmul.f32 %v3648_v51, %v3229_v5  ;;  %v1775_v26 = vcombine.high %v1767_v43, %v1767_v43  ;;  %v6978_v42 = vsel %vm1253_vm3, nan, %v1366_v23  ;;  %v3257_v33 = vpop.permute.xlu1 %3256 }
 0x221   : > { %v4233_v37 = vrot.slane %v6804_v7, %v5308_v12  ;;  %v3656_v59 = vrot.slane %v3618_v57, %v5114_v3  ;;  %v3634_v44 = vcombine.high %v3618_v57, %v3618_v57  ;;  %v6984_v21 = vadd.f32 %v3688_v10, %v3295_v53  ;;  %v7713_v57 = vld [vmem:[#allocation17_spill] sm:$0xff] }
 0x222   : > { %v3687_v14 = vadd.f32 %v3679_v2, %v6904_v11  ;;  %v1662_v22 = vcombine.high %v5744_v25, %v5744_v25  ;;  %v6988_v6 = vadd.f32 %v3684_v29, %v3586_v49  ;;  %v3815_v47 = vsub.s32 32, %v6949_v20 }
 0x223   : > { %v1685_v45 = vrot.slane %v1669_v50, %v7659_v63  ;;  %v1873_v12 = vrot.slane %v6978_v42, %v7659_v63  ;;  %v3681_v16 = vmul.f32 %v3656_v59, %v3243_v32  ;;  %v3799_v54 = vadd.s32 %v7710_v55, %v7709_v34  ;;  %v3309_v49 = vpop.permute.xlu0 %3308  ;;  %v7715_v59 = vld [vmem:[#allocation30_spill] sm:$0xff]  ;;  %v7717_v55 = vld [vmem:[#allocation33_spill] sm:$0xff] }
 0x224   : > { %4221 = vbcast.lane.b32.xlu1 %v4219_v38, 256  ;;  %v1699_v11 = vrot.slane %v1677_v13, %v7659_v63  ;;  %v6998_v39 = vrot.slane %v1775_v26, %v7659_v63  ;;  %v4240_v25 = vrot.slane %v6804_v7, %v7692_v40  ;;  %v3821_v19 = vshll.u32 %v3820_v48, 23  ;;  %v3274_v27 = vpop.permute.xlu1 %3273 }
 0x225   : > { %v3664_v10 = vrot.slane %v3634_v44, %v5114_v3  ;;  %v3689_v18 = vadd.f32 %v3681_v16, %v6908_v0  ;;  %v7004_v28 = vadd.f32 %v3690_v41, %v3309_v49  ;;  %v1783_v8 = vrot.slane %v1767_v43, %v7659_v63 }
 0x226   : > { %v1760_v60 = vcombine.high %v6953_v9, %v6953_v9  ;;  %v3817_v38 = vshrl.u32 %v3799_v54, %v3815_v47  ;;  %v1714_v52 = vrot.slane %v1685_v45, %v5114_v3  ;;  %v1881_v36 = vcombine.high %v1873_v12, %v1873_v12  ;;  %v7718_v54 = vld [vmem:[#allocation11_spill] sm:$0xff] }
 0x227   : > { %7711 = vst [vmem:[#allocation60_spill] sm:$0xff] %v7004_v28  ;;  %v3683_v1 = vmul.f32 %v3664_v10, %v3257_v33  ;;  %v1718_v40 = vrot.slane %v1699_v11, %v5114_v3  ;;  %v1707_v7 = vcombine.high %v1685_v45, %v1685_v45  ;;  %v1709_v58 = vcombine.high %v1699_v11, %v1699_v11  ;;  %v7012_v0 = vpop.permute.xlu0 %3957 }
 0x228   : > { %4228 = vbcast.lane.b32.xlu1 %v4226_v31, 256  ;;  %v1676_v62 = vrot.slane %v1662_v22, %v7659_v63  ;;  %v3816_v41 = vshll.u32 %v6695_v30, %v6949_v20  ;;  %v3822_v4 = vor.u32 4788187, %v3821_v19  ;;  %v1816_v9 = vrot.slane %v6998_v39, %v5114_v3  ;;  %v7712_v30 = vld [vmem:[#allocation8_spill] sm:$0xff]  ;;  %v3288_v47 = vpop.permute.xlu1 %3287 }
 0x229   : > { %v3691_v50 = vadd.f32 %v3683_v1, %v6917_v35  ;;  %v1812_v56 = vrot.slane %v1783_v8, %v5114_v3  ;;  %v1805_v43 = vcombine.high %v1783_v8, %v1783_v8  ;;  %v1774_v31 = vrot.slane %v1760_v60, %v7659_v63  ;;  %v7719_v8 = vld [vmem:[#allocation20_spill] sm:$0xff] }
 0x22a   : > { %v3818_v61 = vor.u32 %v3817_v38, %v3816_v41  ;;  %v7022_v23 = vrot.slane %v1881_v36, %v7659_v63  ;;  %v7025_v51 = vadd.f32 %v6923_v15, %v3274_v27  ;;  %v1751_v20 = vmul.f32 %v1714_v52, %v7712_v30 }
 0x22b   : > { %v1752_v5 = vmul.f32 %v1718_v40, %v7713_v57  ;;  %v1722_v29 = vrot.slane %v1707_v7, %v5114_v3  ;;  %v1889_v35 = vrot.slane %v1873_v12, %v7659_v63  ;;  %v7031_v13 = vpop.permute.xlu0 %4016  ;;  %v3823_v2 = vand.u32 2147483647, %v3822_v4  ;;  %v7720_v40 = vld [vmem:[#allocation43_spill] sm:$0xff] }
 0x22c   : > { %4235 = vbcast.lane.b32.xlu1 %v4233_v37, 256  ;;  %v1726_v48 = vrot.slane %v1709_v58, %v5114_v3  ;;  %v1692_v26 = vrot.slane %v1676_v62, %v7659_v63  ;;  %v7714_v37 = vld [vmem:[#allocation15_spill] sm:$0xff]  ;;  %v1849_v15 = vmul.f32 %v1812_v56, %v7715_v59  ;;  %v1820_v44 = vrot.slane %v1805_v43, %v5114_v3  ;;  %v3302_v1 = vpop.permute.xlu1 %3301 }
 0x22d   : > { %v1850_v53 = vmul.f32 %v1816_v9, %v7714_v37  ;;  %v1776_v22 = vcombine.high %v1774_v31, %v1774_v31  ;;  %v1866_v32 = vcombine.high %v6978_v42, %v6978_v42  ;;  %v3825_v45 = vcvt.s32.f32 %v3818_v61 }
 0x22e   : > { %v1807_v12 = vcombine.high %v6998_v39, %v6998_v39  ;;  %v1922_v16 = vrot.slane %v7022_v23, %v5114_v3  ;;  %v7044_v34 = vadd.f32 %v3687_v14, %v3288_v47  ;;  %vm3745_vm7 = vcmp.lt.s32.totalorder %v7717_v55, 0 }
 0x22f   : > { %v1753_v11 = vmul.f32 %v1722_v29, %v7718_v54  ;;  %v1790_v49 = vrot.slane %v1774_v31, %v7659_v63  ;;  %v1918_v19 = vrot.slane %v1889_v35, %v5114_v3  ;;  %v7050_v42 = vpop.permute.xlu0 %3971  ;;  %v3826_v10 = vmul.f32 %v3825_v45, %v3823_v2  ;;  %v7723_v31 = vld [vmem:[#allocation41_spill] sm:$0xff]  ;;  %v7724_v29 = vld [vmem:[#allocation26_spill] sm:$0xff] }
 0x230   : > { %4242 = vbcast.lane.b32.xlu1 %v4240_v25, 256  ;;  %7716 = vst [vmem:[#allocation61_spill] sm:$0xff] %v7044_v34  ;;  %v1678_v25 = vcombine.high %v1676_v62, %v1676_v62  ;;  %v1754_v60 = vmul.f32 %v1726_v48, %v7719_v8  ;;  %v1858_v39 = vadd.f32 %v1850_v53, %v1752_v5  ;;  %v7721_v62 = vld [vmem:[#allocation44_spill] sm:$0xff]  ;;  %v7727_v54 = vld [vmem:[#allocation45_spill] sm:$0xff]  ;;  %vm3835_vm15 = vweird.f32 %v7717_v55 }
 0x231   : > { %v1911_v33 = vcombine.high %v1889_v35, %v1889_v35  ;;  %v1708_v38 = vcombine.high %v1692_v26, %v1692_v26  ;;  %v1857_v52 = vadd.f32 %v1849_v15, %v1751_v20  ;;  %v1804_v14 = vrot.slane %v1776_v22, %v7659_v63  ;;  %v7725_v53 = vld [vmem:[#allocation32_spill] sm:$0xff]  ;;  %v7726_v22 = vld [vmem:[#allocation21_spill] sm:$0xff] }
 0x232   : > { %v1880_v36 = vrot.slane %v1866_v32, %v7659_v63  ;;  %v1851_v7 = vmul.f32 %v1820_v44, %v7720_v40  ;;  %v1824_v58 = vrot.slane %v1807_v12, %v5114_v3  ;;  %v1956_v41 = vmul.f32 %v1922_v16, %v7721_v62 }
 0x233   : > { %v7058_v4 = vadd.f32 %v3689_v18, %v3302_v1  ;;  %v1730_v9 = vrot.slane %v1692_v26, %v5114_v3  ;;  %v1706_v56 = vrot.slane %v1678_v25, %v7659_v63  ;;  %v1828_v43 = vrot.slane %v1790_v49, %v5114_v3  ;;  %v7064_v61 = vpop.permute.xlu0 %4075  ;;  %v3316_v26 = vpop.permute.xlu1 %3315 }
 0x234   : > { %v1955_v27 = vmul.f32 %v1918_v19, %v7723_v31  ;;  %v3827_v30 = vxor.u32 2147483648, %v3826_v10  ;;  %v1926_v20 = vrot.slane %v1911_v33, %v5114_v3  ;;  %v1913_v57 = vcombine.high %v7022_v23, %v7022_v23  ;;  %v7728_v19 = vld [vmem:[#allocation27_spill] sm:$0xff]  ;;  %v7729_v33 = vld [vmem:[#allocation25_spill] sm:$0xff] }
 0x235   : > { %7722 = vst [vmem:[#allocation57_spill] sm:$0xff] %v7058_v4  ;;  %v1964_v5 = vadd.f32 %v1956_v41, %v1858_v39  ;;  %v1755_v18 = vmul.f32 %v1730_v9, %v7724_v29  ;;  %v1738_v35 = vrot.slane %v1708_v38, %v5114_v3  ;;  %v1882_v2 = vcombine.high %v1880_v36, %v1880_v36 }
 0x236   : > { %v1963_v48 = vadd.f32 %v1955_v27, %v1857_v52  ;;  %v1859_v37 = vadd.f32 %v1851_v7, %v1753_v11  ;;  %v1852_v59 = vmul.f32 %v1824_v58, %v7725_v53  ;;  %v1832_v15 = vrot.slane %v1804_v14, %v5114_v3  ;;  %v7734_v58 = vld [vmem:[#allocation13_spill] sm:$0xff]  ;;  %v7735_v27 = vld [vmem:[#allocation16_spill] sm:$0xff] }
 0x237   : > { %v7073_v44 = vadd.f32 %v3691_v50, %v3316_v26  ;;  %v1853_v32 = vmul.f32 %v1828_v43, %v7726_v22  ;;  %v1806_v47 = vcombine.high %v1790_v49, %v1790_v49  ;;  %v1808_v45 = vcombine.high %v1804_v14, %v1804_v14  ;;  %v7077_v12 = vpop.permute.xlu0 %3978  ;;  %v7091_v52 = vpop.permute.xlu1 %3964 }
 0x238   : > { %v1896_v23 = vrot.slane %v1880_v36, %v7659_v63  ;;  %v3828_v16 = vsel %vm3745_vm7, %v3827_v30, %v3826_v10  ;;  %v1957_v25 = vmul.f32 %v1926_v20, %v7727_v54  ;;  %v1930_v11 = vrot.slane %v1913_v57, %v5114_v3  ;;  %v7730_v36 = vld [vmem:[#allocation36_spill] sm:$0xff] }
 0x239   : > { %v7084_v8 = vadd.f32 %v1964_v5, %v7728_v19  ;;  %v1734_v50 = vrot.slane %v1706_v56, %v5114_v3  ;;  %v1710_v39 = vcombine.high %v1706_v56, %v1706_v56  ;;  %v1910_v49 = vrot.slane %v1882_v2, %v7659_v63 }
 0x23a   : > { %v7089_v38 = vadd.f32 %v1963_v48, %v7729_v33  ;;  %v1860_v14 = vadd.f32 %v1852_v59, %v1754_v60  ;;  %v1854_v10 = vmul.f32 %v1832_v15, %v7730_v36  ;;  %v1965_v1 = vadd.f32 %v1957_v25, %v1859_v37  ;;  %v7736_v48 = vld [vmem:[#allocation12_spill] sm:$0xff]  ;;  %v7737_v37 = vld [vmem:[#allocation34_spill] sm:$0xff]  ;;  %v7741_v25 = vld [vmem:[#allocation9_spill] sm:$0xff] }
 0x23b   : > { %v7731_v40 = vand.u32 2147483647, %v7717_v55  ;;  %v1756_v62 = vmul.f32 %v1734_v50, %v7734_v58  ;;  %v1836_v41 = vrot.slane %v1806_v47, %v5114_v3  ;;  %v1934_v9 = vrot.slane %v1896_v23, %v5114_v3  ;;  %v7106_v60 = vpop.permute.xlu0 %4089  ;;  %v7114_v29 = vpop.permute.xlu1 %4023  ;;  %v7738_v59 = vld [vmem:[#allocation18_spill] sm:$0xff] }
 0x23c   : > { %v1861_v43 = vadd.f32 %v1853_v32, %v1755_v18  ;;  %v1840_v31 = vrot.slane %v1808_v45, %v5114_v3  ;;  %v1958_v30 = vmul.f32 %v1930_v11, %v7735_v27  ;;  %4905 = vtanh.f32 %v7084_v8  ;;  %v7739_v47 = vld [vmem:[#allocation42_spill] sm:$0xff] }
 0x23d   : > { %vm7096_vm8 = vcmp.le.f32.partialorder %v7731_v40, 0.7853982  ;;  %v1938_v20 = vrot.slane %v1910_v49, %v5114_v3  ;;  %v1912_v57 = vcombine.high %v1896_v23, %v1896_v23  ;;  %4907 = vtanh.f32 %v7089_v38 }
 0x23e   : > { %v3831_v56 = vsel %vm7096_vm8, %v7717_v55, %v3828_v16  ;;  %v3829_v5 = vsub.s32 4, %v7678_v17  ;;  %v1862_v2 = vadd.f32 %v1854_v10, %v1756_v62  ;;  %v7117_v26 = vadd.f32 %v1965_v1, %v7736_v48  ;;  %v7740_v16 = vld [vmem:[#allocation39_spill] sm:$0xff] }
 0x23f   : > { %v1966_v18 = vadd.f32 %v1958_v30, %v1860_v14  ;;  %4909 = vcosq.f32 %v3831_v56  ;;  %v1855_v53 = vmul.f32 %v1836_v41, %v7737_v37  ;;  %v1959_v15 = vmul.f32 %v1934_v9, %v7738_v59  ;;  %v7121_v32 = vpop.permute.xlu0 %4044  ;;  %v7131_v14 = vpop.permute.xlu1 %4030 }
 0x240   : > { %v1914_v22 = vcombine.high %v1910_v49, %v1910_v49  ;;  %4911 = vsinq.f32 %v3831_v56  ;;  %v1757_v45 = vmul.f32 %v1738_v35, %v7739_v47  ;;  %v1742_v23 = vrot.slane %v1710_v39, %v5114_v3  ;;  %v7742_v49 = vld [vmem:[#allocation29_spill] sm:$0xff]  ;;  %v7743_v35 = vld [vmem:[#allocation24_spill] sm:$0xff]  ;;  %v7745_v56 = vld [vmem:[#allocation23_spill] sm:$0xff] }
 0x241   : > { %v1856_v54 = vmul.f32 %v1840_v31, %v7740_v16  ;;  %v1960_v11 = vmul.f32 %v1938_v20, %v7741_v25  ;;  %v1942_v19 = vrot.slane %v1912_v57, %v5114_v3  ;;  %v1967_v50 = vadd.f32 %v1959_v15, %v1861_v43  ;;  %v7746_v20 = vld [vmem:[#allocation19_spill] sm:$0xff] }
 0x242   : > { %v3830_v33 = vsel %vm3745_vm7, %v3829_v5, %v7678_v17  ;;  %4913 = vtanh.f32 %v7117_v26  ;;  %v7135_v36 = vadd.f32 %v1966_v18, %v7742_v49  ;;  %v1758_v39 = vmul.f32 %v1742_v23, %v7743_v35  ;;  %v7744_v17 = vld [vmem:[#allocation10_spill] sm:$0xff]  ;;  %v7747_v5 = vld [vmem:[#allocation35_spill] sm:$0xff] }
 0x243   : > { %v1863_v10 = vadd.f32 %v1855_v53, %v1757_v45  ;;  %v1946_v1 = vrot.slane %v1914_v22, %v5114_v3  ;;  %v1968_v40 = vadd.f32 %v1960_v11, %v1862_v2  ;;  %v7139_v58 = vpop.permute.xlu0 %4134  ;;  %v3832_v62 = vsel %vm7096_vm8, 0, %v3830_v33  ;;  %v7147_v31 = vpop.permute.xlu1 %4082  ;;  %v7748_v45 = vld [vmem:[#allocation14_spill] sm:$0xff]  ;;  %v7749_v33 = vld [vmem:[#allocation31_spill] sm:$0xff] }
 0x244   : > { %v1864_v41 = vadd.f32 %v1856_v54, %v1758_v39  ;;  %v1961_v9 = vmul.f32 %v1942_v19, %v7744_v17  ;;  %v7145_v43 = vadd.f32 %v1967_v50, %v7745_v56  ;;  %4915 = vtanh.f32 %v7135_v36 }
 0x245   : > { %v1962_v57 = vmul.f32 %v1946_v1, %v7746_v20  ;;  %v7152_v2 = vadd.f32 %v1968_v40, %v7747_v5  ;;  %v3836_v7 = vadd.s32 3, %v3832_v62  ;;  %v3940_v50 = vand.u32 3, %v3832_v62  ;;  %v7752_v62 = vld [vmem:[#allocation40_spill] sm:$0xff] }
 0x246   : > { %v4906_v27 = vpop.eup %4905  ;;  %v1969_v48 = vadd.f32 %v1961_v9, %v1863_v10  ;;  %4917 = vtanh.f32 %v7145_v43 }
 0x247   : > { %v4908_v30 = vpop.eup %4907  ;;  %v7154_v18 = vpop.permute.xlu0 %3992  ;;  %v1970_v59 = vadd.f32 %v1962_v57, %v1864_v41  ;;  %v1988_v15 = vadd.f32 1.0, %v4906_v27  ;;  %4919 = vtanh.f32 %v7152_v2  ;;  %v3837_v16 = vand.u32 3, %v3836_v7 }
 0x248   : > { %v7157_v22 = vpop.permute.xlu1 %4037  ;;  %v1987_v47 = vadd.f32 1.0, %v4908_v30  ;;  %v7161_v23 = vadd.f32 %v1969_v48, %v7748_v45  ;;  %vm3942_vm11 = vcmp.eq.s32.totalorder %v3940_v50, 0  ;;  %vm3945_vm12 = vcmp.eq.s32.totalorder %v3940_v50, 2 }
 0x249   : > { %v4910_v37 = vpop.eup %4909  ;;  %v7166_v49 = vadd.f32 %v1970_v59, %v7749_v33  ;;  %v1996_v35 = vmul.f32 %v1988_v15, %v7084_v8  ;;  %vm3839_vm9 = vcmp.eq.s32.totalorder %v3837_v16, 0  ;;  %vm3842_vm10 = vcmp.eq.s32.totalorder %v3837_v16, 2 }
 0x24a   : > { %v4912_v53 = vpop.eup %4911  ;;  %v3843_v19 = vxor.u32 2147483648, %v4910_v37  ;;  %v1995_v10 = vmul.f32 %v1987_v47, %v7089_v38  ;;  %4921 = vtanh.f32 %v7161_v23  ;;  %v7753_v38 = vld [vmem:[#allocation38_spill] sm:$0xff]  ;;  %vm3838_vm13 = vcmp.lt.s32.totalorder %v3837_v16, 2 }
 0x24b   : > { %v3840_v11 = vxor.u32 2147483648, %v4912_v53  ;;  %7750 = vst [vmem:[#allocation58_spill] sm:$0xff] %v7166_v49  ;;  %4923 = vtanh.f32 %v7166_v49  ;;  %v2004_v8 = vmul.f32 %v1996_v35, %v7752_v62  ;;  %vm3941_vm14 = vcmp.lt.s32.totalorder %v3940_v50, 2 }
 0x24c   : > { %v4914_v25 = vpop.eup %4913  ;;  %v3844_v9 = vsel %vm3842_vm10, %v3843_v19, %v4912_v53  ;;  %v3947_v27 = vsel %vm3945_vm12, %v3843_v19, %v4912_v53  ;;  %v2003_v20 = vmul.f32 %v1995_v10, %v7753_v38  ;;  %v4252_v15 = vrot.slane %v7717_v55, %v7659_v63  ;;  %v7756_v38 = vld [vmem:[#allocation48_spill] sm:$0xff] }
 0x24d   : > { %v1989_v1 = vadd.f32 1.0, %v4914_v25  ;;  %v3841_v17 = vsel %vm3839_vm9, %v4910_v37, %v3840_v11  ;;  %v3944_v56 = vsel %vm3942_vm11, %v4910_v37, %v3840_v11  ;;  %v7754_v11 = vld [vmem:[#allocation47_spill] sm:$0xff]  ;;  %v4245_v50 = vcombine.high %v7717_v55, %v7717_v55 }
 0x24e   : > { %v4916_v41 = vpop.eup %4915  ;;  %v3845_v7 = vsel %vm3838_vm13, %v3841_v17, %v3844_v9  ;;  %v3948_v47 = vsel %vm3941_vm14, %v3944_v56, %v3947_v27  ;;  %v2011_v37 = vadd.f32 %v2004_v8, %v2003_v20  ;;  %4925 = vtanh.f32 %v6974_v46 }
 0x24f   : > { %v1997_v5 = vmul.f32 %v1989_v1, %v7117_v26  ;;  %v1990_v48 = vadd.f32 1.0, %v4916_v41  ;;  %v3846_v16 = vsel %vm3835_vm15, nan, %v3845_v7  ;;  %v3949_v33 = vsel %vm3835_vm15, nan, %v3948_v47 }
 0x250   : > { %v4918_v57 = vpop.eup %4917  ;;  %v4260_v1 = vcombine.high %v4252_v15, %v4252_v15  ;;  %v4343_v9 = vcombine.high %v3846_v16, %v3846_v16  ;;  %v4350_v8 = vrot.slane %v3846_v16, %v7659_v63  ;;  %v4449_v56 = vcombine.high %v3949_v33, %v3949_v33 }
 0x251   : > { %v4920_v45 = vpop.eup %4919  ;;  %v1991_v25 = vadd.f32 1.0, %v4918_v57  ;;  %v2005_v19 = vmul.f32 %v1997_v5, %v7754_v11  ;;  %v1998_v26 = vmul.f32 %v1990_v48, %v7135_v36  ;;  %v4456_v57 = vrot.slane %v3949_v33, %v7659_v63 }
 0x252   : > { %v1992_v10 = vadd.f32 1.0, %v4920_v45  ;;  %v4259_v55 = vrot.slane %v4245_v50, %v7659_v63  ;;  %v7205_v47 = vrot.slane %v4252_v15, %v7659_v63  ;;  %v7208_v45 = vrot.slane %v4260_v1, %v7659_v63  ;;  %v7761_v1 = vld [vmem:[#allocation50_spill] sm:$0xff] }
 0x253   : > { %v2012_v17 = vadd.f32 %v2011_v37, %v2005_v19  ;;  %v2006_v20 = vmul.f32 %v1998_v26, %v7756_v38  ;;  %v1999_v36 = vmul.f32 %v1991_v25, %v7145_v43  ;;  %v4357_v16 = vrot.slane %v4343_v9, %v7659_v63  ;;  %v7759_v26 = vld [vmem:[#allocation49_spill] sm:$0xff] }
 0x254   : > { %v7163_v54 = vpop.permute.xlu0 %4103  ;;  %v4922_v41 = vpop.eup %4921  ;;  %v2000_v48 = vmul.f32 %v1992_v10, %v7152_v2  ;;  %v4358_v25 = vcombine.high %v4350_v8, %v4350_v8  ;;  %v4463_v19 = vrot.slane %v4449_v56, %v7659_v63  ;;  %v4464_v2 = vcombine.high %v4456_v57, %v4456_v57 }
 0x255   : > { %v4924_v27 = vpop.eup %4923  ;;  %v1993_v7 = vadd.f32 1.0, %v4922_v41  ;;  %v2013_v37 = vadd.f32 %v2012_v17, %v2006_v20  ;;  %v2007_v33 = vmul.f32 %v1999_v36, %v7759_v26  ;;  %v7218_v50 = vrot.slane %v4259_v55, %v7659_v63 }
 0x256   : > { %v7169_v39 = vpop.permute.xlu1 %3985  ;;  %v7213_v43 = vadd.f32 1.0, %v4924_v27  ;;  %v4261_v15 = vcombine.high %v4259_v55, %v4259_v55  ;;  %v7223_v41 = vmul.f32 %v2000_v48, %v7761_v1  ;;  %v4290_v9 = vcombine.high %v7205_v47, %v7205_v47 }
 0x257   : > { %v7226_v17 = vmul.f32 %v1993_v7, %v7161_v23  ;;  %v4292_v56 = vcombine.high %v7208_v45, %v7208_v45  ;;  %v7232_v27 = vadd.f32 %v2013_v37, %v2007_v33  ;;  %v4297_v38 = vrot.slane %v7205_v47, %v5114_v3 }
 0x258   : > { %v7173_v40 = vpop.permute.xlu0 %3999  ;;  %7758 = vst [vmem:[#allocation46_spill] sm:$0xff] %v7213_v43  ;;  %7762 = vst [vmem:[#allocation64_spill] sm:$0xff] %v7223_v41  ;;  %v4366_v20 = vrot.slane %v4350_v8, %v7659_v63  ;;  %v4359_v36 = vcombine.high %v4357_v16, %v4357_v16  ;;  %v4380_v23 = vrot.slane %v4358_v25, %v7659_v63  ;;  %4927 = vtanh.f32 %v6984_v21 }
 0x259   : > { %7751 = vst [vmem:[#allocation63_spill] sm:$0xff] %v7173_v40  ;;  %7763 = vst [vmem:[#allocation28_spill] sm:$0xff] %v7226_v17  ;;  %v7242_v48 = vrot.slane %v4456_v57, %v7659_v63  ;;  %v4465_v7 = vcombine.high %v4463_v19, %v4463_v19  ;;  %v4486_v37 = vrot.slane %v4464_v2, %v7659_v63  ;;  %4929 = vtanh.f32 %v7025_v51 }
 0x25a   : > { %v7177_v30 = vpop.permute.xlu1 %4096  ;;  %7764 = vst [vmem:[#allocation7_spill] sm:$0xff] %v7232_v27  ;;  %v7247_v26 = vrot.slane %v4261_v15, %v7659_v63  ;;  %v4291_v8 = vcombine.high %v7218_v50, %v7218_v50  ;;  %v4301_v33 = vrot.slane %v7208_v45, %v5114_v3  ;;  %v4305_v25 = vrot.slane %v4290_v9, %v5114_v3 }
 0x25b   : > { %v7255_v57 = vrot.slane %v4292_v56, %v5114_v3  ;;  %v7258_v1 = vrot.slane %v4357_v16, %v7659_v63  ;;  %v4388_v2 = vcombine.high %v4366_v20, %v4366_v20  ;;  %v7262_v15 = vrot.slane %v4359_v36, %v7659_v63 }
 0x25c   : > { %v7181_v59 = vpop.permute.xlu0 %4110  ;;  %v7265_v24 = vrot.slane %v4463_v19, %v7659_v63  ;;  %v4390_v45 = vcombine.high %v4380_v23, %v4380_v23  ;;  %v4494_v9 = vcombine.high %v7242_v48, %v7242_v48  ;;  %v4313_v56 = vrot.slane %v7218_v50, %v5114_v3 }
 0x25d   : > { %v7274_v16 = vrot.slane %v4465_v7, %v7659_v63  ;;  %v4395_v43 = vrot.slane %v4366_v20, %v5114_v3  ;;  %v4496_v49 = vcombine.high %v4486_v37, %v4486_v37  ;;  %v7280_v19 = vrot.slane %v4291_v8, %v5114_v3 }
 0x25e   : > { %v7186_v53 = vpop.permute.xlu1 %4141  ;;  %v4399_v41 = vrot.slane %v4380_v23, %v5114_v3  ;;  %v4389_v63 = vcombine.high %v7258_v1, %v7258_v1  ;;  %v4293_v50 = vcombine.high %v7247_v26, %v7247_v26  ;;  %v4403_v20 = vrot.slane %v4388_v2, %v5114_v3 }
 0x25f   : > { %7766 = vst [vmem:[#allocation56_spill] sm:$0xff] %v7280_v19  ;;  %v4411_v7 = vrot.slane %v7258_v1, %v5114_v3  ;;  %v4391_v36 = vcombine.high %v7262_v15, %v7262_v15  ;;  %v4495_v23 = vcombine.high %v7265_v24, %v7265_v24  ;;  %v4497_v2 = vcombine.high %v7274_v16, %v7274_v16 }
 0x260   : > { %v7192_v35 = vpop.permute.xlu0 %4006  ;;  %4931 = vtanh.f32 %v7044_v34  ;;  %v4513_v1 = vrot.slane %v4496_v49, %v5114_v3  ;;  %v4521_v19 = vrot.slane %v7274_v16, %v5114_v3  ;;  %v7318_v34 = vrot.slane %v4293_v50, %v5114_v3 }
 0x261   : > { %7755 = vst [vmem:[#allocation62_spill] sm:$0xff] %v7192_v35  ;;  %v4509_v35 = vrot.slane %v4494_v9, %v5114_v3  ;;  %v4419_v9 = vrot.slane %v4389_v63, %v5114_v3  ;;  %4933 = vtanh.f32 %v7058_v4  ;;  %v7332_v16 = vrot.slane %v4497_v2, %v5114_v3 }
 0x262   : > { %v7194_v62 = vpop.permute.xlu1 %4051  ;;  %4935 = vtanh.f32 %v7004_v28  ;;  %v4335_v50 = vmul.f32 %v4301_v33, %v7091_v52  ;;  %v4336_v28 = vmul.f32 %v4305_v25, %v7050_v42  ;;  %v4338_v42 = vmul.f32 %v4313_v56, %v7169_v39 }
 0x263   : > { %4937 = vtanh.f32 %v7073_v44  ;;  %v4540_v52 = vmul.f32 %v4509_v35, %v7106_v60 }
 0x264   : > { %v7201_v5 = vpop.permute.xlu0 %4117 }
 0x265   : > { %7757 = vst [vmem:[#allocation37_spill] sm:$0xff] %v7201_v5  ;;  %v4517_v5 = vrot.slane %v7265_v24, %v5114_v3  ;;  %v7323_v24 = vrot.slane %v4391_v36, %v5114_v3 }
 0x266   : > { %v7211_v11 = vpop.permute.xlu1 %4148 }
 0x267   : > { %v4542_v39 = vmul.f32 %v4517_v5, %v7163_v54 }
 0x268   : > { %v7220_v10 = vpop.permute.xlu0 %4124 }
 0x269   : > { %7760 = vst [vmem:[#allocation22_spill] sm:$0xff] %v7220_v10  ;;  %v4501_v10 = vrot.slane %v7242_v48, %v5114_v3  ;;  %v4505_v48 = vrot.slane %v4486_v37, %v5114_v3  ;;  %v4926_v37 = vpop.eup %4925 }
 0x26a   : > { %v7237_v55 = vpop.permute.xlu1 %4058  ;;  %v4928_v49 = vpop.eup %4927  ;;  %v3710_v36 = vadd.f32 1.0, %v4926_v37  ;;  %v7771_v37 = vld [vmem:[#allocation63_spill] sm:$0xff] }
 0x26b   : > { %v4930_v63 = vpop.eup %4929  ;;  %v4438_v54 = vmul.f32 %v4419_v9, %v7237_v55 }
 0x26c   : > { %v3323_v47 = vpop.permute.xlu0 %3322  ;;  %v3718_v60 = vmul.f32 %v3710_v36, %v6974_v46  ;;  %v4932_v35 = vpop.eup %4931  ;;  %v4543_v46 = vmul.f32 %v4521_v19, %v7181_v59  ;;  %v7775_v19 = vld [vmem:[#allocation37_spill] sm:$0xff] }
 0x26d   : > { %v4934_v56 = vpop.eup %4933 }
 0x26e   : > { %v7267_v17 = vpop.permute.xlu1 %4155 }
 0x26f   : > { %7765 = vst [vmem:[#allocation65_spill] sm:$0xff] %v7267_v17 }
 0x270   : > { %v7282_v27 = vpop.permute.xlu0 %4183 }
 0x271   : > { %7767 = vst [vmem:[#allocation66_spill] sm:$0xff] %v7282_v27  ;;  %v4407_v27 = vrot.slane %v4390_v45, %v5114_v3  ;;  %v4432_v45 = vmul.f32 %v4395_v43, %v7031_v13  ;;  %v4334_v13 = vmul.f32 %v4297_v38, %v7012_v0  ;;  %v4434_v43 = vmul.f32 %v4403_v20, %v7131_v14 }
 0x272   : > { %v7294_v8 = vpop.permute.xlu1 %4065  ;;  %v4538_v0 = vmul.f32 %v4501_v10, %v7064_v61  ;;  %v3712_v14 = vadd.f32 1.0, %v4928_v49  ;;  %v4541_v61 = vmul.f32 %v4513_v1, %v7177_v30 }
 0x273   : > { %7768 = vst [vmem:[#allocation53_spill] sm:$0xff] %v7294_v8  ;;  %v4415_v8 = vrot.slane %v7262_v15, %v5114_v3  ;;  %v4433_v15 = vmul.f32 %v4399_v41, %v7114_v29  ;;  %v4539_v29 = vmul.f32 %v4505_v48, %v7147_v31  ;;  %v7337_v41 = vadd.f32 %v6988_v6, %v3323_v47 }
 0x274   : > { %v7311_v17 = vpop.permute.xlu0 %3339  ;;  %v4440_v4 = vadd.f32 %v4432_v45, %v4334_v13  ;;  %v4435_v20 = vmul.f32 %v4407_v27, %v7157_v22  ;;  %v4442_v33 = vadd.f32 %v4434_v43, %v4336_v28  ;;  %v4337_v6 = vmul.f32 %v7255_v57, %v7077_v12  ;;  %v7772_v45 = vld [vmem:[#allocation56_spill] sm:$0xff] }
 0x275   : > { %7769 = vst [vmem:[#allocation55_spill] sm:$0xff] %v7311_v17  ;;  %v4525_v17 = vrot.slane %v4495_v23, %v5114_v3  ;;  %v4441_v38 = vadd.f32 %v4433_v15, %v4335_v50  ;;  %v4436_v47 = vmul.f32 %v4411_v7, %v7121_v32  ;;  %v3709_v48 = vadd.f32 1.0, %v4930_v63 }
 0x276   : > { %v7326_v40 = vpop.permute.xlu1 %4162  ;;  %4939 = vtanh.f32 %v7337_v41  ;;  %v4546_v2 = vadd.f32 %v4538_v0, %v4440_v4  ;;  %v4437_v22 = vmul.f32 %v4415_v8, %v7194_v62  ;;  %v3720_v28 = vmul.f32 %v3712_v14, %v6984_v21 }
 0x277   : > { %v4547_v10 = vadd.f32 %v4539_v29, %v4441_v38  ;;  %v4443_v12 = vadd.f32 %v4435_v20, %v4337_v6  ;;  %v4548_v27 = vadd.f32 %v4540_v52, %v4442_v33  ;;  %v7770_v4 = vrot.slane %v7247_v26, %v5114_v3  ;;  %v7777_v38 = vld [vmem:[#allocation62_spill] sm:$0xff]  ;;  %v7778_v52 = vld [vmem:[#allocation61_spill] sm:$0xff] }
 0x278   : > { %v7339_v23 = vpop.permute.xlu0 %4193  ;;  %v7360_v57 = vadd.f32 %v4546_v2, %v7139_v58  ;;  %v3717_v21 = vmul.f32 %v3709_v48, %v7025_v51  ;;  %v4444_v7 = vadd.f32 %v4436_v47, %v4338_v42  ;;  %v4936_v58 = vpop.eup %4935  ;;  %v4340_v49 = vmul.f32 %v7772_v45, %v7771_v37  ;;  %v7774_v51 = vld [vmem:[#allocation65_spill] sm:$0xff]  ;;  %v7779_v48 = vld [vmem:[#allocation22_spill] sm:$0xff] }
 0x279   : > { %v7356_v32 = vadd.f32 %v4547_v10, %v7186_v53  ;;  %v4339_v62 = vmul.f32 %v7770_v4, %v7154_v18  ;;  %v7369_v53 = vadd.f32 %v4548_v27, %v7211_v11  ;;  %v4549_v5 = vadd.f32 %v4541_v61, %v4443_v12  ;;  %v4938_v63 = vpop.eup %4937  ;;  %v7782_v12 = vld [vmem:[#allocation7_spill] sm:$0xff] }
 0x27a   : > { %v4170_v31 = vpop.permute.xlu1 %4169  ;;  %v3711_v26 = vadd.f32 1.0, %v4932_v35  ;;  %v4544_v11 = vmul.f32 %v4525_v17, %v7775_v19  ;;  %v4550_v15 = vadd.f32 %v4542_v39, %v4444_v7  ;;  %v3713_v43 = vadd.f32 1.0, %v4934_v56  ;;  %v7776_v29 = vld [vmem:[#allocation53_spill] sm:$0xff]  ;;  %v7784_v7 = vld [vmem:[#allocation58_spill] sm:$0xff] }
 0x27b   : > { %v4445_v1 = vadd.f32 %v4437_v22, %v4339_v62  ;;  %4941 = vtanh.f32 %v7356_v32  ;;  %v7377_v59 = vadd.f32 %v4549_v5, %v7774_v51  ;;  %v4446_v50 = vadd.f32 %v4438_v54, %v4340_v49  ;;  %v7780_v22 = vld [vmem:[#allocation57_spill] sm:$0xff]  ;;  %v7785_v54 = vld [vmem:[#allocation46_spill] sm:$0xff] }
 0x27c   : > { %v3354_v25 = vpop.permute.xlu0 %3353  ;;  %v7773_v3 = vld [vmem:[#allocation55_spill] sm:$0xff]  ;;  %4943 = vtanh.f32 %v7360_v57  ;;  %v4439_v36 = vmul.f32 %v7323_v24, %v7776_v29  ;;  %v7385_v0 = vadd.f32 %v4550_v15, %v7326_v40  ;;  %v4341_v17 = vmul.f32 %v7318_v34, %v7777_v38  ;;  %v7781_v34 = vld [vmem:[#allocation64_spill] sm:$0xff] }
 0x27d   : > { %v3726_v18 = vmul.f32 %v3718_v60, %v7773_v3  ;;  %v4551_v55 = vadd.f32 %v4543_v46, %v4445_v1  ;;  %4945 = vtanh.f32 %v7369_v53  ;;  %v3719_v33 = vmul.f32 %v3711_v26, %v7778_v52  ;;  %v7787_v1 = vld [vmem:[#allocation28_spill] sm:$0xff] }
 0x27e   : > { %v4177_v30 = vpop.permute.xlu1 %4176  ;;  %v3714_v6 = vadd.f32 1.0, %v4936_v58  ;;  %4947 = vtanh.f32 %v7377_v59  ;;  %v4545_v42 = vmul.f32 %v7332_v16, %v7779_v48  ;;  %v4552_v24 = vadd.f32 %v4544_v11, %v4446_v50  ;;  %v7786_v58 = vld [vmem:[#allocation51_spill] sm:$0xff] }
 0x27f   : > { %v7393_v61 = vadd.f32 %v4551_v55, %v4170_v31  ;;  %v3728_v2 = vmul.f32 %v3720_v28, %v3354_v25  ;;  %v3721_v60 = vmul.f32 %v3713_v43, %v7780_v22  ;;  %v3715_v35 = vadd.f32 1.0, %v4938_v63  ;;  %v7783_v31 = vld [vmem:[#allocation60_spill] sm:$0xff] }
 0x280   : > { %v3361_v8 = vpop.permute.xlu0 %3360  ;;  %v4940_v47 = vpop.eup %4939  ;;  %v2015_v39 = vadd.f32 %v7782_v12, %v7781_v34  ;;  %v4447_v27 = vadd.f32 %v4439_v36, %v4341_v17  ;;  %4949 = vtanh.f32 %v7385_v0  ;;  %v7399_v4 = vadd.f32 %v4552_v24, %v4177_v30  ;;  %v7789_v43 = vld [vmem:[#allocation52_spill] sm:$0xff] }
 0x281   : > { %v3729_v16 = vmul.f32 %v3721_v60, %v3361_v8  ;;  %v3716_v56 = vadd.f32 1.0, %v4940_v47  ;;  %v2002_v25 = vmul.f32 %v7785_v54, %v7784_v7  ;;  %4951 = vtanh.f32 %v7393_v61  ;;  %v7788_v8 = vld [vmem:[#allocation66_spill] sm:$0xff] }
 0x282   : > { %v3333_v13 = vpop.permute.xlu1 %3332  ;;  %v4553_v28 = vadd.f32 %v4545_v42, %v4447_v27  ;;  %v2009_v37 = vmul.f32 %v7787_v1, %v7786_v58  ;;  %v3723_v30 = vmul.f32 %v3715_v35, %v7073_v44  ;;  %4953 = vtanh.f32 %v7399_v4 }
 0x283   : > { %v3725_v9 = vmul.f32 %v3717_v21, %v3333_v13  ;;  %v3722_v21 = vmul.f32 %v3714_v6, %v7783_v31  ;;  %v3724_v13 = vmul.f32 %v3716_v56, %v7337_v41  ;;  %v2010_v63 = vmul.f32 %v2002_v25, %v7789_v43  ;;  %v7790_v6 = vld [vmem:[#allocation59_spill] sm:$0xff] }
 0x284   : > { %v3368_v14 = vpop.permute.xlu0 %3367  ;;  %v2016_v19 = vadd.f32 %v2015_v39, %v2009_v37 }
 0x285   : > { %v3733_v20 = vadd.f32 %v3726_v18, %v3725_v9  ;;  %v3730_v49 = vmul.f32 %v3722_v21, %v3368_v14  ;;  %v4942_v3 = vpop.eup %4941  ;;  %v4561_v18 = vadd.f32 %v4553_v28, %v7788_v8 }
 0x286   : > { %v3347_v10 = vpop.permute.xlu1 %3346  ;;  %v4944_v51 = vpop.eup %4943  ;;  %v4571_v50 = vadd.f32 1.0, %v4942_v3  ;;  %v2017_v38 = vadd.f32 %v2016_v19, %v2010_v63 }
 0x287   : > { %v3727_v40 = vmul.f32 %v3719_v33, %v3347_v10  ;;  %v4946_v55 = vpop.eup %4945  ;;  %4955 = vtanh.f32 %v4561_v18  ;;  %v4570_v14 = vadd.f32 1.0, %v4944_v51 }
 0x288   : > { %v3375_v62 = vpop.permute.xlu0 %3374  ;;  %v4948_v44 = vpop.eup %4947  ;;  %v4572_v17 = vadd.f32 1.0, %v4946_v55  ;;  %v2879_v47 = vadd.f32 %v7790_v6, %v2017_v38  ;;  %v4579_v48 = vmul.f32 %v4571_v50, %v7356_v32 }
 0x289   : > { %v3734_v46 = vadd.f32 %v3733_v20, %v3727_v40  ;;  %v3731_v15 = vmul.f32 %v3723_v30, %v3375_v62  ;;  %v4573_v41 = vadd.f32 1.0, %v4948_v44  ;;  %v4578_v10 = vmul.f32 %v4570_v14, %v7360_v57 }
 0x28a   : > { %v4201_v5 = vpop.permute.xlu1 %4200  ;;  %v4950_v52 = vpop.eup %4949 }
 0x28b   : > { %v3735_v45 = vadd.f32 %v3734_v46, %v3728_v2  ;;  %v4952_v24 = vpop.eup %4951  ;;  %v4587_v40 = vmul.f32 %v4579_v48, %v4201_v5  ;;  %v4580_v2 = vmul.f32 %v4572_v17, %v7369_v53  ;;  %v4574_v22 = vadd.f32 1.0, %v4950_v52 }
 0x28c   : > { %v3382_v26 = vpop.permute.xlu0 %3381  ;;  %v4954_v35 = vpop.eup %4953  ;;  %v4586_v12 = vmul.f32 %v4578_v10, %v7339_v23  ;;  %v4581_v27 = vmul.f32 %v4573_v41, %v7377_v59  ;;  %v4575_v62 = vadd.f32 1.0, %v4952_v24 }
 0x28d   : > { %v3736_v11 = vadd.f32 %v3735_v45, %v3729_v16  ;;  %v3732_v36 = vmul.f32 %v3724_v13, %v3382_v26  ;;  %v4582_v16 = vmul.f32 %v4574_v22, %v7385_v0  ;;  %v4576_v31 = vadd.f32 1.0, %v4954_v35 }
 0x28e   : > { %v4208_v9 = vpop.permute.xlu1 %4207  ;;  %v4594_v32 = vadd.f32 %v4587_v40, %v4586_v12  ;;  %v4583_v7 = vmul.f32 %v4575_v62, %v7393_v61 }
 0x28f   : > { %v3737_v29 = vadd.f32 %v3736_v11, %v3730_v49  ;;  %v4588_v39 = vmul.f32 %v4580_v2, %v4208_v9  ;;  %v4584_v23 = vmul.f32 %v4576_v31, %v7399_v4 }
 0x291   : > { %v3738_v20 = vadd.f32 %v3737_v29, %v3731_v15  ;;  %v4956_v57 = vpop.eup %4955  ;;  %v4595_v56 = vadd.f32 %v4594_v32, %v4588_v39 }
 0x292   : > { %v4215_v33 = vpop.permute.xlu1 %4214  ;;  %v4577_v28 = vadd.f32 1.0, %v4956_v57 }
 0x293   : > { %v3739_v42 = vadd.f32 %v3738_v20, %v3732_v36  ;;  %v4589_v46 = vmul.f32 %v4581_v27, %v4215_v33 }
 0x294   : > { %v4585_v0 = vmul.f32 %v4577_v28, %v4561_v18 }
 0x295   : > { %v3740_v60 = vadd.f32 %v3739_v42, %v2879_v47  ;;  %v4596_v54 = vadd.f32 %v4595_v56, %v4589_v46 }
 0x296   : > { %v4222_v34 = vpop.permute.xlu1 %4221 }
 0x297   : > { %v4590_v53 = vmul.f32 %v4582_v16, %v4222_v34 }
 0x299   : > { %v4597_v5 = vadd.f32 %v4596_v54, %v4590_v53 }
 0x29a   : > { %v4229_v21 = vpop.permute.xlu1 %4228 }
 0x29b   : > { %v4591_v25 = vmul.f32 %v4583_v7, %v4229_v21 }
 0x29d   : > { %v4598_v1 = vadd.f32 %v4597_v5, %v4591_v25  ;;  %v4606_v3 = vpop.permute.xlu0 %4605 }
 0x29e   : > { %v4236_v59 = vpop.permute.xlu1 %4235 }
 0x29f   : > { %v4592_v58 = vmul.f32 %v4584_v23, %v4236_v59 }
 0x2a1   : > { %v4599_v45 = vadd.f32 %v4598_v1, %v4592_v58 }
 0x2a2   : > { %v4243_v37 = vpop.permute.xlu1 %4242 }
 0x2a3   : > { %v4593_v49 = vmul.f32 %v4585_v0, %v4243_v37 }
 0x2a5   : > { %v4600_v30 = vadd.f32 %v4599_v45, %v4593_v49 }
 0x2a7   : > { %v4601_v61 = vadd.f32 %v4600_v30, %v3740_v60 }
 0x2a9   : > { %v4608_v8 = vadd.f32 %v4606_v3, %v4601_v61 }
 0x2ab   : > { %4609 = vst [vmem:[%s215_s9] sm:$0xff] %v4608_v8 }
 0x2ac   : > { %4970 = shalt.err (!%p4967_p3)
}
 0x2ad   : > { %s4971_s23 = scalar_lea.hbm %s7426_s13, 128  ;;  %s4975_s30 = scalar_lea.hbm %s7473_s5, 256 }
 0x2ae   : > { %p4972_p4 = scmp.ne.s32.totalorder %s7426_s13, %s4971_s23  ;;  %p4976_p9 = scmp.lt.u32.totalorder %s7426_s13, %s7473_s5 }
 0x2af   : > { %p4977_p10 = scmp.lt.u32.totalorder %s4975_s30, %s4971_s23  ;;  %p4979_p12 = scmp.lt.u32.totalorder %s4971_s23, %s7426_s13 }
 0x2b0   : > { %p4973_p7 = pnand %p4972_p4, %p5098_p5 }
 0x2b1   : > { %p4978_p11 = por %p4977_p10, %p4976_p9 }
 0x2b2   : > { %p4974_p8 = pneg %p4973_p7 }
 0x2b3   : > { %p4980_p13 = por %p4979_p12, %p4978_p11 }
 0x2b5   : > { %p4981_p0 = pnand %p4980_p13, %p4974_p8 }
 0x2b7   : > { %4984 = shalt.err (!%p4981_p0)
}
 0x2b8   : > { %4792 = dma.vmem_to_hbm [thread:$0]  (%p5098_p5), %s7428_s10, 128, %s7426_s13, %s4611_s14  }
 0x2b9 PF: > { %p4798_p1 = scmp.ge.s32.totalorder %s5019_s21, 2  ;;  %s4636_s8 = sand.u32 1, %s5007_s18  }
 0x2ba   : > { %s4637_s9 = scalar_lea.sflag [#allocation5], %s4636_s8 }
 0x2bb   : > { %p4795_p2 = pnand %p4798_p1, %p5102_p6 }
 0x2bd   : > { %5002 = dma.done.wait (!%p4795_p2), %s4637_s9, 128  }
 0x2be   : > { %5004 = vsyncadd (!%p4795_p2), %s4637_s9, 4294967168  ;;  %p15_p3 = scmp.ge.s32.totalorder %s5085_s24, 4   ;;  %s7791_s18 = smov %s5011_s19 }
 0x2bf   : > { %s7792_s19 = smov %s5015_s20  ;;  %s7793_s20 = smov %s5096_s27 }
 0x2c0   : > { %s7794_s21 = smov %s5085_s24  ;;  %17 = sbr.rel (!%p15_p3) target bundleno = 3 (0x3), region = 101 }
 0x2c7   :  { %4642 = vsyncpa [#allocation5], 1 }
 0x2c8   :  { %4644 = vsyncpa [#allocation5 + $0x1], 1 }

</bundles_post_ra>
